<compile_context>
chip_gen: v7x
topology: tpu7x:2x2x1
jax: 0.10.0
libtpu: 0.0.40
codegen_flags: <defaults>
</compile_context>

<pallas_src>
import jax
import jax.numpy as jnp
from jax import lax
from jax.experimental import pallas as pl
from jax.experimental.pallas import tpu as pltpu


# ----------------------------- static helpers --------------------------------

def _time_chunk(T, max_ts=8):
    """Largest divisor of T that is <= max_ts (time-chunk for dense stores)."""
    for ts in range(min(max_ts, T), 0, -1):
        if T % ts == 0:
            return ts
    return 1


def _vmem_estimate(b_tile, Hp, Wp, Cin, T, Cout, H):
    """Rough per-grid-step VMEM footprint in bytes (double-buffered I/O)."""
    f32, bf16 = 4, 2
    est = 0
    est += 2 * b_tile * Hp * Wp * Cin * f32            # xp block, double buffered
    est += 2 * b_tile * T * 2 * H * f32                # out block, double buffered
    est += b_tile * T * 8 * H * f32                    # gate scratch
    est += 2 * (9 * Cin * Cout + Cout * 8 * H + 2 * H * 4 * H) * bf16   # weights
    est += 2 * (Cout + 8 * H) * f32                    # biases
    est += 2 * b_tile * T * max(Cout, 8 * H) * f32     # in-kernel intermediates headroom
    return est


# --------------------- fused conv + proj + BiLSTM kernel ----------------------

def _encoder_kernel(xp_ref, wc_ref, bc_ref, wcat_ref, bcat_ref,
                    whhf_ref, whhb_ref, o_ref, gx_ref):
    """One batch tile per grid step.

    xp_ref  : (bt, Hp, Wp, Cin)   padded NHWC images                (f32)
    wc_ref  : (9, Cin, Cout)      conv weight per tap (dy,dx)       (bf16)
    bc_ref  : (1, Cout)           conv bias                         (f32)
    wcat_ref: (Cout, 8H)          [W_ih_f^T | W_ih_b^T]             (bf16)
    bcat_ref: (1, 8H)             [b_ih_f+b_hh_f | b_ih_b+b_hh_b]   (f32)
    whh*_ref: (H, 4H)             W_hh^T per direction              (bf16)
    o_ref   : (bt, T, 2H)         batch-first bidirectional output  (f32)
    gx_ref  : (bt, T, 8H)         VMEM scratch: precomputed gates   (f32)
    """
    bt, Hp, Wp, Cin = xp_ref.shape
    Hf, Wf = Hp - 2, Wp - 2
    T = Hf * Wf
    Cout = wc_ref.shape[2]
    H8 = wcat_ref.shape[1]
    H4 = H8 // 2
    H = H4 // 4

    # ---- phase 1: conv3x3 + ReLU + hoisted input projections -> gx scratch ----
    # Conv as 9 accumulated shifted matmuls (no lane-axis im2col concat).
    # NOTE: Cin=3 here is a toy stand-in; the real ResNet backbone feeds
    # C >= 128 so the K dim of these GEMMs is MXU-dense in production.
    wcat = wcat_ref[...]
    bcat = bcat_ref[...]
    bc = bc_ref[...]
    for b in range(bt):                                   # bt is small & static
        xb = xp_ref[b]                                    # (Hp, Wp, Cin)
        acc = jnp.zeros((T, Cout), jnp.float32)
        k = 0
        for dy in range(3):
            for dx in range(3):
                xs = xb[dy:dy + Hf, dx:dx + Wf, :].reshape(T, Cin)
                acc = acc + jnp.dot(xs.astype(jnp.bfloat16), wc_ref[k],
                                    preferred_element_type=jnp.float32)
                k += 1
        feat = jnp.maximum(acc + bc, 0.0).astype(jnp.bfloat16)   # (T, Cout)
        # One GEMM for both directions' input projections (bias folded in).
        gx_ref[b] = jnp.dot(feat, wcat,
                            preferred_element_type=jnp.float32) + bcat

    # ---- phase 2: fused bidirectional recurrence over VMEM-resident gates ----
    whh_f = whhf_ref[...]          # hoisted, loop-invariant (bf16)
    whh_b = whhb_ref[...]

    def cell(gates, c):            # PyTorch gate order i, f, g, o; f32 math
        i = jax.nn.sigmoid(gates[:, 0 * H:1 * H])
        f = jax.nn.sigmoid(gates[:, 1 * H:2 * H])
        g = jnp.tanh(gates[:, 2 * H:3 * H])
        o = jax.nn.sigmoid(gates[:, 3 * H:4 * H])
        c_new = f * c + i * g
        return o * jnp.tanh(c_new), c_new

    TS = _time_chunk(T)            # dense-store chunk (8 when T % 8 == 0)
    n_chunks = T // TS

    def chunk_body(ci, carry):
        h_f, c_f, h_b, c_b = carry
        t0 = pl.multiple_of(ci * TS, TS)                    # forward chunk start
        tb0 = pl.multiple_of((n_chunks - 1 - ci) * TS, TS)  # backward chunk start
        gxf_chunk = gx_ref[:, pl.ds(t0, TS), 0:H4]          # (bt, TS, 4H)
        gxb_chunk = gx_ref[:, pl.ds(tb0, TS), H4:H8]        # (bt, TS, 4H)
        hf_rows, hb_rows = [], []
        for s in range(TS):
            # TODO(synk): hold whh in MXU weight registers via
            # pltpu.matmul_push_rhs / matmul_acc_lhs / matmul_pop to avoid
            # re-pushing the loop-invariant RHS every step.
            g_f = gxf_chunk[:, s, :] + jnp.dot(
                h_f.astype(jnp.bfloat16), whh_f, preferred_element_type=jnp.float32)
            g_b = gxb_chunk[:, TS - 1 - s, :] + jnp.dot(
                h_b.astype(jnp.bfloat16), whh_b, preferred_element_type=jnp.float32)
            h_f, c_f = cell(g_f, c_f)
            h_b, c_b = cell(g_b, c_b)
            hf_rows.append(h_f)
            hb_rows.append(h_b)
        # Dense per-chunk slab stores straight into the batch-first layout:
        # forward half at rows [t0, t0+TS), backward half at rows [tb0, tb0+TS).
        o_ref[:, pl.ds(t0, TS), 0:H] = jnp.stack(hf_rows, axis=1)
        o_ref[:, pl.ds(tb0, TS), H:2 * H] = jnp.stack(hb_rows[::-1], axis=1)
        return h_f, c_f, h_b, c_b

    z = jnp.zeros((bt, H), jnp.float32)
    lax.fori_loop(0, n_chunks, chunk_body, (z, z, z, z))


# ------------------------------- Encoder forward ------------------------------

def encoder_forward(x_nchw, p, *, b_tile=None):
    """Mirrors Encoder.forward (use_stn=False): features -> view/permute -> BiLSTM."""
    B, Cin, Hi, Wi = x_nchw.shape
    Cout = p["conv_w"].shape[0]
    H = p["w_hh_f"].shape[1]
    H4, H8 = 4 * H, 8 * H
    Hf, Wf = Hi, Wi                       # 3x3 / stride-1 / pad-1 conv
    Hp, Wp = Hf + 2, Wf + 2
    T = Hf * Wf

    if b_tile is None:
        # Budget the per-step VMEM resident set for v7x (<= ~24 MiB).
        budget = 24 << 20
        b_tile = 1
        for cand in range(1, min(B, 8) + 1):
            if B % cand == 0 and _vmem_estimate(cand, Hp, Wp, Cin, T, Cout, H) <= budget:
                b_tile = cand
    assert B % b_tile == 0, (B, b_tile)

    # One-time layout plumbing outside the hot kernel.
    x_nhwc = jnp.transpose(x_nchw, (0, 2, 3, 1))
    xp = jnp.pad(x_nhwc, ((0, 0), (1, 1), (1, 1), (0, 0)))       # (B, Hp, Wp, Cin)

    # Conv weight per tap: (Cout, Cin, 3, 3) -> (3, 3, Cin, Cout) -> (9, Cin, Cout)
    wc = jnp.transpose(p["conv_w"], (2, 3, 1, 0)).reshape(9, Cin, Cout).astype(jnp.bfloat16)
    bc = p["conv_b"].reshape(1, Cout).astype(jnp.float32)
    # Both directions' input projections in one GEMM matrix.
    wcat = jnp.concatenate(
        [jnp.transpose(p["w_ih_f"]), jnp.transpose(p["w_ih_b"])], axis=1
    ).astype(jnp.bfloat16)                                        # (Cout, 8H)
    bcat = jnp.concatenate(
        [p["b_ih_f"] + p["b_hh_f"], p["b_ih_b"] + p["b_hh_b"]]
    ).reshape(1, H8).astype(jnp.float32)                          # PyTorch: b_ih + b_hh
    whhf = jnp.transpose(p["w_hh_f"]).astype(jnp.bfloat16)        # (H, 4H)
    whhb = jnp.transpose(p["w_hh_b"]).astype(jnp.bfloat16)

    vmem_limit = int(min(48 << 20,
                         max(16 << 20,
                             int(1.5 * _vmem_estimate(b_tile, Hp, Wp, Cin, T, Cout, H)))))

    cost = pl.CostEstimate(
        flops=int(2 * B * T * (9 * Cin * Cout) + 2 * B * T * Cout * H8
                  + 2 * B * T * 2 * H * H4),
        transcendentals=int(B * T * 2 * 5 * H),
        bytes_accessed=int(xp.size * 4 + B * T * 2 * H * 4
                           + (wc.size + wcat.size + whhf.size + whhb.size) * 2
                           + (bc.size + bcat.size) * 4),
    )

    out = pl.pallas_call(
        _encoder_kernel,
        out_shape=jax.ShapeDtypeStruct((B, T, 2 * H), jnp.float32),
        grid_spec=pltpu.PrefetchScalarGridSpec(
            num_scalar_prefetch=0,
            grid=(B // b_tile,),
            in_specs=[
                pl.BlockSpec((b_tile, Hp, Wp, Cin), lambda b: (b, 0, 0, 0)),
                pl.BlockSpec((9, Cin, Cout), lambda b: (0, 0, 0)),   # resident weights
                pl.BlockSpec((1, Cout), lambda b: (0, 0)),
                pl.BlockSpec((Cout, H8), lambda b: (0, 0)),
                pl.BlockSpec((1, H8), lambda b: (0, 0)),
                pl.BlockSpec((H, H4), lambda b: (0, 0)),
                pl.BlockSpec((H, H4), lambda b: (0, 0)),
            ],
            out_specs=pl.BlockSpec((b_tile, T, 2 * H), lambda b: (b, 0, 0)),
            scratch_shapes=[pltpu.VMEM((b_tile, T, H8), jnp.float32)],  # gate scratch
        ),
        compiler_params=pltpu.CompilerParams(
            dimension_semantics=("parallel",),     # batch tiles across TCs (v7x)
            vmem_limit_bytes=vmem_limit,
        ),
        cost_estimate=cost,
    )(xp, wc, bc, wcat, bcat, whhf, whhb)

    return out, None                               # (B, T, 2H), rectified=None


# --------------------------- pure-JAX reference check --------------------------

def _ref_forward(x_nchw, p):
    x_nhwc = jnp.transpose(x_nchw, (0, 2, 3, 1))
    feat = jax.lax.conv_general_dilated(
        x_nhwc, jnp.transpose(p["conv_w"], (2, 3, 1, 0)),
        window_strides=(1, 1), padding="SAME",
        dimension_numbers=("NHWC", "HWIO", "NHWC"))
    feat = jnp.maximum(feat + p["conv_b"], 0.0)
    B, Hf, Wf, C = feat.shape
    x_tbd = jnp.transpose(feat.reshape(B, Hf * Wf, C), (1, 0, 2))

    def run(x, w_ih, w_hh, b_ih, b_hh):
        H = w_hh.shape[1]
        def step(carry, x_t):
            h, c = carry
            gates = x_t @ w_ih.T + h @ w_hh.T + b_ih + b_hh
            i = jax.nn.sigmoid(gates[:, :H])
            f = jax.nn.sigmoid(gates[:, H:2 * H])
            g = jnp.tanh(gates[:, 2 * H:3 * H])
            o = jax.nn.sigmoid(gates[:, 3 * H:])
            c = f * c + i * g
            h = o * jnp.tanh(c)
            return (h, c), h
        Bn = x.shape[1]
        _, hs = jax.lax.scan(step, (jnp.zeros((Bn, H)), jnp.zeros((Bn, H))), x)
        return hs

    out_f = run(x_tbd, p["w_ih_f"], p["w_hh_f"], p["b_ih_f"], p["b_hh_f"])
    out_b = run(x_tbd[::-1], p["w_ih_b"], p["w_hh_b"],
                p["b_ih_b"], p["b_hh_b"])[::-1]
    return jnp.transpose(jnp.concatenate([out_f, out_b], -1), (1, 0, 2))


# ------------------------------ parameter init ---------------------------------

def init_params(key, cin=3, cfeat=32, hidden=32):
    ks = jax.random.split(key, 10)
    kc = (1.0 / (cin * 9)) ** 0.5
    kl = (1.0 / hidden) ** 0.5

    def u(k, shape, bound):
        return jax.random.uniform(k, shape, jnp.float32, -bound, bound)

    return dict(
        conv_w=u(ks[0], (cfeat, cin, 3, 3), kc),
        conv_b=u(ks[1], (cfeat,), kc),
        # forward-direction LSTM weights (gate order i, f, g, o like PyTorch)
        w_ih_f=u(ks[2], (4 * hidden, cfeat), kl),
        w_hh_f=u(ks[3], (4 * hidden, hidden), kl),
        b_ih_f=u(ks[4], (4 * hidden,), kl),
        b_hh_f=u(ks[5], (4 * hidden,), kl),
        # backward-direction LSTM weights
        w_ih_b=u(ks[6], (4 * hidden, cfeat), kl),
        w_hh_b=u(ks[7], (4 * hidden, hidden), kl),
        b_ih_b=u(ks[8], (4 * hidden,), kl),
        b_hh_b=u(ks[9], (4 * hidden,), kl),
    )


if __name__ == "__main__":
    key = jax.random.PRNGKey(0)
    kx, kp = jax.random.split(key)

    # small shapes: batch=4, in-channels=3, image 4x8 -> T=32, feat D=32, hidden=32
    x = jax.random.normal(kx, (4, 3, 4, 8), jnp.float32)
    params = init_params(kp, cin=3, cfeat=32, hidden=32)

    out, rectified = encoder_forward(x, params, b_tile=2)   # grid=(2,)
    out = jax.block_until_ready(out)

    ref = jax.block_until_ready(_ref_forward(x, params))
    assert out.shape == (4, 32, 64), out.shape
    assert rectified is None
    max_err = float(jnp.max(jnp.abs(out - ref)))
    # bf16 MXU operands (f32 accumulation) -> relaxed tolerance vs f32 reference.
    assert jnp.allclose(out, ref, atol=3e-2, rtol=3e-2), f"mismatch vs ref, max err {max_err}"

    print("KERNEL_OK")
</pallas_src>

<mosaic_0001>
module attributes {stable_mosaic.version = 11 : i64} {
  func.func @_encoder_kernel(%arg0: i32, %arg1: memref<2x6x10x3xf32, #tpu.memory_space<vmem>>, %arg2: memref<9x3x32xbf16, #tpu.memory_space<vmem>>, %arg3: memref<1x32xf32, #tpu.memory_space<vmem>>, %arg4: memref<32x256xbf16, #tpu.memory_space<vmem>>, %arg5: memref<1x256xf32, #tpu.memory_space<vmem>>, %arg6: memref<32x128xbf16, #tpu.memory_space<vmem>>, %arg7: memref<32x128xbf16, #tpu.memory_space<vmem>>, %arg8: memref<2x32x64xf32, #tpu.memory_space<vmem>>, %arg9: memref<2x32x256xf32, #tpu.memory_space<vmem>>) attributes {dimension_semantics = [#tpu.dimension_semantics<parallel>], iteration_bounds = array<i64: 2>, scalar_prefetch = 0 : i64, scratch_operands = 1 : i64, tpu.core_type = #tpu.core_type<tc>, window_params = [{transform_indices = @transform_0, window_bounds = array<i64: 2, 6, 10, 3>}, {pipeline_mode = #tpu.pipeline_mode<synchronous>, transform_indices = @transform_1, window_bounds = array<i64: 9, 3, 32>}, {pipeline_mode = #tpu.pipeline_mode<synchronous>, transform_indices = @transform_2, window_bounds = array<i64: 1, 32>}, {pipeline_mode = #tpu.pipeline_mode<synchronous>, transform_indices = @transform_3, window_bounds = array<i64: 32, 256>}, {pipeline_mode = #tpu.pipeline_mode<synchronous>, transform_indices = @transform_4, window_bounds = array<i64: 1, 256>}, {pipeline_mode = #tpu.pipeline_mode<synchronous>, transform_indices = @transform_5, window_bounds = array<i64: 32, 128>}, {pipeline_mode = #tpu.pipeline_mode<synchronous>, transform_indices = @transform_6, window_bounds = array<i64: 32, 128>}, {transform_indices = @transform_7, window_bounds = array<i64: 2, 32, 64>}]} {
    %c0 = arith.constant 0 : index
    %c0_0 = arith.constant 0 : index
    %0 = vector.load %arg4[%c0, %c0_0] : memref<32x256xbf16, #tpu.memory_space<vmem>>, vector<32x256xbf16>
    %c0_1 = arith.constant 0 : index
    %c0_2 = arith.constant 0 : index
    %1 = vector.load %arg5[%c0_1, %c0_2] : memref<1x256xf32, #tpu.memory_space<vmem>>, vector<1x256xf32>
    %c0_3 = arith.constant 0 : index
    %c0_4 = arith.constant 0 : index
    %2 = vector.load %arg3[%c0_3, %c0_4] : memref<1x32xf32, #tpu.memory_space<vmem>>, vector<1x32xf32>
    %c0_5 = arith.constant 0 : index
    %c0_6 = arith.constant 0 : index
    %c0_7 = arith.constant 0 : index
    %c0_8 = arith.constant 0 : index
    %3 = vector.load %arg1[%c0_5, %c0_6, %c0_7, %c0_8] : memref<2x6x10x3xf32, #tpu.memory_space<vmem>>, vector<1x6x10x3xf32>
    %4 = vector.shape_cast %3 : vector<1x6x10x3xf32> to vector<6x10x3xf32>
    %cst = arith.constant 0.000000e+00 : f32
    %5 = vector.broadcast %cst : f32 to vector<32x32xf32>
    %6 = vector.extract_strided_slice %4 {offsets = [0, 0, 0], sizes = [4, 8, 3], strides = [1, 1, 1]} : vector<6x10x3xf32> to vector<4x8x3xf32>
    %7 = vector.shape_cast %6 : vector<4x8x3xf32> to vector<32x3xf32>
    %8 = arith.truncf %7 : vector<32x3xf32> to vector<32x3xbf16>
    %c0_9 = arith.constant 0 : index
    %c0_10 = arith.constant 0 : index
    %c0_11 = arith.constant 0 : index
    %9 = vector.load %arg2[%c0_9, %c0_10, %c0_11] : memref<9x3x32xbf16, #tpu.memory_space<vmem>>, vector<1x3x32xbf16>
    %10 = vector.shape_cast %9 : vector<1x3x32xbf16> to vector<3x32xbf16>
    %cst_12 = arith.constant dense<0.000000e+00> : vector<32x32xf32>
    %11 = tpu.matmul %8, %10, %cst_12 {dimension_numbers = #tpu.dot_dimension_numbers<[1], [0], [0], [1], [0, 0, 1, 1], [], []>} : vector<32x3xbf16>, vector<3x32xbf16>, vector<32x32xf32> -> vector<32x32xf32>
    %12 = arith.addf %5, %11 : vector<32x32xf32>
    %13 = vector.extract_strided_slice %4 {offsets = [0, 1, 0], sizes = [4, 8, 3], strides = [1, 1, 1]} : vector<6x10x3xf32> to vector<4x8x3xf32>
    %14 = vector.shape_cast %13 : vector<4x8x3xf32> to vector<32x3xf32>
    %15 = arith.truncf %14 : vector<32x3xf32> to vector<32x3xbf16>
    %c1 = arith.constant 1 : index
    %c0_13 = arith.constant 0 : index
    %c0_14 = arith.constant 0 : index
    %16 = vector.load %arg2[%c1, %c0_13, %c0_14] : memref<9x3x32xbf16, #tpu.memory_space<vmem>>, vector<1x3x32xbf16>
    %17 = vector.shape_cast %16 : vector<1x3x32xbf16> to vector<3x32xbf16>
    %cst_15 = arith.constant dense<0.000000e+00> : vector<32x32xf32>
    %18 = tpu.matmul %15, %17, %cst_15 {dimension_numbers = #tpu.dot_dimension_numbers<[1], [0], [0], [1], [0, 0, 1, 1], [], []>} : vector<32x3xbf16>, vector<3x32xbf16>, vector<32x32xf32> -> vector<32x32xf32>
    %19 = arith.addf %12, %18 : vector<32x32xf32>
    %20 = vector.extract_strided_slice %4 {offsets = [0, 2, 0], sizes = [4, 8, 3], strides = [1, 1, 1]} : vector<6x10x3xf32> to vector<4x8x3xf32>
    %21 = vector.shape_cast %20 : vector<4x8x3xf32> to vector<32x3xf32>
    %22 = arith.truncf %21 : vector<32x3xf32> to vector<32x3xbf16>
    %c2 = arith.constant 2 : index
    %c0_16 = arith.constant 0 : index
    %c0_17 = arith.constant 0 : index
    %23 = vector.load %arg2[%c2, %c0_16, %c0_17] : memref<9x3x32xbf16, #tpu.memory_space<vmem>>, vector<1x3x32xbf16>
    %24 = vector.shape_cast %23 : vector<1x3x32xbf16> to vector<3x32xbf16>
    %cst_18 = arith.constant dense<0.000000e+00> : vector<32x32xf32>
    %25 = tpu.matmul %22, %24, %cst_18 {dimension_numbers = #tpu.dot_dimension_numbers<[1], [0], [0], [1], [0, 0, 1, 1], [], []>} : vector<32x3xbf16>, vector<3x32xbf16>, vector<32x32xf32> -> vector<32x32xf32>
    %26 = arith.addf %19, %25 : vector<32x32xf32>
    %27 = vector.extract_strided_slice %4 {offsets = [1, 0, 0], sizes = [4, 8, 3], strides = [1, 1, 1]} : vector<6x10x3xf32> to vector<4x8x3xf32>
    %28 = vector.shape_cast %27 : vector<4x8x3xf32> to vector<32x3xf32>
    %29 = arith.truncf %28 : vector<32x3xf32> to vector<32x3xbf16>
    %c3 = arith.constant 3 : index
    %c0_19 = arith.constant 0 : index
    %c0_20 = arith.constant 0 : index
    %30 = vector.load %arg2[%c3, %c0_19, %c0_20] : memref<9x3x32xbf16, #tpu.memory_space<vmem>>, vector<1x3x32xbf16>
    %31 = vector.shape_cast %30 : vector<1x3x32xbf16> to vector<3x32xbf16>
    %cst_21 = arith.constant dense<0.000000e+00> : vector<32x32xf32>
    %32 = tpu.matmul %29, %31, %cst_21 {dimension_numbers = #tpu.dot_dimension_numbers<[1], [0], [0], [1], [0, 0, 1, 1], [], []>} : vector<32x3xbf16>, vector<3x32xbf16>, vector<32x32xf32> -> vector<32x32xf32>
    %33 = arith.addf %26, %32 : vector<32x32xf32>
    %34 = vector.extract_strided_slice %4 {offsets = [1, 1, 0], sizes = [4, 8, 3], strides = [1, 1, 1]} : vector<6x10x3xf32> to vector<4x8x3xf32>
    %35 = vector.shape_cast %34 : vector<4x8x3xf32> to vector<32x3xf32>
    %36 = arith.truncf %35 : vector<32x3xf32> to vector<32x3xbf16>
    %c4 = arith.constant 4 : index
    %c0_22 = arith.constant 0 : index
    %c0_23 = arith.constant 0 : index
    %37 = vector.load %arg2[%c4, %c0_22, %c0_23] : memref<9x3x32xbf16, #tpu.memory_space<vmem>>, vector<1x3x32xbf16>
    %38 = vector.shape_cast %37 : vector<1x3x32xbf16> to vector<3x32xbf16>
    %cst_24 = arith.constant dense<0.000000e+00> : vector<32x32xf32>
    %39 = tpu.matmul %36, %38, %cst_24 {dimension_numbers = #tpu.dot_dimension_numbers<[1], [0], [0], [1], [0, 0, 1, 1], [], []>} : vector<32x3xbf16>, vector<3x32xbf16>, vector<32x32xf32> -> vector<32x32xf32>
    %40 = arith.addf %33, %39 : vector<32x32xf32>
    %41 = vector.extract_strided_slice %4 {offsets = [1, 2, 0], sizes = [4, 8, 3], strides = [1, 1, 1]} : vector<6x10x3xf32> to vector<4x8x3xf32>
    %42 = vector.shape_cast %41 : vector<4x8x3xf32> to vector<32x3xf32>
    %43 = arith.truncf %42 : vector<32x3xf32> to vector<32x3xbf16>
    %c5 = arith.constant 5 : index
    %c0_25 = arith.constant 0 : index
    %c0_26 = arith.constant 0 : index
    %44 = vector.load %arg2[%c5, %c0_25, %c0_26] : memref<9x3x32xbf16, #tpu.memory_space<vmem>>, vector<1x3x32xbf16>
    %45 = vector.shape_cast %44 : vector<1x3x32xbf16> to vector<3x32xbf16>
    %cst_27 = arith.constant dense<0.000000e+00> : vector<32x32xf32>
    %46 = tpu.matmul %43, %45, %cst_27 {dimension_numbers = #tpu.dot_dimension_numbers<[1], [0], [0], [1], [0, 0, 1, 1], [], []>} : vector<32x3xbf16>, vector<3x32xbf16>, vector<32x32xf32> -> vector<32x32xf32>
    %47 = arith.addf %40, %46 : vector<32x32xf32>
    %48 = vector.extract_strided_slice %4 {offsets = [2, 0, 0], sizes = [4, 8, 3], strides = [1, 1, 1]} : vector<6x10x3xf32> to vector<4x8x3xf32>
    %49 = vector.shape_cast %48 : vector<4x8x3xf32> to vector<32x3xf32>
    %50 = arith.truncf %49 : vector<32x3xf32> to vector<32x3xbf16>
    %c6 = arith.constant 6 : index
    %c0_28 = arith.constant 0 : index
    %c0_29 = arith.constant 0 : index
    %51 = vector.load %arg2[%c6, %c0_28, %c0_29] : memref<9x3x32xbf16, #tpu.memory_space<vmem>>, vector<1x3x32xbf16>
    %52 = vector.shape_cast %51 : vector<1x3x32xbf16> to vector<3x32xbf16>
    %cst_30 = arith.constant dense<0.000000e+00> : vector<32x32xf32>
    %53 = tpu.matmul %50, %52, %cst_30 {dimension_numbers = #tpu.dot_dimension_numbers<[1], [0], [0], [1], [0, 0, 1, 1], [], []>} : vector<32x3xbf16>, vector<3x32xbf16>, vector<32x32xf32> -> vector<32x32xf32>
    %54 = arith.addf %47, %53 : vector<32x32xf32>
    %55 = vector.extract_strided_slice %4 {offsets = [2, 1, 0], sizes = [4, 8, 3], strides = [1, 1, 1]} : vector<6x10x3xf32> to vector<4x8x3xf32>
    %56 = vector.shape_cast %55 : vector<4x8x3xf32> to vector<32x3xf32>
    %57 = arith.truncf %56 : vector<32x3xf32> to vector<32x3xbf16>
    %c7 = arith.constant 7 : index
    %c0_31 = arith.constant 0 : index
    %c0_32 = arith.constant 0 : index
    %58 = vector.load %arg2[%c7, %c0_31, %c0_32] : memref<9x3x32xbf16, #tpu.memory_space<vmem>>, vector<1x3x32xbf16>
    %59 = vector.shape_cast %58 : vector<1x3x32xbf16> to vector<3x32xbf16>
    %cst_33 = arith.constant dense<0.000000e+00> : vector<32x32xf32>
    %60 = tpu.matmul %57, %59, %cst_33 {dimension_numbers = #tpu.dot_dimension_numbers<[1], [0], [0], [1], [0, 0, 1, 1], [], []>} : vector<32x3xbf16>, vector<3x32xbf16>, vector<32x32xf32> -> vector<32x32xf32>
    %61 = arith.addf %54, %60 : vector<32x32xf32>
    %62 = vector.extract_strided_slice %4 {offsets = [2, 2, 0], sizes = [4, 8, 3], strides = [1, 1, 1]} : vector<6x10x3xf32> to vector<4x8x3xf32>
    %63 = vector.shape_cast %62 : vector<4x8x3xf32> to vector<32x3xf32>
    %64 = arith.truncf %63 : vector<32x3xf32> to vector<32x3xbf16>
    %c8 = arith.constant 8 : index
    %c0_34 = arith.constant 0 : index
    %c0_35 = arith.constant 0 : index
    %65 = vector.load %arg2[%c8, %c0_34, %c0_35] : memref<9x3x32xbf16, #tpu.memory_space<vmem>>, vector<1x3x32xbf16>
    %66 = vector.shape_cast %65 : vector<1x3x32xbf16> to vector<3x32xbf16>
    %cst_36 = arith.constant dense<0.000000e+00> : vector<32x32xf32>
    %67 = tpu.matmul %64, %66, %cst_36 {dimension_numbers = #tpu.dot_dimension_numbers<[1], [0], [0], [1], [0, 0, 1, 1], [], []>} : vector<32x3xbf16>, vector<3x32xbf16>, vector<32x32xf32> -> vector<32x32xf32>
    %68 = arith.addf %61, %67 : vector<32x32xf32>
    %69 = vector.broadcast %2 : vector<1x32xf32> to vector<32x32xf32>
    %70 = arith.addf %68, %69 : vector<32x32xf32>
    %cst_37 = arith.constant 0.000000e+00 : f32
    %71 = vector.broadcast %cst_37 : f32 to vector<32x32xf32>
    %72 = arith.maximumf %70, %71 : vector<32x32xf32>
    %73 = arith.truncf %72 : vector<32x32xf32> to vector<32x32xbf16>
    %cst_38 = arith.constant dense<0.000000e+00> : vector<32x256xf32>
    %74 = tpu.matmul %73, %0, %cst_38 {dimension_numbers = #tpu.dot_dimension_numbers<[1], [0], [0], [1], [0, 0, 1, 1], [], []>} : vector<32x32xbf16>, vector<32x256xbf16>, vector<32x256xf32> -> vector<32x256xf32>
    %75 = vector.broadcast %1 : vector<1x256xf32> to vector<32x256xf32>
    %76 = arith.addf %74, %75 : vector<32x256xf32>
    %c0_39 = arith.constant 0 : index
    %c0_40 = arith.constant 0 : index
    %c0_41 = arith.constant 0 : index
    %77 = vector.load %arg9[%c0_39, %c0_40, %c0_41] : memref<2x32x256xf32, #tpu.memory_space<vmem>>, vector<1x32x256xf32>
    %78 = vector.shape_cast %77 : vector<1x32x256xf32> to vector<32x256xf32>
    %79 = vector.shape_cast %76 : vector<32x256xf32> to vector<1x32x256xf32>
    tpu.vector_store %arg9[%c0_39, %c0_40, %c0_41], %79 {strides = array<i32>} : memref<2x32x256xf32, #tpu.memory_space<vmem>>, vector<1x32x256xf32>,
    %c1_42 = arith.constant 1 : index
    %c0_43 = arith.constant 0 : index
    %c0_44 = arith.constant 0 : index
    %c0_45 = arith.constant 0 : index
    %80 = vector.load %arg1[%c1_42, %c0_43, %c0_44, %c0_45] : memref<2x6x10x3xf32, #tpu.memory_space<vmem>>, vector<1x6x10x3xf32>
    %81 = vector.shape_cast %80 : vector<1x6x10x3xf32> to vector<6x10x3xf32>
    %cst_46 = arith.constant 0.000000e+00 : f32
    %82 = vector.broadcast %cst_46 : f32 to vector<32x32xf32>
    %83 = vector.extract_strided_slice %81 {offsets = [0, 0, 0], sizes = [4, 8, 3], strides = [1, 1, 1]} : vector<6x10x3xf32> to vector<4x8x3xf32>
    %84 = vector.shape_cast %83 : vector<4x8x3xf32> to vector<32x3xf32>
    %85 = arith.truncf %84 : vector<32x3xf32> to vector<32x3xbf16>
    %c0_47 = arith.constant 0 : index
    %c0_48 = arith.constant 0 : index
    %c0_49 = arith.constant 0 : index
    %86 = vector.load %arg2[%c0_47, %c0_48, %c0_49] : memref<9x3x32xbf16, #tpu.memory_space<vmem>>, vector<1x3x32xbf16>
    %87 = vector.shape_cast %86 : vector<1x3x32xbf16> to vector<3x32xbf16>
    %cst_50 = arith.constant dense<0.000000e+00> : vector<32x32xf32>
    %88 = tpu.matmul %85, %87, %cst_50 {dimension_numbers = #tpu.dot_dimension_numbers<[1], [0], [0], [1], [0, 0, 1, 1], [], []>} : vector<32x3xbf16>, vector<3x32xbf16>, vector<32x32xf32> -> vector<32x32xf32>
    %89 = arith.addf %82, %88 : vector<32x32xf32>
    %90 = vector.extract_strided_slice %81 {offsets = [0, 1, 0], sizes = [4, 8, 3], strides = [1, 1, 1]} : vector<6x10x3xf32> to vector<4x8x3xf32>
    %91 = vector.shape_cast %90 : vector<4x8x3xf32> to vector<32x3xf32>
    %92 = arith.truncf %91 : vector<32x3xf32> to vector<32x3xbf16>
    %c1_51 = arith.constant 1 : index
    %c0_52 = arith.constant 0 : index
    %c0_53 = arith.constant 0 : index
    %93 = vector.load %arg2[%c1_51, %c0_52, %c0_53] : memref<9x3x32xbf16, #tpu.memory_space<vmem>>, vector<1x3x32xbf16>
    %94 = vector.shape_cast %93 : vector<1x3x32xbf16> to vector<3x32xbf16>
    %cst_54 = arith.constant dense<0.000000e+00> : vector<32x32xf32>
    %95 = tpu.matmul %92, %94, %cst_54 {dimension_numbers = #tpu.dot_dimension_numbers<[1], [0], [0], [1], [0, 0, 1, 1], [], []>} : vector<32x3xbf16>, vector<3x32xbf16>, vector<32x32xf32> -> vector<32x32xf32>
    %96 = arith.addf %89, %95 : vector<32x32xf32>
    %97 = vector.extract_strided_slice %81 {offsets = [0, 2, 0], sizes = [4, 8, 3], strides = [1, 1, 1]} : vector<6x10x3xf32> to vector<4x8x3xf32>
    %98 = vector.shape_cast %97 : vector<4x8x3xf32> to vector<32x3xf32>
    %99 = arith.truncf %98 : vector<32x3xf32> to vector<32x3xbf16>
    %c2_55 = arith.constant 2 : index
    %c0_56 = arith.constant 0 : index
    %c0_57 = arith.constant 0 : index
    %100 = vector.load %arg2[%c2_55, %c0_56, %c0_57] : memref<9x3x32xbf16, #tpu.memory_space<vmem>>, vector<1x3x32xbf16>
    %101 = vector.shape_cast %100 : vector<1x3x32xbf16> to vector<3x32xbf16>
    %cst_58 = arith.constant dense<0.000000e+00> : vector<32x32xf32>
    %102 = tpu.matmul %99, %101, %cst_58 {dimension_numbers = #tpu.dot_dimension_numbers<[1], [0], [0], [1], [0, 0, 1, 1], [], []>} : vector<32x3xbf16>, vector<3x32xbf16>, vector<32x32xf32> -> vector<32x32xf32>
    %103 = arith.addf %96, %102 : vector<32x32xf32>
    %104 = vector.extract_strided_slice %81 {offsets = [1, 0, 0], sizes = [4, 8, 3], strides = [1, 1, 1]} : vector<6x10x3xf32> to vector<4x8x3xf32>
    %105 = vector.shape_cast %104 : vector<4x8x3xf32> to vector<32x3xf32>
    %106 = arith.truncf %105 : vector<32x3xf32> to vector<32x3xbf16>
    %c3_59 = arith.constant 3 : index
    %c0_60 = arith.constant 0 : index
    %c0_61 = arith.constant 0 : index
    %107 = vector.load %arg2[%c3_59, %c0_60, %c0_61] : memref<9x3x32xbf16, #tpu.memory_space<vmem>>, vector<1x3x32xbf16>
    %108 = vector.shape_cast %107 : vector<1x3x32xbf16> to vector<3x32xbf16>
    %cst_62 = arith.constant dense<0.000000e+00> : vector<32x32xf32>
    %109 = tpu.matmul %106, %108, %cst_62 {dimension_numbers = #tpu.dot_dimension_numbers<[1], [0], [0], [1], [0, 0, 1, 1], [], []>} : vector<32x3xbf16>, vector<3x32xbf16>, vector<32x32xf32> -> vector<32x32xf32>
    %110 = arith.addf %103, %109 : vector<32x32xf32>
    %111 = vector.extract_strided_slice %81 {offsets = [1, 1, 0], sizes = [4, 8, 3], strides = [1, 1, 1]} : vector<6x10x3xf32> to vector<4x8x3xf32>
    %112 = vector.shape_cast %111 : vector<4x8x3xf32> to vector<32x3xf32>
    %113 = arith.truncf %112 : vector<32x3xf32> to vector<32x3xbf16>
    %c4_63 = arith.constant 4 : index
    %c0_64 = arith.constant 0 : index
    %c0_65 = arith.constant 0 : index
    %114 = vector.load %arg2[%c4_63, %c0_64, %c0_65] : memref<9x3x32xbf16, #tpu.memory_space<vmem>>, vector<1x3x32xbf16>
    %115 = vector.shape_cast %114 : vector<1x3x32xbf16> to vector<3x32xbf16>
    %cst_66 = arith.constant dense<0.000000e+00> : vector<32x32xf32>
    %116 = tpu.matmul %113, %115, %cst_66 {dimension_numbers = #tpu.dot_dimension_numbers<[1], [0], [0], [1], [0, 0, 1, 1], [], []>} : vector<32x3xbf16>, vector<3x32xbf16>, vector<32x32xf32> -> vector<32x32xf32>
    %117 = arith.addf %110, %116 : vector<32x32xf32>
    %118 = vector.extract_strided_slice %81 {offsets = [1, 2, 0], sizes = [4, 8, 3], strides = [1, 1, 1]} : vector<6x10x3xf32> to vector<4x8x3xf32>
    %119 = vector.shape_cast %118 : vector<4x8x3xf32> to vector<32x3xf32>
    %120 = arith.truncf %119 : vector<32x3xf32> to vector<32x3xbf16>
    %c5_67 = arith.constant 5 : index
    %c0_68 = arith.constant 0 : index
    %c0_69 = arith.constant 0 : index
    %121 = vector.load %arg2[%c5_67, %c0_68, %c0_69] : memref<9x3x32xbf16, #tpu.memory_space<vmem>>, vector<1x3x32xbf16>
    %122 = vector.shape_cast %121 : vector<1x3x32xbf16> to vector<3x32xbf16>
    %cst_70 = arith.constant dense<0.000000e+00> : vector<32x32xf32>
    %123 = tpu.matmul %120, %122, %cst_70 {dimension_numbers = #tpu.dot_dimension_numbers<[1], [0], [0], [1], [0, 0, 1, 1], [], []>} : vector<32x3xbf16>, vector<3x32xbf16>, vector<32x32xf32> -> vector<32x32xf32>
    %124 = arith.addf %117, %123 : vector<32x32xf32>
    %125 = vector.extract_strided_slice %81 {offsets = [2, 0, 0], sizes = [4, 8, 3], strides = [1, 1, 1]} : vector<6x10x3xf32> to vector<4x8x3xf32>
    %126 = vector.shape_cast %125 : vector<4x8x3xf32> to vector<32x3xf32>
    %127 = arith.truncf %126 : vector<32x3xf32> to vector<32x3xbf16>
    %c6_71 = arith.constant 6 : index
    %c0_72 = arith.constant 0 : index
    %c0_73 = arith.constant 0 : index
    %128 = vector.load %arg2[%c6_71, %c0_72, %c0_73] : memref<9x3x32xbf16, #tpu.memory_space<vmem>>, vector<1x3x32xbf16>
    %129 = vector.shape_cast %128 : vector<1x3x32xbf16> to vector<3x32xbf16>
    %cst_74 = arith.constant dense<0.000000e+00> : vector<32x32xf32>
    %130 = tpu.matmul %127, %129, %cst_74 {dimension_numbers = #tpu.dot_dimension_numbers<[1], [0], [0], [1], [0, 0, 1, 1], [], []>} : vector<32x3xbf16>, vector<3x32xbf16>, vector<32x32xf32> -> vector<32x32xf32>
    %131 = arith.addf %124, %130 : vector<32x32xf32>
    %132 = vector.extract_strided_slice %81 {offsets = [2, 1, 0], sizes = [4, 8, 3], strides = [1, 1, 1]} : vector<6x10x3xf32> to vector<4x8x3xf32>
    %133 = vector.shape_cast %132 : vector<4x8x3xf32> to vector<32x3xf32>
    %134 = arith.truncf %133 : vector<32x3xf32> to vector<32x3xbf16>
    %c7_75 = arith.constant 7 : index
    %c0_76 = arith.constant 0 : index
    %c0_77 = arith.constant 0 : index
    %135 = vector.load %arg2[%c7_75, %c0_76, %c0_77] : memref<9x3x32xbf16, #tpu.memory_space<vmem>>, vector<1x3x32xbf16>
    %136 = vector.shape_cast %135 : vector<1x3x32xbf16> to vector<3x32xbf16>
    %cst_78 = arith.constant dense<0.000000e+00> : vector<32x32xf32>
    %137 = tpu.matmul %134, %136, %cst_78 {dimension_numbers = #tpu.dot_dimension_numbers<[1], [0], [0], [1], [0, 0, 1, 1], [], []>} : vector<32x3xbf16>, vector<3x32xbf16>, vector<32x32xf32> -> vector<32x32xf32>
    %138 = arith.addf %131, %137 : vector<32x32xf32>
    %139 = vector.extract_strided_slice %81 {offsets = [2, 2, 0], sizes = [4, 8, 3], strides = [1, 1, 1]} : vector<6x10x3xf32> to vector<4x8x3xf32>
    %140 = vector.shape_cast %139 : vector<4x8x3xf32> to vector<32x3xf32>
    %141 = arith.truncf %140 : vector<32x3xf32> to vector<32x3xbf16>
    %c8_79 = arith.constant 8 : index
    %c0_80 = arith.constant 0 : index
    %c0_81 = arith.constant 0 : index
    %142 = vector.load %arg2[%c8_79, %c0_80, %c0_81] : memref<9x3x32xbf16, #tpu.memory_space<vmem>>, vector<1x3x32xbf16>
    %143 = vector.shape_cast %142 : vector<1x3x32xbf16> to vector<3x32xbf16>
    %cst_82 = arith.constant dense<0.000000e+00> : vector<32x32xf32>
    %144 = tpu.matmul %141, %143, %cst_82 {dimension_numbers = #tpu.dot_dimension_numbers<[1], [0], [0], [1], [0, 0, 1, 1], [], []>} : vector<32x3xbf16>, vector<3x32xbf16>, vector<32x32xf32> -> vector<32x32xf32>
    %145 = arith.addf %138, %144 : vector<32x32xf32>
    %146 = vector.broadcast %2 : vector<1x32xf32> to vector<32x32xf32>
    %147 = arith.addf %145, %146 : vector<32x32xf32>
    %cst_83 = arith.constant 0.000000e+00 : f32
    %148 = vector.broadcast %cst_83 : f32 to vector<32x32xf32>
    %149 = arith.maximumf %147, %148 : vector<32x32xf32>
    %150 = arith.truncf %149 : vector<32x32xf32> to vector<32x32xbf16>
    %cst_84 = arith.constant dense<0.000000e+00> : vector<32x256xf32>
    %151 = tpu.matmul %150, %0, %cst_84 {dimension_numbers = #tpu.dot_dimension_numbers<[1], [0], [0], [1], [0, 0, 1, 1], [], []>} : vector<32x32xbf16>, vector<32x256xbf16>, vector<32x256xf32> -> vector<32x256xf32>
    %152 = vector.broadcast %1 : vector<1x256xf32> to vector<32x256xf32>
    %153 = arith.addf %151, %152 : vector<32x256xf32>
    %c1_85 = arith.constant 1 : index
    %c0_86 = arith.constant 0 : index
    %c0_87 = arith.constant 0 : index
    %154 = vector.load %arg9[%c1_85, %c0_86, %c0_87] : memref<2x32x256xf32, #tpu.memory_space<vmem>>, vector<1x32x256xf32>
    %155 = vector.shape_cast %154 : vector<1x32x256xf32> to vector<32x256xf32>
    %156 = vector.shape_cast %153 : vector<32x256xf32> to vector<1x32x256xf32>
    tpu.vector_store %arg9[%c1_85, %c0_86, %c0_87], %156 {strides = array<i32>} : memref<2x32x256xf32, #tpu.memory_space<vmem>>, vector<1x32x256xf32>,
    %c0_88 = arith.constant 0 : index
    %c0_89 = arith.constant 0 : index
    %157 = vector.load %arg6[%c0_88, %c0_89] : memref<32x128xbf16, #tpu.memory_space<vmem>>, vector<32x128xbf16>
    %c0_90 = arith.constant 0 : index
    %c0_91 = arith.constant 0 : index
    %158 = vector.load %arg7[%c0_90, %c0_91] : memref<32x128xbf16, #tpu.memory_space<vmem>>, vector<32x128xbf16>
    %cst_92 = arith.constant 0.000000e+00 : f32
    %159 = vector.broadcast %cst_92 : f32 to vector<2x32xf32>
    %c0_i32 = arith.constant 0 : i32
    %c4_i32 = arith.constant 4 : i32
    %160 = arith.addi %c0_i32, %c4_i32 : i32
    %c1_i32 = arith.constant 1 : i32
    %161:4 = scf.for %arg10 = %c0_i32 to %160 step %c1_i32 iter_args(%arg11 = %159, %arg12 = %159, %arg13 = %159, %arg14 = %159) -> (vector<2x32xf32>, vector<2x32xf32>, vector<2x32xf32>, vector<2x32xf32>)  : i32 {
      %c8_i32 = arith.constant 8 : i32
      %162 = arith.muli %arg10, %c8_i32 : i32
      %163 = tpu.assume_multiple %162, 8 : i32
      %c3_i32 = arith.constant 3 : i32
      %164 = arith.subi %c3_i32, %arg10 : i32
      %c8_i32_94 = arith.constant 8 : i32
      %165 = arith.muli %164, %c8_i32_94 : i32
      %166 = tpu.assume_multiple %165, 8 : i32
      %c0_95 = arith.constant 0 : index
      %167 = arith.index_cast %163 : i32 to index
      %c0_96 = arith.constant 0 : index
      %168 = vector.load %arg9[%c0_95, %167, %c0_96] : memref<2x32x256xf32, #tpu.memory_space<vmem>>, vector<2x8x128xf32>
      %c0_97 = arith.constant 0 : index
      %169 = arith.index_cast %166 : i32 to index
      %c128 = arith.constant 128 : index
      %170 = vector.load %arg9[%c0_97, %169, %c128] : memref<2x32x256xf32, #tpu.memory_space<vmem>>, vector<2x8x128xf32>
      %171 = vector.extract_strided_slice %168 {offsets = [0, 0, 0], sizes = [2, 1, 128], strides = [1, 1, 1]} : vector<2x8x128xf32> to vector<2x1x128xf32>
      %172 = vector.shape_cast %171 : vector<2x1x128xf32> to vector<2x128xf32>
      %173 = arith.truncf %arg11 : vector<2x32xf32> to vector<2x32xbf16>
      %cst_98 = arith.constant dense<0.000000e+00> : vector<2x128xf32>
      %174 = tpu.matmul %173, %157, %cst_98 {dimension_numbers = #tpu.dot_dimension_numbers<[1], [0], [0], [1], [0, 0, 1, 1], [], []>} : vector<2x32xbf16>, vector<32x128xbf16>, vector<2x128xf32> -> vector<2x128xf32>
      %175 = arith.addf %172, %174 : vector<2x128xf32>
      %176 = vector.extract_strided_slice %170 {offsets = [0, 7, 0], sizes = [2, 1, 128], strides = [1, 1, 1]} : vector<2x8x128xf32> to vector<2x1x128xf32>
      %177 = vector.shape_cast %176 : vector<2x1x128xf32> to vector<2x128xf32>
      %178 = arith.truncf %arg13 : vector<2x32xf32> to vector<2x32xbf16>
      %cst_99 = arith.constant dense<0.000000e+00> : vector<2x128xf32>
      %179 = tpu.matmul %178, %158, %cst_99 {dimension_numbers = #tpu.dot_dimension_numbers<[1], [0], [0], [1], [0, 0, 1, 1], [], []>} : vector<2x32xbf16>, vector<32x128xbf16>, vector<2x128xf32> -> vector<2x128xf32>
      %180 = arith.addf %177, %179 : vector<2x128xf32>
      %181 = vector.extract_strided_slice %175 {offsets = [0, 0], sizes = [2, 32], strides = [1, 1]} : vector<2x128xf32> to vector<2x32xf32>
      %182 = arith.negf %181 : vector<2x32xf32>
      %183 = math.exp %182 : vector<2x32xf32>
      %cst_100 = arith.constant 1.000000e+00 : f32
      %184 = vector.broadcast %cst_100 : f32 to vector<2x32xf32>
      %185 = arith.addf %184, %183 : vector<2x32xf32>
      %186 = arith.divf %184, %185 : vector<2x32xf32>
      %187 = vector.extract_strided_slice %175 {offsets = [0, 32], sizes = [2, 32], strides = [1, 1]} : vector<2x128xf32> to vector<2x32xf32>
      %188 = arith.negf %187 : vector<2x32xf32>
      %189 = math.exp %188 : vector<2x32xf32>
      %cst_101 = arith.constant 1.000000e+00 : f32
      %190 = vector.broadcast %cst_101 : f32 to vector<2x32xf32>
      %191 = arith.addf %190, %189 : vector<2x32xf32>
      %192 = arith.divf %190, %191 : vector<2x32xf32>
      %193 = vector.extract_strided_slice %175 {offsets = [0, 64], sizes = [2, 32], strides = [1, 1]} : vector<2x128xf32> to vector<2x32xf32>
      %194 = math.tanh %193 : vector<2x32xf32>
      %195 = vector.extract_strided_slice %175 {offsets = [0, 96], sizes = [2, 32], strides = [1, 1]} : vector<2x128xf32> to vector<2x32xf32>
      %196 = arith.negf %195 : vector<2x32xf32>
      %197 = math.exp %196 : vector<2x32xf32>
      %cst_102 = arith.constant 1.000000e+00 : f32
      %198 = vector.broadcast %cst_102 : f32 to vector<2x32xf32>
      %199 = arith.addf %198, %197 : vector<2x32xf32>
      %200 = arith.divf %198, %199 : vector<2x32xf32>
      %201 = arith.mulf %192, %arg12 : vector<2x32xf32>
      %202 = arith.mulf %186, %194 : vector<2x32xf32>
      %203 = arith.addf %201, %202 : vector<2x32xf32>
      %204 = math.tanh %203 : vector<2x32xf32>
      %205 = arith.mulf %200, %204 : vector<2x32xf32>
      %206 = vector.extract_strided_slice %180 {offsets = [0, 0], sizes = [2, 32], strides = [1, 1]} : vector<2x128xf32> to vector<2x32xf32>
      %207 = arith.negf %206 : vector<2x32xf32>
      %208 = math.exp %207 : vector<2x32xf32>
      %cst_103 = arith.constant 1.000000e+00 : f32
      %209 = vector.broadcast %cst_103 : f32 to vector<2x32xf32>
      %210 = arith.addf %209, %208 : vector<2x32xf32>
      %211 = arith.divf %209, %210 : vector<2x32xf32>
      %212 = vector.extract_strided_slice %180 {offsets = [0, 32], sizes = [2, 32], strides = [1, 1]} : vector<2x128xf32> to vector<2x32xf32>
      %213 = arith.negf %212 : vector<2x32xf32>
      %214 = math.exp %213 : vector<2x32xf32>
      %cst_104 = arith.constant 1.000000e+00 : f32
      %215 = vector.broadcast %cst_104 : f32 to vector<2x32xf32>
      %216 = arith.addf %215, %214 : vector<2x32xf32>
      %217 = arith.divf %215, %216 : vector<2x32xf32>
      %218 = vector.extract_strided_slice %180 {offsets = [0, 64], sizes = [2, 32], strides = [1, 1]} : vector<2x128xf32> to vector<2x32xf32>
      %219 = math.tanh %218 : vector<2x32xf32>
      %220 = vector.extract_strided_slice %180 {offsets = [0, 96], sizes = [2, 32], strides = [1, 1]} : vector<2x128xf32> to vector<2x32xf32>
      %221 = arith.negf %220 : vector<2x32xf32>
      %222 = math.exp %221 : vector<2x32xf32>
      %cst_105 = arith.constant 1.000000e+00 : f32
      %223 = vector.broadcast %cst_105 : f32 to vector<2x32xf32>
      %224 = arith.addf %223, %222 : vector<2x32xf32>
      %225 = arith.divf %223, %224 : vector<2x32xf32>
      %226 = arith.mulf %217, %arg14 : vector<2x32xf32>
      %227 = arith.mulf %211, %219 : vector<2x32xf32>
      %228 = arith.addf %226, %227 : vector<2x32xf32>
      %229 = math.tanh %228 : vector<2x32xf32>
      %230 = arith.mulf %225, %229 : vector<2x32xf32>
      %231 = vector.extract_strided_slice %168 {offsets = [0, 1, 0], sizes = [2, 1, 128], strides = [1, 1, 1]} : vector<2x8x128xf32> to vector<2x1x128xf32>
      %232 = vector.shape_cast %231 : vector<2x1x128xf32> to vector<2x128xf32>
      %233 = arith.truncf %205 : vector<2x32xf32> to vector<2x32xbf16>
      %cst_106 = arith.constant dense<0.000000e+00> : vector<2x128xf32>
      %234 = tpu.matmul %233, %157, %cst_106 {dimension_numbers = #tpu.dot_dimension_numbers<[1], [0], [0], [1], [0, 0, 1, 1], [], []>} : vector<2x32xbf16>, vector<32x128xbf16>, vector<2x128xf32> -> vector<2x128xf32>
      %235 = arith.addf %232, %234 : vector<2x128xf32>
      %236 = vector.extract_strided_slice %170 {offsets = [0, 6, 0], sizes = [2, 1, 128], strides = [1, 1, 1]} : vector<2x8x128xf32> to vector<2x1x128xf32>
      %237 = vector.shape_cast %236 : vector<2x1x128xf32> to vector<2x128xf32>
      %238 = arith.truncf %230 : vector<2x32xf32> to vector<2x32xbf16>
      %cst_107 = arith.constant dense<0.000000e+00> : vector<2x128xf32>
      %239 = tpu.matmul %238, %158, %cst_107 {dimension_numbers = #tpu.dot_dimension_numbers<[1], [0], [0], [1], [0, 0, 1, 1], [], []>} : vector<2x32xbf16>, vector<32x128xbf16>, vector<2x128xf32> -> vector<2x128xf32>
      %240 = arith.addf %237, %239 : vector<2x128xf32>
      %241 = vector.extract_strided_slice %235 {offsets = [0, 0], sizes = [2, 32], strides = [1, 1]} : vector<2x128xf32> to vector<2x32xf32>
      %242 = arith.negf %241 : vector<2x32xf32>
      %243 = math.exp %242 : vector<2x32xf32>
      %cst_108 = arith.constant 1.000000e+00 : f32
      %244 = vector.broadcast %cst_108 : f32 to vector<2x32xf32>
      %245 = arith.addf %244, %243 : vector<2x32xf32>
      %246 = arith.divf %244, %245 : vector<2x32xf32>
      %247 = vector.extract_strided_slice %235 {offsets = [0, 32], sizes = [2, 32], strides = [1, 1]} : vector<2x128xf32> to vector<2x32xf32>
      %248 = arith.negf %247 : vector<2x32xf32>
      %249 = math.exp %248 : vector<2x32xf32>
      %cst_109 = arith.constant 1.000000e+00 : f32
      %250 = vector.broadcast %cst_109 : f32 to vector<2x32xf32>
      %251 = arith.addf %250, %249 : vector<2x32xf32>
      %252 = arith.divf %250, %251 : vector<2x32xf32>
      %253 = vector.extract_strided_slice %235 {offsets = [0, 64], sizes = [2, 32], strides = [1, 1]} : vector<2x128xf32> to vector<2x32xf32>
      %254 = math.tanh %253 : vector<2x32xf32>
      %255 = vector.extract_strided_slice %235 {offsets = [0, 96], sizes = [2, 32], strides = [1, 1]} : vector<2x128xf32> to vector<2x32xf32>
      %256 = arith.negf %255 : vector<2x32xf32>
      %257 = math.exp %256 : vector<2x32xf32>
      %cst_110 = arith.constant 1.000000e+00 : f32
      %258 = vector.broadcast %cst_110 : f32 to vector<2x32xf32>
      %259 = arith.addf %258, %257 : vector<2x32xf32>
      %260 = arith.divf %258, %259 : vector<2x32xf32>
      %261 = arith.mulf %252, %203 : vector<2x32xf32>
      %262 = arith.mulf %246, %254 : vector<2x32xf32>
      %263 = arith.addf %261, %262 : vector<2x32xf32>
      %264 = math.tanh %263 : vector<2x32xf32>
      %265 = arith.mulf %260, %264 : vector<2x32xf32>
      %266 = vector.extract_strided_slice %240 {offsets = [0, 0], sizes = [2, 32], strides = [1, 1]} : vector<2x128xf32> to vector<2x32xf32>
      %267 = arith.negf %266 : vector<2x32xf32>
      %268 = math.exp %267 : vector<2x32xf32>
      %cst_111 = arith.constant 1.000000e+00 : f32
      %269 = vector.broadcast %cst_111 : f32 to vector<2x32xf32>
      %270 = arith.addf %269, %268 : vector<2x32xf32>
      %271 = arith.divf %269, %270 : vector<2x32xf32>
      %272 = vector.extract_strided_slice %240 {offsets = [0, 32], sizes = [2, 32], strides = [1, 1]} : vector<2x128xf32> to vector<2x32xf32>
      %273 = arith.negf %272 : vector<2x32xf32>
      %274 = math.exp %273 : vector<2x32xf32>
      %cst_112 = arith.constant 1.000000e+00 : f32
      %275 = vector.broadcast %cst_112 : f32 to vector<2x32xf32>
      %276 = arith.addf %275, %274 : vector<2x32xf32>
      %277 = arith.divf %275, %276 : vector<2x32xf32>
      %278 = vector.extract_strided_slice %240 {offsets = [0, 64], sizes = [2, 32], strides = [1, 1]} : vector<2x128xf32> to vector<2x32xf32>
      %279 = math.tanh %278 : vector<2x32xf32>
      %280 = vector.extract_strided_slice %240 {offsets = [0, 96], sizes = [2, 32], strides = [1, 1]} : vector<2x128xf32> to vector<2x32xf32>
      %281 = arith.negf %280 : vector<2x32xf32>
      %282 = math.exp %281 : vector<2x32xf32>
      %cst_113 = arith.constant 1.000000e+00 : f32
      %283 = vector.broadcast %cst_113 : f32 to vector<2x32xf32>
      %284 = arith.addf %283, %282 : vector<2x32xf32>
      %285 = arith.divf %283, %284 : vector<2x32xf32>
      %286 = arith.mulf %277, %228 : vector<2x32xf32>
      %287 = arith.mulf %271, %279 : vector<2x32xf32>
      %288 = arith.addf %286, %287 : vector<2x32xf32>
      %289 = math.tanh %288 : vector<2x32xf32>
      %290 = arith.mulf %285, %289 : vector<2x32xf32>
      %291 = vector.extract_strided_slice %168 {offsets = [0, 2, 0], sizes = [2, 1, 128], strides = [1, 1, 1]} : vector<2x8x128xf32> to vector<2x1x128xf32>
      %292 = vector.shape_cast %291 : vector<2x1x128xf32> to vector<2x128xf32>
      %293 = arith.truncf %265 : vector<2x32xf32> to vector<2x32xbf16>
      %cst_114 = arith.constant dense<0.000000e+00> : vector<2x128xf32>
      %294 = tpu.matmul %293, %157, %cst_114 {dimension_numbers = #tpu.dot_dimension_numbers<[1], [0], [0], [1], [0, 0, 1, 1], [], []>} : vector<2x32xbf16>, vector<32x128xbf16>, vector<2x128xf32> -> vector<2x128xf32>
      %295 = arith.addf %292, %294 : vector<2x128xf32>
      %296 = vector.extract_strided_slice %170 {offsets = [0, 5, 0], sizes = [2, 1, 128], strides = [1, 1, 1]} : vector<2x8x128xf32> to vector<2x1x128xf32>
      %297 = vector.shape_cast %296 : vector<2x1x128xf32> to vector<2x128xf32>
      %298 = arith.truncf %290 : vector<2x32xf32> to vector<2x32xbf16>
      %cst_115 = arith.constant dense<0.000000e+00> : vector<2x128xf32>
      %299 = tpu.matmul %298, %158, %cst_115 {dimension_numbers = #tpu.dot_dimension_numbers<[1], [0], [0], [1], [0, 0, 1, 1], [], []>} : vector<2x32xbf16>, vector<32x128xbf16>, vector<2x128xf32> -> vector<2x128xf32>
      %300 = arith.addf %297, %299 : vector<2x128xf32>
      %301 = vector.extract_strided_slice %295 {offsets = [0, 0], sizes = [2, 32], strides = [1, 1]} : vector<2x128xf32> to vector<2x32xf32>
      %302 = arith.negf %301 : vector<2x32xf32>
      %303 = math.exp %302 : vector<2x32xf32>
      %cst_116 = arith.constant 1.000000e+00 : f32
      %304 = vector.broadcast %cst_116 : f32 to vector<2x32xf32>
      %305 = arith.addf %304, %303 : vector<2x32xf32>
      %306 = arith.divf %304, %305 : vector<2x32xf32>
      %307 = vector.extract_strided_slice %295 {offsets = [0, 32], sizes = [2, 32], strides = [1, 1]} : vector<2x128xf32> to vector<2x32xf32>
      %308 = arith.negf %307 : vector<2x32xf32>
      %309 = math.exp %308 : vector<2x32xf32>
      %cst_117 = arith.constant 1.000000e+00 : f32
      %310 = vector.broadcast %cst_117 : f32 to vector<2x32xf32>
      %311 = arith.addf %310, %309 : vector<2x32xf32>
      %312 = arith.divf %310, %311 : vector<2x32xf32>
      %313 = vector.extract_strided_slice %295 {offsets = [0, 64], sizes = [2, 32], strides = [1, 1]} : vector<2x128xf32> to vector<2x32xf32>
      %314 = math.tanh %313 : vector<2x32xf32>
      %315 = vector.extract_strided_slice %295 {offsets = [0, 96], sizes = [2, 32], strides = [1, 1]} : vector<2x128xf32> to vector<2x32xf32>
      %316 = arith.negf %315 : vector<2x32xf32>
      %317 = math.exp %316 : vector<2x32xf32>
      %cst_118 = arith.constant 1.000000e+00 : f32
      %318 = vector.broadcast %cst_118 : f32 to vector<2x32xf32>
      %319 = arith.addf %318, %317 : vector<2x32xf32>
      %320 = arith.divf %318, %319 : vector<2x32xf32>
      %321 = arith.mulf %312, %263 : vector<2x32xf32>
      %322 = arith.mulf %306, %314 : vector<2x32xf32>
      %323 = arith.addf %321, %322 : vector<2x32xf32>
      %324 = math.tanh %323 : vector<2x32xf32>
      %325 = arith.mulf %320, %324 : vector<2x32xf32>
      %326 = vector.extract_strided_slice %300 {offsets = [0, 0], sizes = [2, 32], strides = [1, 1]} : vector<2x128xf32> to vector<2x32xf32>
      %327 = arith.negf %326 : vector<2x32xf32>
      %328 = math.exp %327 : vector<2x32xf32>
      %cst_119 = arith.constant 1.000000e+00 : f32
      %329 = vector.broadcast %cst_119 : f32 to vector<2x32xf32>
      %330 = arith.addf %329, %328 : vector<2x32xf32>
      %331 = arith.divf %329, %330 : vector<2x32xf32>
      %332 = vector.extract_strided_slice %300 {offsets = [0, 32], sizes = [2, 32], strides = [1, 1]} : vector<2x128xf32> to vector<2x32xf32>
      %333 = arith.negf %332 : vector<2x32xf32>
      %334 = math.exp %333 : vector<2x32xf32>
      %cst_120 = arith.constant 1.000000e+00 : f32
      %335 = vector.broadcast %cst_120 : f32 to vector<2x32xf32>
      %336 = arith.addf %335, %334 : vector<2x32xf32>
      %337 = arith.divf %335, %336 : vector<2x32xf32>
      %338 = vector.extract_strided_slice %300 {offsets = [0, 64], sizes = [2, 32], strides = [1, 1]} : vector<2x128xf32> to vector<2x32xf32>
      %339 = math.tanh %338 : vector<2x32xf32>
      %340 = vector.extract_strided_slice %300 {offsets = [0, 96], sizes = [2, 32], strides = [1, 1]} : vector<2x128xf32> to vector<2x32xf32>
      %341 = arith.negf %340 : vector<2x32xf32>
      %342 = math.exp %341 : vector<2x32xf32>
      %cst_121 = arith.constant 1.000000e+00 : f32
      %343 = vector.broadcast %cst_121 : f32 to vector<2x32xf32>
      %344 = arith.addf %343, %342 : vector<2x32xf32>
      %345 = arith.divf %343, %344 : vector<2x32xf32>
      %346 = arith.mulf %337, %288 : vector<2x32xf32>
      %347 = arith.mulf %331, %339 : vector<2x32xf32>
      %348 = arith.addf %346, %347 : vector<2x32xf32>
      %349 = math.tanh %348 : vector<2x32xf32>
      %350 = arith.mulf %345, %349 : vector<2x32xf32>
      %351 = vector.extract_strided_slice %168 {offsets = [0, 3, 0], sizes = [2, 1, 128], strides = [1, 1, 1]} : vector<2x8x128xf32> to vector<2x1x128xf32>
      %352 = vector.shape_cast %351 : vector<2x1x128xf32> to vector<2x128xf32>
      %353 = arith.truncf %325 : vector<2x32xf32> to vector<2x32xbf16>
      %cst_122 = arith.constant dense<0.000000e+00> : vector<2x128xf32>
      %354 = tpu.matmul %353, %157, %cst_122 {dimension_numbers = #tpu.dot_dimension_numbers<[1], [0], [0], [1], [0, 0, 1, 1], [], []>} : vector<2x32xbf16>, vector<32x128xbf16>, vector<2x128xf32> -> vector<2x128xf32>
      %355 = arith.addf %352, %354 : vector<2x128xf32>
      %356 = vector.extract_strided_slice %170 {offsets = [0, 4, 0], sizes = [2, 1, 128], strides = [1, 1, 1]} : vector<2x8x128xf32> to vector<2x1x128xf32>
      %357 = vector.shape_cast %356 : vector<2x1x128xf32> to vector<2x128xf32>
      %358 = arith.truncf %350 : vector<2x32xf32> to vector<2x32xbf16>
      %cst_123 = arith.constant dense<0.000000e+00> : vector<2x128xf32>
      %359 = tpu.matmul %358, %158, %cst_123 {dimension_numbers = #tpu.dot_dimension_numbers<[1], [0], [0], [1], [0, 0, 1, 1], [], []>} : vector<2x32xbf16>, vector<32x128xbf16>, vector<2x128xf32> -> vector<2x128xf32>
      %360 = arith.addf %357, %359 : vector<2x128xf32>
      %361 = vector.extract_strided_slice %355 {offsets = [0, 0], sizes = [2, 32], strides = [1, 1]} : vector<2x128xf32> to vector<2x32xf32>
      %362 = arith.negf %361 : vector<2x32xf32>
      %363 = math.exp %362 : vector<2x32xf32>
      %cst_124 = arith.constant 1.000000e+00 : f32
      %364 = vector.broadcast %cst_124 : f32 to vector<2x32xf32>
      %365 = arith.addf %364, %363 : vector<2x32xf32>
      %366 = arith.divf %364, %365 : vector<2x32xf32>
      %367 = vector.extract_strided_slice %355 {offsets = [0, 32], sizes = [2, 32], strides = [1, 1]} : vector<2x128xf32> to vector<2x32xf32>
      %368 = arith.negf %367 : vector<2x32xf32>
      %369 = math.exp %368 : vector<2x32xf32>
      %cst_125 = arith.constant 1.000000e+00 : f32
      %370 = vector.broadcast %cst_125 : f32 to vector<2x32xf32>
      %371 = arith.addf %370, %369 : vector<2x32xf32>
      %372 = arith.divf %370, %371 : vector<2x32xf32>
      %373 = vector.extract_strided_slice %355 {offsets = [0, 64], sizes = [2, 32], strides = [1, 1]} : vector<2x128xf32> to vector<2x32xf32>
      %374 = math.tanh %373 : vector<2x32xf32>
      %375 = vector.extract_strided_slice %355 {offsets = [0, 96], sizes = [2, 32], strides = [1, 1]} : vector<2x128xf32> to vector<2x32xf32>
      %376 = arith.negf %375 : vector<2x32xf32>
      %377 = math.exp %376 : vector<2x32xf32>
      %cst_126 = arith.constant 1.000000e+00 : f32
      %378 = vector.broadcast %cst_126 : f32 to vector<2x32xf32>
      %379 = arith.addf %378, %377 : vector<2x32xf32>
      %380 = arith.divf %378, %379 : vector<2x32xf32>
      %381 = arith.mulf %372, %323 : vector<2x32xf32>
      %382 = arith.mulf %366, %374 : vector<2x32xf32>
      %383 = arith.addf %381, %382 : vector<2x32xf32>
      %384 = math.tanh %383 : vector<2x32xf32>
      %385 = arith.mulf %380, %384 : vector<2x32xf32>
      %386 = vector.extract_strided_slice %360 {offsets = [0, 0], sizes = [2, 32], strides = [1, 1]} : vector<2x128xf32> to vector<2x32xf32>
      %387 = arith.negf %386 : vector<2x32xf32>
      %388 = math.exp %387 : vector<2x32xf32>
      %cst_127 = arith.constant 1.000000e+00 : f32
      %389 = vector.broadcast %cst_127 : f32 to vector<2x32xf32>
      %390 = arith.addf %389, %388 : vector<2x32xf32>
      %391 = arith.divf %389, %390 : vector<2x32xf32>
      %392 = vector.extract_strided_slice %360 {offsets = [0, 32], sizes = [2, 32], strides = [1, 1]} : vector<2x128xf32> to vector<2x32xf32>
      %393 = arith.negf %392 : vector<2x32xf32>
      %394 = math.exp %393 : vector<2x32xf32>
      %cst_128 = arith.constant 1.000000e+00 : f32
      %395 = vector.broadcast %cst_128 : f32 to vector<2x32xf32>
      %396 = arith.addf %395, %394 : vector<2x32xf32>
      %397 = arith.divf %395, %396 : vector<2x32xf32>
      %398 = vector.extract_strided_slice %360 {offsets = [0, 64], sizes = [2, 32], strides = [1, 1]} : vector<2x128xf32> to vector<2x32xf32>
      %399 = math.tanh %398 : vector<2x32xf32>
      %400 = vector.extract_strided_slice %360 {offsets = [0, 96], sizes = [2, 32], strides = [1, 1]} : vector<2x128xf32> to vector<2x32xf32>
      %401 = arith.negf %400 : vector<2x32xf32>
      %402 = math.exp %401 : vector<2x32xf32>
      %cst_129 = arith.constant 1.000000e+00 : f32
      %403 = vector.broadcast %cst_129 : f32 to vector<2x32xf32>
      %404 = arith.addf %403, %402 : vector<2x32xf32>
      %405 = arith.divf %403, %404 : vector<2x32xf32>
      %406 = arith.mulf %397, %348 : vector<2x32xf32>
      %407 = arith.mulf %391, %399 : vector<2x32xf32>
      %408 = arith.addf %406, %407 : vector<2x32xf32>
      %409 = math.tanh %408 : vector<2x32xf32>
      %410 = arith.mulf %405, %409 : vector<2x32xf32>
      %411 = vector.extract_strided_slice %168 {offsets = [0, 4, 0], sizes = [2, 1, 128], strides = [1, 1, 1]} : vector<2x8x128xf32> to vector<2x1x128xf32>
      %412 = vector.shape_cast %411 : vector<2x1x128xf32> to vector<2x128xf32>
      %413 = arith.truncf %385 : vector<2x32xf32> to vector<2x32xbf16>
      %cst_130 = arith.constant dense<0.000000e+00> : vector<2x128xf32>
      %414 = tpu.matmul %413, %157, %cst_130 {dimension_numbers = #tpu.dot_dimension_numbers<[1], [0], [0], [1], [0, 0, 1, 1], [], []>} : vector<2x32xbf16>, vector<32x128xbf16>, vector<2x128xf32> -> vector<2x128xf32>
      %415 = arith.addf %412, %414 : vector<2x128xf32>
      %416 = vector.extract_strided_slice %170 {offsets = [0, 3, 0], sizes = [2, 1, 128], strides = [1, 1, 1]} : vector<2x8x128xf32> to vector<2x1x128xf32>
      %417 = vector.shape_cast %416 : vector<2x1x128xf32> to vector<2x128xf32>
      %418 = arith.truncf %410 : vector<2x32xf32> to vector<2x32xbf16>
      %cst_131 = arith.constant dense<0.000000e+00> : vector<2x128xf32>
      %419 = tpu.matmul %418, %158, %cst_131 {dimension_numbers = #tpu.dot_dimension_numbers<[1], [0], [0], [1], [0, 0, 1, 1], [], []>} : vector<2x32xbf16>, vector<32x128xbf16>, vector<2x128xf32> -> vector<2x128xf32>
      %420 = arith.addf %417, %419 : vector<2x128xf32>
      %421 = vector.extract_strided_slice %415 {offsets = [0, 0], sizes = [2, 32], strides = [1, 1]} : vector<2x128xf32> to vector<2x32xf32>
      %422 = arith.negf %421 : vector<2x32xf32>
      %423 = math.exp %422 : vector<2x32xf32>
      %cst_132 = arith.constant 1.000000e+00 : f32
      %424 = vector.broadcast %cst_132 : f32 to vector<2x32xf32>
      %425 = arith.addf %424, %423 : vector<2x32xf32>
      %426 = arith.divf %424, %425 : vector<2x32xf32>
      %427 = vector.extract_strided_slice %415 {offsets = [0, 32], sizes = [2, 32], strides = [1, 1]} : vector<2x128xf32> to vector<2x32xf32>
      %428 = arith.negf %427 : vector<2x32xf32>
      %429 = math.exp %428 : vector<2x32xf32>
      %cst_133 = arith.constant 1.000000e+00 : f32
      %430 = vector.broadcast %cst_133 : f32 to vector<2x32xf32>
      %431 = arith.addf %430, %429 : vector<2x32xf32>
      %432 = arith.divf %430, %431 : vector<2x32xf32>
      %433 = vector.extract_strided_slice %415 {offsets = [0, 64], sizes = [2, 32], strides = [1, 1]} : vector<2x128xf32> to vector<2x32xf32>
      %434 = math.tanh %433 : vector<2x32xf32>
      %435 = vector.extract_strided_slice %415 {offsets = [0, 96], sizes = [2, 32], strides = [1, 1]} : vector<2x128xf32> to vector<2x32xf32>
      %436 = arith.negf %435 : vector<2x32xf32>
      %437 = math.exp %436 : vector<2x32xf32>
      %cst_134 = arith.constant 1.000000e+00 : f32
      %438 = vector.broadcast %cst_134 : f32 to vector<2x32xf32>
      %439 = arith.addf %438, %437 : vector<2x32xf32>
      %440 = arith.divf %438, %439 : vector<2x32xf32>
      %441 = arith.mulf %432, %383 : vector<2x32xf32>
      %442 = arith.mulf %426, %434 : vector<2x32xf32>
      %443 = arith.addf %441, %442 : vector<2x32xf32>
      %444 = math.tanh %443 : vector<2x32xf32>
      %445 = arith.mulf %440, %444 : vector<2x32xf32>
      %446 = vector.extract_strided_slice %420 {offsets = [0, 0], sizes = [2, 32], strides = [1, 1]} : vector<2x128xf32> to vector<2x32xf32>
      %447 = arith.negf %446 : vector<2x32xf32>
      %448 = math.exp %447 : vector<2x32xf32>
      %cst_135 = arith.constant 1.000000e+00 : f32
      %449 = vector.broadcast %cst_135 : f32 to vector<2x32xf32>
      %450 = arith.addf %449, %448 : vector<2x32xf32>
      %451 = arith.divf %449, %450 : vector<2x32xf32>
      %452 = vector.extract_strided_slice %420 {offsets = [0, 32], sizes = [2, 32], strides = [1, 1]} : vector<2x128xf32> to vector<2x32xf32>
      %453 = arith.negf %452 : vector<2x32xf32>
      %454 = math.exp %453 : vector<2x32xf32>
      %cst_136 = arith.constant 1.000000e+00 : f32
      %455 = vector.broadcast %cst_136 : f32 to vector<2x32xf32>
      %456 = arith.addf %455, %454 : vector<2x32xf32>
      %457 = arith.divf %455, %456 : vector<2x32xf32>
      %458 = vector.extract_strided_slice %420 {offsets = [0, 64], sizes = [2, 32], strides = [1, 1]} : vector<2x128xf32> to vector<2x32xf32>
      %459 = math.tanh %458 : vector<2x32xf32>
      %460 = vector.extract_strided_slice %420 {offsets = [0, 96], sizes = [2, 32], strides = [1, 1]} : vector<2x128xf32> to vector<2x32xf32>
      %461 = arith.negf %460 : vector<2x32xf32>
      %462 = math.exp %461 : vector<2x32xf32>
      %cst_137 = arith.constant 1.000000e+00 : f32
      %463 = vector.broadcast %cst_137 : f32 to vector<2x32xf32>
      %464 = arith.addf %463, %462 : vector<2x32xf32>
      %465 = arith.divf %463, %464 : vector<2x32xf32>
      %466 = arith.mulf %457, %408 : vector<2x32xf32>
      %467 = arith.mulf %451, %459 : vector<2x32xf32>
      %468 = arith.addf %466, %467 : vector<2x32xf32>
      %469 = math.tanh %468 : vector<2x32xf32>
      %470 = arith.mulf %465, %469 : vector<2x32xf32>
      %471 = vector.extract_strided_slice %168 {offsets = [0, 5, 0], sizes = [2, 1, 128], strides = [1, 1, 1]} : vector<2x8x128xf32> to vector<2x1x128xf32>
      %472 = vector.shape_cast %471 : vector<2x1x128xf32> to vector<2x128xf32>
      %473 = arith.truncf %445 : vector<2x32xf32> to vector<2x32xbf16>
      %cst_138 = arith.constant dense<0.000000e+00> : vector<2x128xf32>
      %474 = tpu.matmul %473, %157, %cst_138 {dimension_numbers = #tpu.dot_dimension_numbers<[1], [0], [0], [1], [0, 0, 1, 1], [], []>} : vector<2x32xbf16>, vector<32x128xbf16>, vector<2x128xf32> -> vector<2x128xf32>
      %475 = arith.addf %472, %474 : vector<2x128xf32>
      %476 = vector.extract_strided_slice %170 {offsets = [0, 2, 0], sizes = [2, 1, 128], strides = [1, 1, 1]} : vector<2x8x128xf32> to vector<2x1x128xf32>
      %477 = vector.shape_cast %476 : vector<2x1x128xf32> to vector<2x128xf32>
      %478 = arith.truncf %470 : vector<2x32xf32> to vector<2x32xbf16>
      %cst_139 = arith.constant dense<0.000000e+00> : vector<2x128xf32>
      %479 = tpu.matmul %478, %158, %cst_139 {dimension_numbers = #tpu.dot_dimension_numbers<[1], [0], [0], [1], [0, 0, 1, 1], [], []>} : vector<2x32xbf16>, vector<32x128xbf16>, vector<2x128xf32> -> vector<2x128xf32>
      %480 = arith.addf %477, %479 : vector<2x128xf32>
      %481 = vector.extract_strided_slice %475 {offsets = [0, 0], sizes = [2, 32], strides = [1, 1]} : vector<2x128xf32> to vector<2x32xf32>
      %482 = arith.negf %481 : vector<2x32xf32>
      %483 = math.exp %482 : vector<2x32xf32>
      %cst_140 = arith.constant 1.000000e+00 : f32
      %484 = vector.broadcast %cst_140 : f32 to vector<2x32xf32>
      %485 = arith.addf %484, %483 : vector<2x32xf32>
      %486 = arith.divf %484, %485 : vector<2x32xf32>
      %487 = vector.extract_strided_slice %475 {offsets = [0, 32], sizes = [2, 32], strides = [1, 1]} : vector<2x128xf32> to vector<2x32xf32>
      %488 = arith.negf %487 : vector<2x32xf32>
      %489 = math.exp %488 : vector<2x32xf32>
      %cst_141 = arith.constant 1.000000e+00 : f32
      %490 = vector.broadcast %cst_141 : f32 to vector<2x32xf32>
      %491 = arith.addf %490, %489 : vector<2x32xf32>
      %492 = arith.divf %490, %491 : vector<2x32xf32>
      %493 = vector.extract_strided_slice %475 {offsets = [0, 64], sizes = [2, 32], strides = [1, 1]} : vector<2x128xf32> to vector<2x32xf32>
      %494 = math.tanh %493 : vector<2x32xf32>
      %495 = vector.extract_strided_slice %475 {offsets = [0, 96], sizes = [2, 32], strides = [1, 1]} : vector<2x128xf32> to vector<2x32xf32>
      %496 = arith.negf %495 : vector<2x32xf32>
      %497 = math.exp %496 : vector<2x32xf32>
      %cst_142 = arith.constant 1.000000e+00 : f32
      %498 = vector.broadcast %cst_142 : f32 to vector<2x32xf32>
      %499 = arith.addf %498, %497 : vector<2x32xf32>
      %500 = arith.divf %498, %499 : vector<2x32xf32>
      %501 = arith.mulf %492, %443 : vector<2x32xf32>
      %502 = arith.mulf %486, %494 : vector<2x32xf32>
      %503 = arith.addf %501, %502 : vector<2x32xf32>
      %504 = math.tanh %503 : vector<2x32xf32>
      %505 = arith.mulf %500, %504 : vector<2x32xf32>
      %506 = vector.extract_strided_slice %480 {offsets = [0, 0], sizes = [2, 32], strides = [1, 1]} : vector<2x128xf32> to vector<2x32xf32>
      %507 = arith.negf %506 : vector<2x32xf32>
      %508 = math.exp %507 : vector<2x32xf32>
      %cst_143 = arith.constant 1.000000e+00 : f32
      %509 = vector.broadcast %cst_143 : f32 to vector<2x32xf32>
      %510 = arith.addf %509, %508 : vector<2x32xf32>
      %511 = arith.divf %509, %510 : vector<2x32xf32>
      %512 = vector.extract_strided_slice %480 {offsets = [0, 32], sizes = [2, 32], strides = [1, 1]} : vector<2x128xf32> to vector<2x32xf32>
      %513 = arith.negf %512 : vector<2x32xf32>
      %514 = math.exp %513 : vector<2x32xf32>
      %cst_144 = arith.constant 1.000000e+00 : f32
      %515 = vector.broadcast %cst_144 : f32 to vector<2x32xf32>
      %516 = arith.addf %515, %514 : vector<2x32xf32>
      %517 = arith.divf %515, %516 : vector<2x32xf32>
      %518 = vector.extract_strided_slice %480 {offsets = [0, 64], sizes = [2, 32], strides = [1, 1]} : vector<2x128xf32> to vector<2x32xf32>
      %519 = math.tanh %518 : vector<2x32xf32>
      %520 = vector.extract_strided_slice %480 {offsets = [0, 96], sizes = [2, 32], strides = [1, 1]} : vector<2x128xf32> to vector<2x32xf32>
      %521 = arith.negf %520 : vector<2x32xf32>
      %522 = math.exp %521 : vector<2x32xf32>
      %cst_145 = arith.constant 1.000000e+00 : f32
      %523 = vector.broadcast %cst_145 : f32 to vector<2x32xf32>
      %524 = arith.addf %523, %522 : vector<2x32xf32>
      %525 = arith.divf %523, %524 : vector<2x32xf32>
      %526 = arith.mulf %517, %468 : vector<2x32xf32>
      %527 = arith.mulf %511, %519 : vector<2x32xf32>
      %528 = arith.addf %526, %527 : vector<2x32xf32>
      %529 = math.tanh %528 : vector<2x32xf32>
      %530 = arith.mulf %525, %529 : vector<2x32xf32>
      %531 = vector.extract_strided_slice %168 {offsets = [0, 6, 0], sizes = [2, 1, 128], strides = [1, 1, 1]} : vector<2x8x128xf32> to vector<2x1x128xf32>
      %532 = vector.shape_cast %531 : vector<2x1x128xf32> to vector<2x128xf32>
      %533 = arith.truncf %505 : vector<2x32xf32> to vector<2x32xbf16>
      %cst_146 = arith.constant dense<0.000000e+00> : vector<2x128xf32>
      %534 = tpu.matmul %533, %157, %cst_146 {dimension_numbers = #tpu.dot_dimension_numbers<[1], [0], [0], [1], [0, 0, 1, 1], [], []>} : vector<2x32xbf16>, vector<32x128xbf16>, vector<2x128xf32> -> vector<2x128xf32>
      %535 = arith.addf %532, %534 : vector<2x128xf32>
      %536 = vector.extract_strided_slice %170 {offsets = [0, 1, 0], sizes = [2, 1, 128], strides = [1, 1, 1]} : vector<2x8x128xf32> to vector<2x1x128xf32>
      %537 = vector.shape_cast %536 : vector<2x1x128xf32> to vector<2x128xf32>
      %538 = arith.truncf %530 : vector<2x32xf32> to vector<2x32xbf16>
      %cst_147 = arith.constant dense<0.000000e+00> : vector<2x128xf32>
      %539 = tpu.matmul %538, %158, %cst_147 {dimension_numbers = #tpu.dot_dimension_numbers<[1], [0], [0], [1], [0, 0, 1, 1], [], []>} : vector<2x32xbf16>, vector<32x128xbf16>, vector<2x128xf32> -> vector<2x128xf32>
      %540 = arith.addf %537, %539 : vector<2x128xf32>
      %541 = vector.extract_strided_slice %535 {offsets = [0, 0], sizes = [2, 32], strides = [1, 1]} : vector<2x128xf32> to vector<2x32xf32>
      %542 = arith.negf %541 : vector<2x32xf32>
      %543 = math.exp %542 : vector<2x32xf32>
      %cst_148 = arith.constant 1.000000e+00 : f32
      %544 = vector.broadcast %cst_148 : f32 to vector<2x32xf32>
      %545 = arith.addf %544, %543 : vector<2x32xf32>
      %546 = arith.divf %544, %545 : vector<2x32xf32>
      %547 = vector.extract_strided_slice %535 {offsets = [0, 32], sizes = [2, 32], strides = [1, 1]} : vector<2x128xf32> to vector<2x32xf32>
      %548 = arith.negf %547 : vector<2x32xf32>
      %549 = math.exp %548 : vector<2x32xf32>
      %cst_149 = arith.constant 1.000000e+00 : f32
      %550 = vector.broadcast %cst_149 : f32 to vector<2x32xf32>
      %551 = arith.addf %550, %549 : vector<2x32xf32>
      %552 = arith.divf %550, %551 : vector<2x32xf32>
      %553 = vector.extract_strided_slice %535 {offsets = [0, 64], sizes = [2, 32], strides = [1, 1]} : vector<2x128xf32> to vector<2x32xf32>
      %554 = math.tanh %553 : vector<2x32xf32>
      %555 = vector.extract_strided_slice %535 {offsets = [0, 96], sizes = [2, 32], strides = [1, 1]} : vector<2x128xf32> to vector<2x32xf32>
      %556 = arith.negf %555 : vector<2x32xf32>
      %557 = math.exp %556 : vector<2x32xf32>
      %cst_150 = arith.constant 1.000000e+00 : f32
      %558 = vector.broadcast %cst_150 : f32 to vector<2x32xf32>
      %559 = arith.addf %558, %557 : vector<2x32xf32>
      %560 = arith.divf %558, %559 : vector<2x32xf32>
      %561 = arith.mulf %552, %503 : vector<2x32xf32>
      %562 = arith.mulf %546, %554 : vector<2x32xf32>
      %563 = arith.addf %561, %562 : vector<2x32xf32>
      %564 = math.tanh %563 : vector<2x32xf32>
      %565 = arith.mulf %560, %564 : vector<2x32xf32>
      %566 = vector.extract_strided_slice %540 {offsets = [0, 0], sizes = [2, 32], strides = [1, 1]} : vector<2x128xf32> to vector<2x32xf32>
      %567 = arith.negf %566 : vector<2x32xf32>
      %568 = math.exp %567 : vector<2x32xf32>
      %cst_151 = arith.constant 1.000000e+00 : f32
      %569 = vector.broadcast %cst_151 : f32 to vector<2x32xf32>
      %570 = arith.addf %569, %568 : vector<2x32xf32>
      %571 = arith.divf %569, %570 : vector<2x32xf32>
      %572 = vector.extract_strided_slice %540 {offsets = [0, 32], sizes = [2, 32], strides = [1, 1]} : vector<2x128xf32> to vector<2x32xf32>
      %573 = arith.negf %572 : vector<2x32xf32>
      %574 = math.exp %573 : vector<2x32xf32>
      %cst_152 = arith.constant 1.000000e+00 : f32
      %575 = vector.broadcast %cst_152 : f32 to vector<2x32xf32>
      %576 = arith.addf %575, %574 : vector<2x32xf32>
      %577 = arith.divf %575, %576 : vector<2x32xf32>
      %578 = vector.extract_strided_slice %540 {offsets = [0, 64], sizes = [2, 32], strides = [1, 1]} : vector<2x128xf32> to vector<2x32xf32>
      %579 = math.tanh %578 : vector<2x32xf32>
      %580 = vector.extract_strided_slice %540 {offsets = [0, 96], sizes = [2, 32], strides = [1, 1]} : vector<2x128xf32> to vector<2x32xf32>
      %581 = arith.negf %580 : vector<2x32xf32>
      %582 = math.exp %581 : vector<2x32xf32>
      %cst_153 = arith.constant 1.000000e+00 : f32
      %583 = vector.broadcast %cst_153 : f32 to vector<2x32xf32>
      %584 = arith.addf %583, %582 : vector<2x32xf32>
      %585 = arith.divf %583, %584 : vector<2x32xf32>
      %586 = arith.mulf %577, %528 : vector<2x32xf32>
      %587 = arith.mulf %571, %579 : vector<2x32xf32>
      %588 = arith.addf %586, %587 : vector<2x32xf32>
      %589 = math.tanh %588 : vector<2x32xf32>
      %590 = arith.mulf %585, %589 : vector<2x32xf32>
      %591 = vector.extract_strided_slice %168 {offsets = [0, 7, 0], sizes = [2, 1, 128], strides = [1, 1, 1]} : vector<2x8x128xf32> to vector<2x1x128xf32>
      %592 = vector.shape_cast %591 : vector<2x1x128xf32> to vector<2x128xf32>
      %593 = arith.truncf %565 : vector<2x32xf32> to vector<2x32xbf16>
      %cst_154 = arith.constant dense<0.000000e+00> : vector<2x128xf32>
      %594 = tpu.matmul %593, %157, %cst_154 {dimension_numbers = #tpu.dot_dimension_numbers<[1], [0], [0], [1], [0, 0, 1, 1], [], []>} : vector<2x32xbf16>, vector<32x128xbf16>, vector<2x128xf32> -> vector<2x128xf32>
      %595 = arith.addf %592, %594 : vector<2x128xf32>
      %596 = vector.extract_strided_slice %170 {offsets = [0, 0, 0], sizes = [2, 1, 128], strides = [1, 1, 1]} : vector<2x8x128xf32> to vector<2x1x128xf32>
      %597 = vector.shape_cast %596 : vector<2x1x128xf32> to vector<2x128xf32>
      %598 = arith.truncf %590 : vector<2x32xf32> to vector<2x32xbf16>
      %cst_155 = arith.constant dense<0.000000e+00> : vector<2x128xf32>
      %599 = tpu.matmul %598, %158, %cst_155 {dimension_numbers = #tpu.dot_dimension_numbers<[1], [0], [0], [1], [0, 0, 1, 1], [], []>} : vector<2x32xbf16>, vector<32x128xbf16>, vector<2x128xf32> -> vector<2x128xf32>
      %600 = arith.addf %597, %599 : vector<2x128xf32>
      %601 = vector.extract_strided_slice %595 {offsets = [0, 0], sizes = [2, 32], strides = [1, 1]} : vector<2x128xf32> to vector<2x32xf32>
      %602 = arith.negf %601 : vector<2x32xf32>
      %603 = math.exp %602 : vector<2x32xf32>
      %cst_156 = arith.constant 1.000000e+00 : f32
      %604 = vector.broadcast %cst_156 : f32 to vector<2x32xf32>
      %605 = arith.addf %604, %603 : vector<2x32xf32>
      %606 = arith.divf %604, %605 : vector<2x32xf32>
      %607 = vector.extract_strided_slice %595 {offsets = [0, 32], sizes = [2, 32], strides = [1, 1]} : vector<2x128xf32> to vector<2x32xf32>
      %608 = arith.negf %607 : vector<2x32xf32>
      %609 = math.exp %608 : vector<2x32xf32>
      %cst_157 = arith.constant 1.000000e+00 : f32
      %610 = vector.broadcast %cst_157 : f32 to vector<2x32xf32>
      %611 = arith.addf %610, %609 : vector<2x32xf32>
      %612 = arith.divf %610, %611 : vector<2x32xf32>
      %613 = vector.extract_strided_slice %595 {offsets = [0, 64], sizes = [2, 32], strides = [1, 1]} : vector<2x128xf32> to vector<2x32xf32>
      %614 = math.tanh %613 : vector<2x32xf32>
      %615 = vector.extract_strided_slice %595 {offsets = [0, 96], sizes = [2, 32], strides = [1, 1]} : vector<2x128xf32> to vector<2x32xf32>
      %616 = arith.negf %615 : vector<2x32xf32>
      %617 = math.exp %616 : vector<2x32xf32>
      %cst_158 = arith.constant 1.000000e+00 : f32
      %618 = vector.broadcast %cst_158 : f32 to vector<2x32xf32>
      %619 = arith.addf %618, %617 : vector<2x32xf32>
      %620 = arith.divf %618, %619 : vector<2x32xf32>
      %621 = arith.mulf %612, %563 : vector<2x32xf32>
      %622 = arith.mulf %606, %614 : vector<2x32xf32>
      %623 = arith.addf %621, %622 : vector<2x32xf32>
      %624 = math.tanh %623 : vector<2x32xf32>
      %625 = arith.mulf %620, %624 : vector<2x32xf32>
      %626 = vector.extract_strided_slice %600 {offsets = [0, 0], sizes = [2, 32], strides = [1, 1]} : vector<2x128xf32> to vector<2x32xf32>
      %627 = arith.negf %626 : vector<2x32xf32>
      %628 = math.exp %627 : vector<2x32xf32>
      %cst_159 = arith.constant 1.000000e+00 : f32
      %629 = vector.broadcast %cst_159 : f32 to vector<2x32xf32>
      %630 = arith.addf %629, %628 : vector<2x32xf32>
      %631 = arith.divf %629, %630 : vector<2x32xf32>
      %632 = vector.extract_strided_slice %600 {offsets = [0, 32], sizes = [2, 32], strides = [1, 1]} : vector<2x128xf32> to vector<2x32xf32>
      %633 = arith.negf %632 : vector<2x32xf32>
      %634 = math.exp %633 : vector<2x32xf32>
      %cst_160 = arith.constant 1.000000e+00 : f32
      %635 = vector.broadcast %cst_160 : f32 to vector<2x32xf32>
      %636 = arith.addf %635, %634 : vector<2x32xf32>
      %637 = arith.divf %635, %636 : vector<2x32xf32>
      %638 = vector.extract_strided_slice %600 {offsets = [0, 64], sizes = [2, 32], strides = [1, 1]} : vector<2x128xf32> to vector<2x32xf32>
      %639 = math.tanh %638 : vector<2x32xf32>
      %640 = vector.extract_strided_slice %600 {offsets = [0, 96], sizes = [2, 32], strides = [1, 1]} : vector<2x128xf32> to vector<2x32xf32>
      %641 = arith.negf %640 : vector<2x32xf32>
      %642 = math.exp %641 : vector<2x32xf32>
      %cst_161 = arith.constant 1.000000e+00 : f32
      %643 = vector.broadcast %cst_161 : f32 to vector<2x32xf32>
      %644 = arith.addf %643, %642 : vector<2x32xf32>
      %645 = arith.divf %643, %644 : vector<2x32xf32>
      %646 = arith.mulf %637, %588 : vector<2x32xf32>
      %647 = arith.mulf %631, %639 : vector<2x32xf32>
      %648 = arith.addf %646, %647 : vector<2x32xf32>
      %649 = math.tanh %648 : vector<2x32xf32>
      %650 = arith.mulf %645, %649 : vector<2x32xf32>
      %651 = vector.shape_cast %205 : vector<2x32xf32> to vector<2x1x32xf32>
      %652 = vector.shape_cast %265 : vector<2x32xf32> to vector<2x1x32xf32>
      %653 = vector.shape_cast %325 : vector<2x32xf32> to vector<2x1x32xf32>
      %654 = vector.shape_cast %385 : vector<2x32xf32> to vector<2x1x32xf32>
      %655 = vector.shape_cast %445 : vector<2x32xf32> to vector<2x1x32xf32>
      %656 = vector.shape_cast %505 : vector<2x32xf32> to vector<2x1x32xf32>
      %657 = vector.shape_cast %565 : vector<2x32xf32> to vector<2x1x32xf32>
      %658 = vector.shape_cast %625 : vector<2x32xf32> to vector<2x1x32xf32>
      %659 = tpu.concatenate %651, %652, %653, %654, %655, %656, %657, %658 in 1 : vector<2x1x32xf32>, vector<2x1x32xf32>, vector<2x1x32xf32>, vector<2x1x32xf32>, vector<2x1x32xf32>, vector<2x1x32xf32>, vector<2x1x32xf32>, vector<2x1x32xf32> -> vector<2x8x32xf32>
      %c0_162 = arith.constant 0 : index
      %660 = arith.index_cast %163 : i32 to index
      %c0_163 = arith.constant 0 : index
      %661 = vector.load %arg8[%c0_162, %660, %c0_163] : memref<2x32x64xf32, #tpu.memory_space<vmem>>, vector<2x8x32xf32>
      tpu.vector_store %arg8[%c0_162, %660, %c0_163], %659 {strides = array<i32>} : memref<2x32x64xf32, #tpu.memory_space<vmem>>, vector<2x8x32xf32>,
      %662 = vector.shape_cast %650 : vector<2x32xf32> to vector<2x1x32xf32>
      %663 = vector.shape_cast %590 : vector<2x32xf32> to vector<2x1x32xf32>
      %664 = vector.shape_cast %530 : vector<2x32xf32> to vector<2x1x32xf32>
      %665 = vector.shape_cast %470 : vector<2x32xf32> to vector<2x1x32xf32>
      %666 = vector.shape_cast %410 : vector<2x32xf32> to vector<2x1x32xf32>
      %667 = vector.shape_cast %350 : vector<2x32xf32> to vector<2x1x32xf32>
      %668 = vector.shape_cast %290 : vector<2x32xf32> to vector<2x1x32xf32>
      %669 = vector.shape_cast %230 : vector<2x32xf32> to vector<2x1x32xf32>
      %670 = tpu.concatenate %662, %663, %664, %665, %666, %667, %668, %669 in 1 : vector<2x1x32xf32>, vector<2x1x32xf32>, vector<2x1x32xf32>, vector<2x1x32xf32>, vector<2x1x32xf32>, vector<2x1x32xf32>, vector<2x1x32xf32>, vector<2x1x32xf32> -> vector<2x8x32xf32>
      %c0_164 = arith.constant 0 : index
      %671 = arith.index_cast %166 : i32 to index
      %c32 = arith.constant 32 : index
      %672 = vector.load %arg8[%c0_164, %671, %c32] : memref<2x32x64xf32, #tpu.memory_space<vmem>>, vector<2x8x32xf32>
      tpu.vector_store %arg8[%c0_164, %671, %c32], %670 {strides = array<i32>} : memref<2x32x64xf32, #tpu.memory_space<vmem>>, vector<2x8x32xf32>,
      scf.yield %625, %623, %650, %648 : vector<2x32xf32>, vector<2x32xf32>, vector<2x32xf32>, vector<2x32xf32>
    }
    %c4_i32_93 = arith.constant 4 : i32
    return
  }
  func.func @transform_0(%arg0: i32) -> (i32, i32, i32, i32) {
    %c0_i32 = arith.constant 0 : i32
    %c0_i32_0 = arith.constant 0 : i32
    %c0_i32_1 = arith.constant 0 : i32
    %c0_i32_2 = arith.constant 0 : i32
    return %arg0, %c0_i32, %c0_i32_0, %c0_i32_1 : i32, i32, i32, i32
  }
  func.func @transform_1(%arg0: i32) -> (i32, i32, i32) {
    %c0_i32 = arith.constant 0 : i32
    %c0_i32_0 = arith.constant 0 : i32
    %c0_i32_1 = arith.constant 0 : i32
    %c0_i32_2 = arith.constant 0 : i32
    return %c0_i32, %c0_i32_0, %c0_i32_1 : i32, i32, i32
  }
  func.func @transform_2(%arg0: i32) -> (i32, i32) {
    %c0_i32 = arith.constant 0 : i32
    %c0_i32_0 = arith.constant 0 : i32
    %c0_i32_1 = arith.constant 0 : i32
    return %c0_i32, %c0_i32_0 : i32, i32
  }
  func.func @transform_3(%arg0: i32) -> (i32, i32) {
    %c0_i32 = arith.constant 0 : i32
    %c0_i32_0 = arith.constant 0 : i32
    %c0_i32_1 = arith.constant 0 : i32
    return %c0_i32, %c0_i32_0 : i32, i32
  }
  func.func @transform_4(%arg0: i32) -> (i32, i32) {
    %c0_i32 = arith.constant 0 : i32
    %c0_i32_0 = arith.constant 0 : i32
    %c0_i32_1 = arith.constant 0 : i32
    return %c0_i32, %c0_i32_0 : i32, i32
  }
  func.func @transform_5(%arg0: i32) -> (i32, i32) {
    %c0_i32 = arith.constant 0 : i32
    %c0_i32_0 = arith.constant 0 : i32
    %c0_i32_1 = arith.constant 0 : i32
    return %c0_i32, %c0_i32_0 : i32, i32
  }
  func.func @transform_6(%arg0: i32) -> (i32, i32) {
    %c0_i32 = arith.constant 0 : i32
    %c0_i32_0 = arith.constant 0 : i32
    %c0_i32_1 = arith.constant 0 : i32
    return %c0_i32, %c0_i32_0 : i32, i32
  }
  func.func @transform_7(%arg0: i32) -> (i32, i32, i32) {
    %c0_i32 = arith.constant 0 : i32
    %c0_i32_0 = arith.constant 0 : i32
    %c0_i32_1 = arith.constant 0 : i32
    return %arg0, %c0_i32, %c0_i32_0 : i32, i32, i32
  }
}

</mosaic_0001>

<bundles_post_ra>
// kernel: tpu_custom_call.1
= control target key start
LH: loop header
LB: loop body
LE: loop exit
PB: predicated region body
PF: predicated region fallthrough
CT: control target
= control target key end

     0   :  { %12 = vsyncpa [#allocation4], 0  ;;  %s6016_s0 = inlined_call_operand.vmem [shape: f32[4,6,10,3], index: 0, kind: input, shape index: {}]   ;;  %s6017_s1 = inlined_call_operand.vmem [shape: bf16[9,3,32], index: 1, kind: input, shape index: {}]   ;;  %s6018_s2 = inlined_call_operand.vmem [shape: f32[1,32], index: 2, kind: input, shape index: {}]   ;;  %s6019_s3 = inlined_call_operand.vmem [shape: bf16[32,256], index: 3, kind: input, shape index: {}]   ;;  %s6020_s4 = inlined_call_operand.vmem [shape: f32[1,256], index: 4, kind: input, shape index: {}]   ;;  %s6021_s5 = inlined_call_operand.vmem [shape: bf16[32,128], index: 5, kind: input, shape index: {}]   ;;  %s6022_s6 = inlined_call_operand.vmem [shape: bf16[32,128], index: 6, kind: input, shape index: {}]   ;;  %s6023_s7 = inlined_call_operand.hbm [shape: f32[4,32,64], index: 7, kind: output, shape index: {}]  }
   0x1   :  { %14 = vsyncpa [#allocation4 + $0x1], 0  ;;  %s4974_s24 = smov 0   ;;  %s4976_s25 = smov 0  }
   0x2   :  { %s4978_s26 = smov 0   ;;  %s4980_s27 = smov 0  }
   0x3 LB: > { %s4995_s28 = sadd.s32 4294967295, %s4887_s27   ;;  %s3853_s29 = sadd.s32 4294967294, %s4887_s27   ;;  %s4887_s27 = sphi %s4980_s27, %s6032_s27   ;;  %s4883_s26 = sphi %s4978_s26, %s6031_s26   ;;  %s4879_s25 = sphi %s4976_s25, %s6030_s25   ;;  %s4875_s24 = sphi %s4974_s24, %s6029_s24  }
   0x4   : > { %s4999_s30 = sadd.s32 1, %s4887_s27   ;;  %s179_s8 = sadd.s32 1, %s4883_s26 }
   0x5   : > { %s176_s9 = ssub.s32 %s4887_s27, %s4999_s30  ;;  %p189_p0 = scmp.ne.s32.totalorder %s4883_s26, %s4879_s25 }
   0x6   : > { %p177_p1 = scmp.eq.s32.totalorder %s176_s9, 0  ;;  %p190_p2 = scmp.eq.s32.totalorder %s4995_s28, 1 }
   0x7   : > { %p195_p3 = scmp.ne.s32.totalorder %s4879_s25, %s4875_s24  ;;  %p196_p4 = scmp.eq.s32.totalorder %s3853_s29, 1 }
   0x8   : > { %s5010_s10 = scalar_select %p177_p1, %s4883_s26, %s179_s8  }
   0x9   : > { %p5012_p5 = por %p190_p2, %p189_p0  ;;  %p5016_p6 = por %p196_p4, %p195_p3 }
   0xa   : > { %p3856_p7 = scmp.ge.s32.totalorder %s4887_s27, 1  ;;  %p242_p8 = scmp.lt.s32.totalorder %s4887_s27, 3 }
   0xc   : > { %p243_p9 = pnand %p3856_p7, %p242_p8 }
   0xd   : > { %s272_s13 = sand.u32 (!%p243_p9), 1, %s4879_s25   ;;  %v3860_v0 = vld [vmem:[%s6017_s1 + $0x2] sm:$0x3] (!%p243_p9)  ;;  %vm341_vm0 = vcmask (!%p243_p9), 1040384   ;;  %vm342_vm1 = vcmask (!%p243_p9), 1041408   ;;  %v4925_v1 = vmov (!%p243_p9), 65535  }
   0xe   : > { %246 = sbr.rel (%p243_p9) target bundleno = 6763 (0x1a6b), region = 48  ;;  %s5028_s16 = sshll.u32 (!%p243_p9), %s272_s13, 6  ;;  %v343_v2 = vsel (!%p243_p9), %vm341_vm0, 4294967295, %v4925_v1  ;;  %v304_v4 = vld [vmem:[%s6017_s1] sm:$0x3] (!%p243_p9)  ;;  %vm313_vm2 = vcmask (!%p243_p9), 1046528  }
   0xf   : > { %s3858_s17 = sshll.u32 (!%p243_p9), %s4995_s28, 1  ;;  %v5033_v3 = vsel (!%p243_p9), %vm342_vm1, %v343_v2, 0  ;;  %vm334_vm3 = vcmask (!%p243_p9), 23552   ;;  %v3865_v25 = vld [vmem:[%s6017_s1 + $0x4] sm:$0x3] (!%p243_p9)  ;;  %vm455_vm4 = vcmask (!%p243_p9), 1045504  }
  0x10   : > { %p276_p10 = scmp.lt.s32.totalorder (!%p243_p9), %s3858_s17, 3  ;;  %v346_v5 = vand.u32 (!%p243_p9), %v3860_v0, %v5033_v3  ;;  %v404_v6 = vand.u32 (!%p243_p9), %v5033_v3, %v304_v4  ;;  %v483_v31 = vand.u32 (!%p243_p9), %v3865_v25, %v5033_v3  ;;  %v3868_v38 = vld [vmem:[%s6017_s1 + $0x6] sm:$0x3] (!%p243_p9)  ;;  %v3871_v48 = vld [vmem:[%s6017_s1 + $0x8] sm:$0x3] (!%p243_p9)  ;;  %vm989_vm5 = vcmask (!%p243_p9), 261120  }
  0x11   : > { %v549_v41 = vand.u32 (!%p243_p9), %v3868_v38, %v5033_v3  ;;  %v621_v51 = vand.u32 (!%p243_p9), %v3871_v48, %v5033_v3  ;;  %v3874_v53 = vld [vmem:[%s6017_s1 + $0xa] sm:$0x3] (!%p243_p9)  ;;  %v3877_v61 = vld [vmem:[%s6017_s1 + $0xc] sm:$0x3] (!%p243_p9)  ;;  %v3905_v25 = vld [vmem:[%s6017_s1 + $0x2] sm:$0x3] (!%p243_p9) }
  0x12   : > { %4103 = vmatprep.subr.bf16.mxu0 (!%p243_p9), %v346_v5  ;;  %v691_v57 = vand.u32 (!%p243_p9), %v3874_v53, %v5033_v3  ;;  %v753_v0 = vand.u32 (!%p243_p9), %v3877_v61, %v5033_v3  ;;  %s5304_s14 = scalar_lea.vmem (!%p243_p9), [#allocation3], %s5028_s16  ;;  %s5322_s15 = smov (!%p243_p9), 0  }
  0x13   : > { %4104 = vmatpush3.bf16.msra.mxu0 (!%p243_p9), %v346_v5  ;;  %v3880_v5 = vld [vmem:[%s6017_s1 + $0xe] sm:$0x3] (!%p243_p9) }
  0x14   : > { %4109 = vmatprep.subr.bf16.mxu0 (!%p243_p9), %v404_v6 }
  0x15   : > { %s6034_s17 = smov (!%p276_p10, %s3858_s17), 3 }
  0x16   : > { %s4403_s20 = smul.u32 96, %s6034_s17 }
  0x18   : > { %s5043_s23 = scalar_lea.vmem %s6016_s0, %s4403_s20 }
  0x19   : > { %v290_v7 = vld [vmem:[%s5043_s23] sm:$0xff]  ;;  %v291_v8 = vld [vmem:[%s5043_s23 + $0x8] sm:$0x3]  ;;  %v292_v9 = vld [vmem:[%s5043_s23 + $0x10] sm:$0xff] }
  0x1a   : > { %v293_v10 = vld [vmem:[%s5043_s23 + $0x18] sm:$0x3]  ;;  %v294_v11 = vld [vmem:[%s5043_s23 + $0x20] sm:$0xff]  ;;  %v295_v12 = vld [vmem:[%s5043_s23 + $0x28] sm:$0x3]  ;;  %v314_v13 = vrot.slane %v290_v7, 1  ;;  %v302_v29 = vpack.c.bf16 %v292_v9, %v290_v7 }
  0x1b   : > { %v296_v14 = vld [vmem:[%s5043_s23 + $0x30] sm:$0xff]  ;;  %v297_v15 = vld [vmem:[%s5043_s23 + $0x38] sm:$0x3]  ;;  %v315_v16 = vrot.slane %v291_v8, 1  ;;  %v317_v17 = vrot.slane %v292_v9, 1  ;;  %v318_v18 = vrot.slane %v293_v10, 1  ;;  %v538_v50 = vpack.c.bf16 %v294_v11, %v292_v9 }
  0x1c   : > { %v320_v20 = vrot.slane %v294_v11, 1  ;;  %v321_v21 = vrot.slane %v295_v12, 1  ;;  %v323_v22 = vrot.slane %v296_v14, 1  ;;  %v324_v24 = vrot.slane %v297_v15, 1  ;;  %v298_v52 = vld [vmem:[%s5043_s23 + $0x40] sm:$0xff] }
  0x1d   : > { %v316_v19 = vsel %vm313_vm2, %v314_v13, %v315_v16  ;;  %v319_v23 = vsel %vm313_vm2, %v317_v17, %v318_v18  ;;  %v456_v32 = vrot.slane %v290_v7, 2  ;;  %v457_v33 = vrot.slane %v291_v8, 2  ;;  %v299_v56 = vld [vmem:[%s5043_s23 + $0x48] sm:$0x3]  ;;  %v300_v8 = vld [vmem:[%s5043_s23 + $0x50] sm:$0xff]  ;;  %v3897_v53 = vld [vmem:[%s5043_s23 + $0x80] sm:$0xff] }
  0x1e   : > { %v322_v26 = vsel %vm313_vm2, %v320_v20, %v321_v21  ;;  %v330_v27 = vpack.c.bf16 %v319_v23, %v316_v19  ;;  %v325_v28 = vsel %vm313_vm2, %v323_v22, %v324_v24  ;;  %v460_v34 = vrot.slane %v293_v10, 2  ;;  %v4523_v21 = vld [vmem:[%s6019_s3 + $0x4] ss:$8 sps:$4 sm:$0xff]   ;;  %v4525_v22 = vld [vmem:[%s6019_s3] ss:$8 sps:$4 sm:$0xff]  }
  0x1f   : > { %v5060_v30 = vpack.c.bf16 %v325_v28, %v322_v26  ;;  %v459_v35 = vrot.slane %v292_v9, 2  ;;  %v458_v36 = vsel %vm455_vm4, %v456_v32, %v457_v33  ;;  %v303_v39 = vpack.c.bf16 %v296_v14, %v294_v11  ;;  %v3883_v9 = vld [vmem:[%s6017_s1 + $0x10] sm:$0x3]  ;;  %996 = vmatprep.subr.bf16.mxu1 %v4523_v21  ;;  %v3894_v38 = vld [vmem:[%s5043_s23 + $0x68] sm:$0x3] }
  0x20   : > { %4105 = vmatprep.mubr.msk.bf16.mxu0 %vm334_vm3, %v330_v27  ;;  %v462_v42 = vrot.slane %v294_v11, 2  ;;  %v463_v43 = vrot.slane %v295_v12, 2  ;;  %v466_v44 = vrot.slane %v297_v15, 2  ;;  %v465_v45 = vrot.slane %v296_v14, 2  ;;  %v301_v11 = vld [vmem:[%s5043_s23 + $0x58] sm:$0x3]  ;;  %997 = vmatpush1.bf16.msra.mxu1 %v4525_v22 }
  0x21   : > { %4106 = vmatmul.mubr.msk.bf16.vlgmr.msra.gmra.mrb[0].mxu0 %vm334_vm3, %v5060_v30  ;;  %v461_v37 = vsel %vm455_vm4, %v459_v35, %v460_v34  ;;  %v539_v54 = vpack.c.bf16 %v298_v52, %v296_v14  ;;  %v610_v55 = vpack.c.bf16 %v322_v26, %v319_v23  ;;  %v606_v58 = vrot.slane %v298_v52, 1  ;;  %v4526_v23 = vld [vmem:[%s6019_s3 + $0x14] ss:$8 sps:$4 sm:$0xff]   ;;  %v4528_v24 = vld [vmem:[%s6019_s3 + $0x10] ss:$8 sps:$4 sm:$0xff]  }
  0x22   : > { %4110 = vmatpush3.bf16.msra.mxu0 %v404_v6  ;;  %4111 = vmatprep.mubr.msk.bf16.mxu0 %vm334_vm3, %v302_v29  ;;  %v472_v40 = vpack.c.bf16 %v461_v37, %v458_v36  ;;  %v464_v46 = vsel %vm455_vm4, %v462_v42, %v463_v43  ;;  %v467_v47 = vsel %vm455_vm4, %v465_v45, %v466_v44  ;;  %v607_v59 = vrot.slane %v299_v56, 1  ;;  %v3896_v42 = vld [vmem:[%s5043_s23 + $0x78] sm:$0x3]  ;;  %v1072_v43 = vld [vmem:[%s6017_s1] sm:$0x3] }
  0x23   : > { %4115 = vmatprep.subr.bf16.mxu0 %v483_v31  ;;  %v473_v49 = vpack.c.bf16 %v467_v47, %v464_v46  ;;  %v680_v63 = vpack.c.bf16 %v464_v46, %v461_v37  ;;  %v677_v1 = vrot.slane %v299_v56, 2  ;;  %v676_v2 = vrot.slane %v298_v52, 2  ;;  %998 = vmatprep.subr.bf16.mxu1 %v4526_v23  ;;  %v3893_v37 = vld [vmem:[%s5043_s23 + $0x60] sm:$0xff]  ;;  %v3898_v56 = vld [vmem:[%s5043_s23 + $0x88] sm:$0x3] }
  0x24   : > { %v608_v60 = vsel %vm313_vm2, %v606_v58, %v607_v59  ;;  %v821_v7 = vand.u32 %v3880_v5, %v5033_v3  ;;  %v746_v10 = vpack.c.bf16 %v300_v8, %v298_v52  ;;  %v887_v12 = vand.u32 %v3883_v9, %v5033_v3  ;;  %999 = vmatpush1.bf16.msra.mxu1 %v4528_v24  ;;  %v3900_v58 = vld [vmem:[%s5043_s23 + $0x98] sm:$0x3] }
  0x25   : > { %v611_v62 = vpack.c.bf16 %v608_v60, %v325_v28  ;;  %v678_v4 = vsel %vm455_vm4, %v676_v2, %v677_v1  ;;  %v810_v13 = vrot.slane %v300_v8, 1  ;;  %v811_v14 = vrot.slane %v301_v11, 1  ;;  %v5140_v28 = vld [vmem:[%s6018_s2] ss:$0 sm:$0xff]  ;;  %v3910_v2 = vld [vmem:[%s6017_s1 + $0x4] sm:$0x3] }
  0x26   : > { %v681_v6 = vpack.c.bf16 %v678_v4, %v467_v47  ;;  %v877_v17 = vrot.slane %v301_v11, 2  ;;  %v876_v18 = vrot.slane %v300_v8, 2  ;;  %v4926_v26 = vmov 0  }
  0x27   : > { %v812_v15 = vsel %vm313_vm2, %v810_v13, %v811_v14  ;;  %1028 = vmatprep.mubr.bf16.mxu1 %v4926_v26  ;;  %v1107_v27 = vand.u32 %v3905_v25, %v5033_v3  ;;  %v1081_v47 = vrot.slane %v3893_v37, 1  ;;  %v1082_v48 = vrot.slane %v3894_v38, 1  ;;  %v3913_v13 = vld [vmem:[%s6017_s1 + $0x6] sm:$0x3] }
  0x28   : > { %v814_v16 = vpack.c.bf16 %v812_v15, %v608_v60  ;;  %v878_v19 = vsel %vm455_vm4, %v876_v18, %v877_v17  ;;  %v1165_v52 = vand.u32 %v1072_v43, %v5033_v3  ;;  %v1087_v59 = vrot.slane %v3897_v53, 1 }
  0x29   : > { %v880_v20 = vpack.c.bf16 %v878_v19, %v678_v4  ;;  %4157 = vmatprep.subr.bf16.mxu1 %v1107_v27  ;;  %v1088_v61 = vrot.slane %v3898_v56, 1  ;;  %v1217_v8 = vrot.slane %v3894_v38, 2  ;;  %v1222_v17 = vrot.slane %v3897_v53, 2  ;;  %v3922_v38 = vld [vmem:[%s6017_s1 + $0xc] sm:$0x3] }
  0x2a   : > { %v1223_v18 = vrot.slane %v3898_v56, 2 }
  0x2d   : > { %4112 = vmatmul.mubr.msk.bf16.vlgmr.msra.gmra.mrb[0].mxu0 %vm334_vm3, %v303_v39 }
  0x2e   : > { %4116 = vmatpush3.bf16.msra.mxu0 %v483_v31  ;;  %4117 = vmatprep.mubr.msk.bf16.mxu0 %vm334_vm3, %v472_v40 }
  0x2f   : > { %4121 = vmatprep.subr.bf16.mxu0 %v549_v41 }
  0x39   : > { %4118 = vmatmul.mubr.msk.bf16.vlgmr.msra.gmra.mrb[0].mxu0 %vm334_vm3, %v473_v49 }
  0x3a   : > { %4122 = vmatpush3.bf16.msra.mxu0 %v549_v41  ;;  %4123 = vmatprep.mubr.msk.bf16.mxu0 %vm334_vm3, %v538_v50 }
  0x3b   : > { %4127 = vmatprep.subr.bf16.mxu0 %v621_v51 }
  0x45   : > { %4124 = vmatmul.mubr.msk.bf16.vlgmr.msra.gmra.mrb[0].mxu0 %vm334_vm3, %v539_v54  ;;  %v1083_v54 = vsel %vm313_vm2, %v1081_v47, %v1082_v48  ;;  %v3903_v48 = vld [vmem:[%s5043_s23 + $0xb0] sm:$0xff] }
  0x46   : > { %4128 = vmatpush3.bf16.msra.mxu0 %v621_v51  ;;  %4129 = vmatprep.mubr.msk.bf16.mxu0 %vm334_vm3, %v610_v55  ;;  %v1085_v51 = vrot.slane %v3896_v42, 1 }
  0x47   : > { %4133 = vmatprep.subr.bf16.mxu0 %v691_v57 }
  0x51   : > { %4130 = vmatmul.mubr.msk.bf16.vlgmr.msra.gmra.mrb[0].mxu0 %vm334_vm3, %v611_v62 }
  0x52   : > { %4134 = vmatpush3.bf16.msra.mxu0 %v691_v57  ;;  %4135 = vmatprep.mubr.msk.bf16.mxu0 %vm334_vm3, %v680_v63  ;;  %v3899_v57 = vld [vmem:[%s5043_s23 + $0x90] sm:$0xff]  ;;  %v1091_v63 = vrot.slane %v3900_v58, 1 }
  0x53   : > { %4139 = vmatprep.subr.bf16.mxu0 %v753_v0  ;;  %v1090_v62 = vrot.slane %v3899_v57, 1  ;;  %v1071_v14 = vpack.c.bf16 %v3899_v57, %v3897_v53  ;;  %v1225_v19 = vrot.slane %v3899_v57, 2 }
  0x55   : > { %v1092_v1 = vsel %vm313_vm2, %v1090_v62, %v1091_v63  ;;  %v288_v63 = vld [vmem:[%s6020_s4] sm:$0x3] }
  0x5d   : > { %4136 = vmatmul.mubr.msk.bf16.vlgmr.msra.gmra.mrb[0].mxu0 %vm334_vm3, %v681_v6  ;;  %v1242_v6 = vand.u32 %v3910_v2, %v5033_v3 }
  0x5e   : > { %4140 = vmatpush3.bf16.msra.mxu0 %v753_v0  ;;  %4141 = vmatprep.mubr.msk.bf16.mxu0 %vm334_vm3, %v303_v39  ;;  %v5149_v39 = vld [vmem:[%s5043_s23 + $0x70] sm:$0xff]  ;;  %v1089_v0 = vsel %vm313_vm2, %v1087_v59, %v1088_v61 }
  0x5f   : > { %4145 = vmatprep.subr.bf16.mxu0 %v821_v7  ;;  %v1084_v50 = vrot.slane %v5149_v39, 1  ;;  %v5172_v4 = vpack.c.bf16 %v1092_v1, %v1089_v0  ;;  %v1070_v5 = vpack.c.bf16 %v5149_v39, %v3893_v37  ;;  %v1219_v9 = vrot.slane %v5149_v39, 2 }
  0x60   : > { %v1297_v25 = vpack.c.bf16 %v3897_v53, %v5149_v39  ;;  %v1565_v53 = vrot.slane %v3903_v48, 1 }
  0x61   : > { %v1086_v55 = vsel %vm313_vm2, %v1084_v50, %v1085_v51 }
  0x62   : > { %v1097_v60 = vpack.c.bf16 %v1086_v55, %v1083_v54 }
  0x69   : > { %4142 = vmatmul.mubr.msk.bf16.vlgmr.msra.gmra.mrb[0].mxu0 %vm334_vm3, %v746_v10  ;;  %v1220_v10 = vrot.slane %v3896_v42, 2 }
  0x6a   : > { %4146 = vmatpush3.bf16.msra.mxu0 %v821_v7  ;;  %4147 = vmatprep.mubr.msk.bf16.mxu0 %vm334_vm3, %v5060_v30  ;;  %v1216_v7 = vrot.slane %v3893_v37, 2 }
  0x6b   : > { %4151 = vmatprep.subr.bf16.mxu0 %v887_v12 }
  0x6c   : > { %v1218_v11 = vsel %vm455_vm4, %v1216_v7, %v1217_v8 }
  0x75   : > { %4148 = vmatmul.mubr.msk.bf16.vlgmr.msra.gmra.mrb[0].mxu0 %vm334_vm3, %v814_v16  ;;  %v1307_v16 = vand.u32 %v3913_v13, %v5033_v3 }
  0x76   : > { %4152 = vmatpush3.bf16.msra.mxu0 %v887_v12  ;;  %4153 = vmatprep.mubr.msk.bf16.mxu0 %vm334_vm3, %v473_v49  ;;  %v1221_v12 = vsel %vm455_vm4, %v1219_v9, %v1220_v10 }
  0x77   : > { %1711 = vmatprep.subr.bf16.mxu0 %v4523_v21  ;;  %v1232_v15 = vpack.c.bf16 %v1221_v12, %v1218_v11  ;;  %v1224_v21 = vsel %vm455_vm4, %v1222_v17, %v1223_v18 }
  0x81   : > { %4154 = vmatmul.mubr.msk.bf16.vlgmr.msra.gmra.mrb[0].mxu0 %vm334_vm3, %v880_v20  ;;  %v1226_v20 = vrot.slane %v3900_v58, 2 }
  0x82   : > { %1712 = vmatpush1.bf16.msra.mxu0 %v4525_v22  ;;  %1743 = vmatprep.mubr.bf16.mxu0 %v4926_v26 }
  0x83   : > { %1713 = vmatprep.subr.bf16.mxu0 %v4526_v23  ;;  %v1227_v22 = vsel %vm455_vm4, %v1225_v19, %v1226_v20  ;;  %v3916_v23 = vld [vmem:[%s6017_s1 + $0x8] sm:$0x3] }
  0x86   : > { %1714 = vmatpush1.bf16.msra.mxu0 %v4528_v24  ;;  %v1233_v24 = vpack.c.bf16 %v1227_v22, %v1224_v21 }
 0x154   : > { %v4155_v29 = vpop.f32.mrb[0].mxu0 }
 0x155   : > { %v950_v30 = vadd.f32 %v4155_v29, %v5140_v28  ;;  %v923_v31 = vpop.f32.mrb[1].mxu0  ;;  %v3901_v29 = vld [vmem:[%s5043_s23 + $0xa0] sm:$0xff] }
 0x156   : > { %v948_v32 = vadd.f32 %v5140_v28, %v923_v31  ;;  %v4156_v33 = vpop.f32.mrb[2].mxu0  ;;  %v1298_v31 = vpack.c.bf16 %v3901_v29, %v3899_v57  ;;  %v1433_v42 = vrot.slane %v3901_v29, 2  ;;  %v1502_v50 = vpack.c.bf16 %v3903_v48, %v3901_v29 }
 0x157   : > { %v951_v34 = vadd.f32 %v4156_v33, %v5140_v28  ;;  %v926_v35 = vpop.f32.mrb[3].mxu0  ;;  %v954_v40 = vmax.f32 %v950_v30, 0.0  ;;  %v3919_v30 = vld [vmem:[%s6017_s1 + $0xa] sm:$0x3]  ;;  %v1630_v57 = vrot.slane %v3903_v48, 2 }
 0x158   : > { %v949_v36 = vadd.f32 %v5140_v28, %v926_v35  ;;  %v952_v44 = vmax.f32 %v948_v32, 0.0  ;;  %v1368_v32 = vpack.c.bf16 %v1089_v0, %v1086_v55  ;;  %v1447_v33 = vand.u32 %v3919_v30, %v5033_v3 }
 0x159   : > { %v955_v41 = vmax.f32 %v951_v34, 0.0  ;;  %v3902_v34 = vld [vmem:[%s5043_s23 + $0xa8] sm:$0x3]  ;;  %v1364_v35 = vrot.slane %v3901_v29, 1 }
 0x15a   : > { %v953_v45 = vmax.f32 %v949_v36, 0.0  ;;  %v1365_v36 = vrot.slane %v3902_v34, 1  ;;  %v1434_v43 = vrot.slane %v3902_v34, 2 }
 0x15b   : > { %v957_v46 = vpack.c.bf16 %v955_v41, %v954_v40  ;;  %v1437_v40 = vpack.c.bf16 %v1224_v21, %v1221_v12  ;;  %v1508_v41 = vand.u32 %v3922_v38, %v5033_v3  ;;  %v5278_v38 = vld [vmem:[%s6022_s6] sm:$0xf] }
 0x15c   : > { %v956_v49 = vpack.c.bf16 %v953_v45, %v952_v44  ;;  %v1366_v37 = vsel %vm313_vm2, %v1364_v35, %v1365_v36  ;;  %v1435_v44 = vsel %vm455_vm4, %v1433_v42, %v1434_v43  ;;  %v3925_v45 = vld [vmem:[%s6017_s1 + $0xe] sm:$0x3]  ;;  %v5258_v36 = vld [vmem:[%s6021_s5] sm:$0xf] }
 0x15d   : > { %v1369_v39 = vpack.c.bf16 %v1366_v37, %v1092_v1  ;;  %v1575_v47 = vand.u32 %v3925_v45, %v5033_v3 }
 0x15e   : > { %3891 = vmatmul.mubr.msk.bf16.vlgmr.msra.gmra.mrb[0].mxu1 %vm989_vm5, %v956_v49  ;;  %v3928_v49 = vld [vmem:[%s6017_s1 + $0x10] sm:$0x3] }
 0x15f   : > { %4158 = vmatpush3.bf16.msra.mxu1 %v1107_v27  ;;  %1038 = vmatprep.mubr.bf16.mxu1 %v4926_v26  ;;  %v1378_v27 = vand.u32 %v3916_v23, %v5033_v3  ;;  %v1640_v51 = vand.u32 %v3928_v49, %v5033_v3 }
 0x160   : > { %4163 = vmatprep.subr.bf16.mxu1 %v1165_v52 }
 0x166   : > { %3892 = vmatmul.mubr.msk.bf16.gmra.mrb[4].mxu1 %vm989_vm5, %v957_v46  ;;  %v1438_v46 = vpack.c.bf16 %v1435_v44, %v1227_v22 }
 0x167   : > { %4159 = vmatprep.mubr.msk.bf16.mxu1 %vm334_vm3, %v1097_v60  ;;  %v959_v60 = vlaneseq }
 0x169   : > { %v960_v61 = vshrl.u32 %v959_v60, 7  ;;  %v5312_v60 = vmov 0.0  }
 0x16b   : > { %v961_v62 = vsub.s32 0, %v960_v61  ;;  %v965_v0 = vsub.s32 1, %v960_v61  ;;  %v5314_v61 = vmov 0.0  }
 0x16d   : > { %v5236_v1 = vrot.slane %v288_v63, %v961_v62  ;;  %v5238_v2 = vrot.slane %v288_v63, %v965_v0  ;;  %v5316_v62 = vmov 0.0   ;;  %v5318_v63 = vmov 0.0  }
 0x16e   : > { %4160 = vmatmul.mubr.msk.bf16.vlgmr.msra.gmra.mrb[8].mxu1 %vm334_vm3, %v5172_v4  ;;  %v5320_v0 = vmov 0.0  }
 0x16f   : > { %4164 = vmatpush3.bf16.msra.mxu1 %v1165_v52  ;;  %4165 = vmatprep.mubr.msk.bf16.mxu1 %vm334_vm3, %v1070_v5  ;;  %v3904_v52 = vld [vmem:[%s5043_s23 + $0xb8] sm:$0x3] }
 0x170   : > { %4169 = vmatprep.subr.bf16.mxu1 %v1242_v6  ;;  %v1566_v54 = vrot.slane %v3904_v52, 1  ;;  %v1631_v3 = vrot.slane %v3904_v52, 2 }
 0x172   : > { %v1567_v55 = vsel %vm313_vm2, %v1565_v53, %v1566_v54  ;;  %v1632_v58 = vsel %vm455_vm4, %v1630_v57, %v1631_v3  ;;  %v5306_v3 = vmov 0.0  }
 0x173   : > { %v1569_v56 = vpack.c.bf16 %v1567_v55, %v1366_v37  ;;  %v1634_v59 = vpack.c.bf16 %v1632_v58, %v1435_v44  ;;  %v5268_v37 = vld [vmem:[%s6021_s5 + $0x8] sm:$0xf]  ;;  %v5308_v58 = vmov 0.0  }
 0x17a   : > { %4166 = vmatmul.mubr.msk.bf16.vlgmr.msra.gmra.mrb[8].mxu1 %vm334_vm3, %v1071_v14 }
 0x17b   : > { %4170 = vmatpush3.bf16.msra.mxu1 %v1242_v6  ;;  %4171 = vmatprep.mubr.msk.bf16.mxu1 %vm334_vm3, %v1232_v15 }
 0x17c   : > { %4175 = vmatprep.subr.bf16.mxu1 %v1307_v16 }
 0x186   : > { %4172 = vmatmul.mubr.msk.bf16.vlgmr.msra.gmra.mrb[8].mxu1 %vm334_vm3, %v1233_v24 }
 0x187   : > { %4176 = vmatpush3.bf16.msra.mxu1 %v1307_v16  ;;  %4177 = vmatprep.mubr.msk.bf16.mxu1 %vm334_vm3, %v1297_v25 }
 0x188   : > { %4181 = vmatprep.subr.bf16.mxu1 %v1378_v27 }
 0x192   : > { %4178 = vmatmul.mubr.msk.bf16.vlgmr.msra.gmra.mrb[8].mxu1 %vm334_vm3, %v1298_v31 }
 0x193   : > { %4182 = vmatpush3.bf16.msra.mxu1 %v1378_v27  ;;  %4183 = vmatprep.mubr.msk.bf16.mxu1 %vm334_vm3, %v1368_v32 }
 0x194   : > { %4187 = vmatprep.subr.bf16.mxu1 %v1447_v33 }
 0x19e   : > { %4184 = vmatmul.mubr.msk.bf16.vlgmr.msra.gmra.mrb[8].mxu1 %vm334_vm3, %v1369_v39  ;;  %v5283_v39 = vld [vmem:[%s6022_s6 + $0x4] sm:$0xf] }
 0x19f   : > { %4188 = vmatpush3.bf16.msra.mxu1 %v1447_v33  ;;  %4189 = vmatprep.mubr.msk.bf16.mxu1 %vm334_vm3, %v1437_v40  ;;  %v5288_v40 = vld [vmem:[%s6022_s6 + $0x8] sm:$0xf] }
 0x1a0   : > { %4193 = vmatprep.subr.bf16.mxu1 %v1508_v41 }
 0x1aa   : > { %4190 = vmatmul.mubr.msk.bf16.vlgmr.msra.gmra.mrb[8].mxu1 %vm334_vm3, %v1438_v46 }
 0x1ab   : > { %4194 = vmatpush3.bf16.msra.mxu1 %v1508_v41  ;;  %4195 = vmatprep.mubr.msk.bf16.mxu1 %vm334_vm3, %v1071_v14  ;;  %v5293_v41 = vld [vmem:[%s6022_s6 + $0xc] sm:$0xf] }
 0x1ac   : > { %4199 = vmatprep.subr.bf16.mxu1 %v1575_v47 }
 0x1b6   : > { %4196 = vmatmul.mubr.msk.bf16.vlgmr.msra.gmra.mrb[8].mxu1 %vm334_vm3, %v1502_v50 }
 0x1b7   : > { %4200 = vmatpush3.bf16.msra.mxu1 %v1575_v47  ;;  %4201 = vmatprep.mubr.msk.bf16.mxu1 %vm334_vm3, %v5172_v4 }
 0x1b8   : > { %4205 = vmatprep.subr.bf16.mxu1 %v1640_v51 }
 0x1c2   : > { %4202 = vmatmul.mubr.msk.bf16.vlgmr.msra.gmra.mrb[8].mxu1 %vm334_vm3, %v1569_v56 }
 0x1c3   : > { %4206 = vmatpush3.bf16.msra.mxu1 %v1640_v51  ;;  %4207 = vmatprep.mubr.msk.bf16.mxu1 %vm334_vm3, %v1233_v24 }
 0x1ce   : > { %4208 = vmatmul.mubr.msk.bf16.vlgmr.msra.gmra.mrb[8].mxu1 %vm334_vm3, %v1634_v59  ;;  %v5310_v59 = vmov 0.0  }
 0x231   : > { %v1030_v4 = vpop.f32.mrb[0].mxu1 }
 0x232   : > { %v1031_v5 = vadd.f32 %v1030_v4, %v5236_v1  ;;  %v1032_v6 = vpop.f32.mrb[1].mxu1 }
 0x233   : > { %v1033_v7 = vadd.f32 %v1032_v6, %v5238_v2  ;;  %v1034_v8 = vpop.f32.mrb[2].mxu1 }
 0x234   : > { %1049 = vst [vmem:[#allocation2] sm:$0xff] %v1031_v5  ;;  %v1035_v9 = vadd.f32 %v1034_v8, %v5236_v1  ;;  %v1036_v10 = vpop.f32.mrb[3].mxu1 }
 0x235   : > { %1050 = vst [vmem:[#allocation2 + $0x8] sm:$0xff] %v1033_v7  ;;  %v1037_v11 = vadd.f32 %v1036_v10, %v5238_v2 }
 0x236   : > { %1051 = vst [vmem:[#allocation2 + $0x10] sm:$0xff] %v1035_v9 }
 0x237   : > { %1052 = vst [vmem:[#allocation2 + $0x18] sm:$0xff] %v1037_v11 }
 0x239   : > { %v1040_v12 = vpop.f32.mrb[4].mxu1 }
 0x23a   : > { %v1041_v13 = vadd.f32 %v1040_v12, %v5236_v1  ;;  %v1042_v14 = vpop.f32.mrb[5].mxu1 }
 0x23b   : > { %v1043_v15 = vadd.f32 %v1042_v14, %v5238_v2  ;;  %v1044_v16 = vpop.f32.mrb[6].mxu1 }
 0x23c   : > { %1053 = vst [vmem:[#allocation2 + $0x20] sm:$0xff] %v1041_v13  ;;  %v1045_v17 = vadd.f32 %v1044_v16, %v5236_v1  ;;  %v1046_v18 = vpop.f32.mrb[7].mxu1 }
 0x23d   : > { %1054 = vst [vmem:[#allocation2 + $0x28] sm:$0xff] %v1043_v15  ;;  %v1047_v19 = vadd.f32 %v1046_v18, %v5238_v2 }
 0x23e   : > { %1055 = vst [vmem:[#allocation2 + $0x30] sm:$0xff] %v1045_v17 }
 0x23f   : > { %1056 = vst [vmem:[#allocation2 + $0x38] sm:$0xff] %v1047_v19 }
 0x2a1   : > { %v4209_v20 = vpop.f32.mrb[8].mxu1 }
 0x2a2   : > { %v1697_v21 = vadd.f32 %v4209_v20, %v5140_v28  ;;  %v1676_v22 = vpop.f32.mrb[9].mxu1 }
 0x2a3   : > { %v1695_v23 = vadd.f32 %v5140_v28, %v1676_v22  ;;  %v4210_v24 = vpop.f32.mrb[10].mxu1 }
 0x2a4   : > { %v1698_v25 = vadd.f32 %v4210_v24, %v5140_v28  ;;  %v1679_v27 = vpop.f32.mrb[11].mxu1  ;;  %v1701_v30 = vmax.f32 %v1697_v21, 0.0 }
 0x2a5   : > { %v1696_v29 = vadd.f32 %v5140_v28, %v1679_v27  ;;  %v1699_v32 = vmax.f32 %v1695_v23, 0.0  ;;  %v5263_v28 = vld [vmem:[%s6021_s5 + $0x4] sm:$0xf] }
 0x2a6   : > { %v1702_v31 = vmax.f32 %v1698_v25, 0.0 }
 0x2a7   : > { %v1700_v33 = vmax.f32 %v1696_v29, 0.0 }
 0x2a8   : > { %v1704_v34 = vpack.c.bf16 %v1702_v31, %v1701_v30 }
 0x2a9   : > { %v1703_v35 = vpack.c.bf16 %v1700_v33, %v1699_v32 }
 0x2ab   : > { %3931 = vmatmul.mubr.msk.bf16.vlgmr.msra.gmra.mrb[4].mxu0 %vm989_vm5, %v1703_v35 }
 0x2ac   : > { %1753 = vmatprep.mubr.bf16.mxu0 %v4926_v26  ;;  %v5273_v26 = vld [vmem:[%s6021_s5 + $0xc] sm:$0xf] }
 0x2b3   : > { %3932 = vmatmul.mubr.msk.bf16.gmra.mrb[8].mxu0 %vm989_vm5, %v1704_v34 }
 0x37e   : > { %v1745_v42 = vpop.f32.mrb[4].mxu0 }
 0x37f   : > { %v1746_v43 = vadd.f32 %v1745_v42, %v5236_v1  ;;  %v1747_v44 = vpop.f32.mrb[5].mxu0 }
 0x380   : > { %v1748_v45 = vadd.f32 %v1747_v44, %v5238_v2  ;;  %v1749_v46 = vpop.f32.mrb[6].mxu0 }
 0x381   : > { %1765 = vst [vmem:[#allocation2 + $0x40] sm:$0xff] %v1746_v43  ;;  %v1750_v47 = vadd.f32 %v1749_v46, %v5236_v1  ;;  %v1751_v48 = vpop.f32.mrb[7].mxu0 }
 0x382   : > { %1766 = vst [vmem:[#allocation2 + $0x48] sm:$0xff] %v1748_v45  ;;  %v1752_v49 = vadd.f32 %v1751_v48, %v5238_v2 }
 0x383   : > { %1767 = vst [vmem:[#allocation2 + $0x50] sm:$0xff] %v1750_v47 }
 0x384   : > { %1768 = vst [vmem:[#allocation2 + $0x58] sm:$0xff] %v1752_v49 }
 0x386   : > { %v1755_v50 = vpop.f32.mrb[8].mxu0 }
 0x387   : > { %v1756_v51 = vadd.f32 %v1755_v50, %v5236_v1  ;;  %v1757_v52 = vpop.f32.mrb[9].mxu0 }
 0x388   : > { %v1758_v53 = vadd.f32 %v1757_v52, %v5238_v2  ;;  %v1759_v54 = vpop.f32.mrb[10].mxu0 }
 0x389   : > { %1769 = vst [vmem:[#allocation2 + $0x60] sm:$0xff] %v1756_v51  ;;  %v1760_v55 = vadd.f32 %v1759_v54, %v5236_v1  ;;  %v1761_v56 = vpop.f32.mrb[11].mxu0 }
 0x38a   : > { %1770 = vst [vmem:[#allocation2 + $0x68] sm:$0xff] %v1758_v53  ;;  %v1762_v57 = vadd.f32 %v1761_v56, %v5238_v2 }
 0x38b   : > { %1771 = vst [vmem:[#allocation2 + $0x70] sm:$0xff] %v1760_v55 }
 0x38c   : > { %1772 = vst [vmem:[#allocation2 + $0x78] sm:$0xff] %v1762_v57 }
 0x38d LB: >> { %v1886_v1 = vpack.c.bf16 %v4903_v60, %v4903_v60  ;;  %v1887_v2 = vpack.c.bf16 %v4899_v59, %v4899_v59  ;;  %v1813_v4 = vpack.c.bf16 %v4915_v63, %v4915_v63  ;;  %v1812_v5 = vpack.c.bf16 %v4919_v0, %v4919_v0  ;;  %s4929_s16 = smov 32   ;;  %s1796_s17 = ssub.s32 3, %s4923_s15  ;;  %s4923_s15 = sphi %s5322_s15, %s1786_s15   ;;  %v4919_v0 = vphi %v5320_v0, %v6028_v0   ;;  %v4915_v63 = vphi %v5318_v63, %v3630_v63   ;;  %v4911_v62 = vphi %v5316_v62, %v3617_v62   ;;  %v4907_v61 = vphi %v5314_v61, %v6027_v61   ;;  %v4903_v60 = vphi %v5312_v60, %v6026_v60   ;;  %v4899_v59 = vphi %v5310_v59, %v3684_v59   ;;  %v4895_v58 = vphi %v5308_v58, %v5892_v58   ;;  %v4891_v3 = vphi %v5306_v3, %v3672_v3  }
 0x38e   : >> { %v5345_v6 = vcombine.low %v5278_v38, %v5283_v39  ;;  %v5349_v7 = vcombine.low %v5258_v36, %v5263_v28  ;;  %vm1820_vm6 = vcmask 1041409   ;;  %v4927_v11 = vmov 0.0   ;;  %s5392_s18 = sshll.u32 %s1796_s17, 3  ;;  %s3933_s20 = sshll.u32 %s4923_s15, 3 }
 0x38f   : >> { %v1890_v8 = vunpack.c.l.b16 %v1886_v1  ;;  %v1891_v9 = vunpack.c.l.b16 %v1887_v2  ;;  %v1817_v10 = vunpack.c.l.b16 %v1813_v4  ;;  %4219 = vmatprep.subr.bf16.mxu1 %v4927_v11  ;;  %4211 = vmatprep.subr.bf16.mxu0 %v4927_v11  ;;  %v1816_v12 = vunpack.c.l.b16 %v1812_v5  ;;  %s1805_s19 = sshra.s32 %s5392_s18, 3  ;;  %s1798_s21 = sshra.s32 %s3933_s20, 3 }
 0x390   : >> { %4220 = vmatpush3.bf16.msra.mxu1 %v5345_v6  ;;  %4212 = vmatpush3.bf16.msra.mxu0 %v5349_v7  ;;  %v5357_v13 = vcombine.low %v5288_v40, %v5293_v41  ;;  %v5361_v14 = vcombine.low %v5268_v37, %v5273_v26  ;;  %vm4928_vm7 = vmmov 0   ;;  %s3998_s23 = sshll.u32 %s1805_s19, 4  ;;  %s3997_s22 = sshll.u32 %s1798_s21, 4  ;;  %vm3689_vm8 = vcmask 1042432  }
 0x391   : >> { %v1892_v15 = vrot.slane %v1891_v9, 7  ;;  %v1819_v16 = vrot.slane %v1817_v10, 6  ;;  %4221 = vmatprep.subr.bf16.mxu1 %v4927_v11  ;;  %4223 = vmatprep.mubr.msk.bf16.mxu1 %vm4928_vm7, %v4927_v11  ;;  %v1818_v17 = vrot.slane %v1816_v12, 7  ;;  %s5398_s29 = scalar_lea.vmem [#allocation2], %s3998_s23  ;;  %s5408_s8 = scalar_lea.vmem [#allocation2], %s3997_s22  ;;  %vm3692_vm9 = vcmask 1043456  }
 0x392   : >> { %4213 = vmatprep.subr.bf16.mxu0 %v4927_v11  ;;  %4215 = vmatprep.mubr.msk.bf16.mxu0 %vm4928_vm7, %v4927_v11  ;;  %s4930_s9 = smov 64   ;;  %vm3695_vm10 = vcmask 1044480   ;;  %s3710_s17 = scalar_lea.vmem %s5304_s14, %s3933_s20 [#allocation3]  ;;  %vm3736_vm11 = vcmask 523520  }
 0x393   : >> { %v1893_v18 = vsel %vm1820_vm6, %v1892_v15, %v1890_v8  ;;  %v1821_v20 = vsel %vm1820_vm6, %v1819_v16, %v1818_v17  ;;  %v5401_v24 = vld [vmem:[%s5398_s29 + $0x8] sm:$0xff]  ;;  %v5411_v43 = vld [vmem:[%s5408_s8 + $0x40] sm:$0xff]  ;;  %s1786_s15 = sadd.s32 1, %s4923_s15  }
 0x394   : >> { %v1894_v19 = vpack.c.b16 %v1893_v18, %v1893_v18  ;;  %4222 = vmatpush3.bf16.msra.mxu1 %v5357_v13  ;;  %4214 = vmatpush3.bf16.msra.mxu0 %v5361_v14  ;;  %v1822_v21 = vpack.c.b16 %v1821_v20, %v1821_v20  ;;  %v5404_v31 = vld [vmem:[%s5398_s29 + $0x48] sm:$0xff]  ;;  %v5414_v46 = vld [vmem:[%s5408_s8] sm:$0xff]  ;;  %p1783_p11 = scmp.ge.s32.totalorder %s1786_s15, 4  }
 0x395   : >> { %4235 = vmatprep.subr.bf16.mxu1 %v4927_v11  ;;  %4227 = vmatprep.subr.bf16.mxu0 %v4927_v11  ;;  %s3754_s21 = sshll.u32 (%p1783_p11), %s5304_s14, 4  ;;  %s5975_s22 = scalar_lea.sflag (%p1783_p11), [#allocation4], %s272_s13  ;;  %s5971_s21 = int_to_ptr.vmem [resolvable:$true] %s3754_s21 }
 0x396   : >> { %1895 = vrot.lane.b32.xlu0 %v1894_v19, %s4929_s16  ;;  %s4789_s15 = scalar_lea.vmem (%p1783_p11), %s5971_s21, 1024 }
 0x397   : > { %p4790_p12 = scmp.ne.s32.totalorder (%p1783_p11), %s5971_s21, %s4789_s15 }
 0x399   : > { %p4791_p13 = pnand (%p1783_p11), %p4790_p12, %p5012_p5 }
 0x39a   : >> { %1823 = vrot.lane.b32.xlu0 %v1822_v21, %s4929_s16 }
 0x39b   : > { %p4792_p0 = pneg (%p1783_p11), %p4791_p13 }
 0x408   : >> { %v1896_v22 = vpop.permute.xlu0 %1895 }
 0x409   : >> { %4224 = vmatmul.mubr.msk.bf16.vlgmr.msra.gmra.mrb[0].mxu1 %vm989_vm5, %v1896_v22 }
 0x40a   : >> { %4236 = vmatpush3.bf16.msra.mxu1 %v5345_v6  ;;  %4239 = vmatprep.mubr.msk.bf16.mxu1 %vm4928_vm7, %v4927_v11 }
 0x40b   : >> { %4237 = vmatprep.subr.bf16.mxu1 %v4927_v11 }
 0x40c   : >> { %v1824_v23 = vpop.permute.xlu0 %1823 }
 0x40d   : >> { %4216 = vmatmul.mubr.msk.bf16.vlgmr.msra.gmra.mrb[0].mxu0 %vm989_vm5, %v1824_v23 }
 0x40e   : >> { %4228 = vmatpush3.bf16.msra.mxu0 %v5349_v7  ;;  %4238 = vmatpush3.bf16.msra.mxu1 %v5357_v13 }
 0x40f   : >> { %4229 = vmatprep.subr.bf16.mxu0 %v4927_v11  ;;  %4231 = vmatprep.mubr.msk.bf16.mxu0 %vm4928_vm7, %v4927_v11 }
 0x410   : >> { %4251 = vmatprep.subr.bf16.mxu1 %v4927_v11 }
 0x412   : >> { %4230 = vmatpush3.bf16.msra.mxu0 %v5361_v14 }
 0x413   : >> { %4243 = vmatprep.subr.bf16.mxu0 %v4927_v11 }
 0x4dc   : >> { %v1946_v25 = vpop.f32.mrb[0].mxu1 }
 0x4dd   : >> { %v1953_v27 = vrot.slane %v1946_v25, 1  ;;  %v1954_v29 = vrot.slane %v1946_v25, 2  ;;  %v4225_v30 = vpop.f32.mrb[1].mxu1  ;;  %v2029_v25 = vrot.slane %v4895_v58, 1 }
 0x4de   : >> { %v1949_v32 = vpop.f32.mrb[2].mxu1 }
 0x4df   : >> { %v1957_v33 = vadd.f32 %v1953_v27, %v5401_v24  ;;  %v4226_v34 = vpop.f32.mrb[3].mxu1  ;;  %v1958_v42 = vadd.f32 %v1954_v29, %v5404_v31  ;;  %v2030_v29 = vrot.slane %v4891_v3, 1 }
 0x4e0   : >> { %v1874_v35 = vpop.f32.mrb[0].mxu0 }
 0x4e1   : >> { %4529 = vtanh.f32 %v1957_v33  ;;  %v1881_v44 = vrot.slane %v1874_v35, 1  ;;  %v4217_v45 = vpop.f32.mrb[1].mxu0  ;;  %v1884_v50 = vadd.f32 %v1874_v35, %v5414_v46  ;;  %v3947_v55 = vmul.f32 -1.442695, %v1957_v33 }
 0x4e2   : >> { %v1877_v47 = vpop.f32.mrb[2].mxu0  ;;  %4531 = vtanh.f32 %v1958_v42  ;;  %v3948_v56 = vmul.f32 -1.442695, %v1958_v42  ;;  %v1976_v33 = vrot.slane %v4907_v61, 7  ;;  %v1975_v35 = vrot.slane %v4911_v62, 7 }
 0x4e3   : >> { %v4218_v48 = vpop.f32.mrb[3].mxu0  ;;  %v1885_v49 = vadd.f32 %v1881_v44, %v5411_v43  ;;  %v3945_v59 = vmul.f32 -1.442695, %v1884_v50 }
 0x4e5   : >> { %4533 = vtanh.f32 %v1885_v49  ;;  %v3946_v57 = vmul.f32 -1.442695, %v1885_v49 }
 0x4e6   : >> { %4535 = vtanh.f32 %v1884_v50 }
 0x4e7   : >> { %4537 = vpow2.f32 %v3947_v55 }
 0x4e8   : >> { %4539 = vpow2.f32 %v3948_v56 }
 0x4e9   : >> { %4541 = vpow2.f32 %v3946_v57 }
 0x4ea   : >> { %4543 = vpow2.f32 %v3945_v59 }
 0x4eb   : >> { %v4530_v51 = vpop.eup %4529 }
 0x4ec   : >> { %2037 = vrot.lane.b32.xlu1 %v4530_v51, %s4930_s9  ;;  %v4532_v52 = vpop.eup %4531 }
 0x4ef   : >> { %v4534_v53 = vpop.eup %4533 }
 0x4f0   : >> { %2039 = vrot.lane.b32.xlu1 %v4532_v52, %s4930_s9  ;;  %v4536_v54 = vpop.eup %4535  ;;  %1985 = vrot.lane.b32.xlu0 %v4534_v53, %s4930_s9 }
 0x4f1   : >> { %v4538_v60 = vpop.eup %4537 }
 0x4f2   : >> { %v2019_v63 = vadd.f32 1.0, %v4538_v60  ;;  %v4540_v0 = vpop.eup %4539 }
 0x4f3   : >> { %v4542_v1 = vpop.eup %4541  ;;  %v2020_v2 = vadd.f32 1.0, %v4540_v0 }
 0x4f4   : >> { %1983 = vrot.lane.b32.xlu1 %v4536_v54, %s4930_s9  ;;  %4545 = vrcp.f32 %v2019_v63  ;;  %v4544_v4 = vpop.eup %4543  ;;  %v1966_v5 = vadd.f32 1.0, %v4542_v1 }
 0x4f5   : >> { %4547 = vrcp.f32 %v2020_v2  ;;  %v1965_v8 = vadd.f32 1.0, %v4544_v4 }
 0x4f6   : >> { %4549 = vrcp.f32 %v1966_v5 }
 0x4f7   : >> { %4551 = vrcp.f32 %v1965_v8 }
 0x4fe   : >> { %v4546_v9 = vpop.eup %4545 }
 0x4ff   : >> { %v4548_v15 = vpop.eup %4547  ;;  %v2033_v27 = vmul.f32 %v4546_v9, %v2029_v25 }
 0x500   : >> { %v4550_v18 = vpop.eup %4549  ;;  %v2034_v34 = vmul.f32 %v4548_v15, %v2030_v29 }
 0x501   : >> { %v4552_v20 = vpop.eup %4551  ;;  %v1980_v45 = vmul.f32 %v4550_v18, %v1976_v33 }
 0x502   : >> { %v1979_v47 = vmul.f32 %v4552_v20, %v1975_v35 }
 0x55e   : >> { %v2038_v10 = vpop.permute.xlu1 %2037 }
 0x55f   : >> { %v2043_v12 = vmul.f32 %v4546_v9, %v2038_v10 }
 0x561   : >> { %2047 = vrot.lane.b32.xlu0 %v2043_v12, %s4929_s16 }
 0x562   : >> { %v2040_v16 = vpop.permute.xlu1 %2039  ;;  %v1986_v19 = vpop.permute.xlu0 %1985 }
 0x563   : >> { %v2044_v17 = vmul.f32 %v4548_v15, %v2040_v16  ;;  %v1990_v21 = vmul.f32 %v4550_v18, %v1986_v19 }
 0x565   : >> { %2049 = vrot.lane.b32.xlu1 %v2044_v17, %s4929_s16  ;;  %1995 = vrot.lane.b32.xlu0 %v1990_v21, %s4929_s16 }
 0x566   : >> { %v1984_v22 = vpop.permute.xlu1 %1983 }
 0x567   : >> { %v1989_v23 = vmul.f32 %v4552_v20, %v1984_v22 }
 0x569   : >> { %1993 = vrot.lane.b32.xlu1 %v1989_v23, %s4929_s16 }
 0x5d3   : >> { %v2048_v30 = vpop.permute.xlu0 %2047 }
 0x5d4   : >> { %v5428_v32 = vadd.f32 %v2048_v30, %v2033_v27 }
 0x5d6   : >> { %4553 = vtanh.f32 %v5428_v32 }
 0x5d7   : >> { %v2050_v42 = vpop.permute.xlu1 %2049  ;;  %v1996_v58 = vpop.permute.xlu0 %1995 }
 0x5d8   : >> { %v5433_v44 = vadd.f32 %v2050_v42, %v2034_v34  ;;  %v5436_v48 = vadd.f32 %v1996_v58, %v1980_v45 }
 0x5da   : >> { %4555 = vtanh.f32 %v5433_v44 }
 0x5db   : >> { %v1994_v3 = vpop.permute.xlu1 %1993  ;;  %4557 = vtanh.f32 %v5436_v48 }
 0x5dc   : >> { %v5438_v49 = vadd.f32 %v1994_v3, %v1979_v47 }
 0x5de   : >> { %4559 = vtanh.f32 %v5438_v49 }
 0x5e0   : >> { %v4554_v61 = vpop.eup %4553 }
 0x5e1   : >> { %2059 = vrot.lane.b32.xlu0 %v4554_v61, %s4930_s9 }
 0x5e4   : >> { %v4556_v62 = vpop.eup %4555 }
 0x5e5   : >> { %2061 = vrot.lane.b32.xlu1 %v4556_v62, %s4930_s9  ;;  %v4558_v50 = vpop.eup %4557 }
 0x5e6   : >> { %2007 = vrot.lane.b32.xlu0 %v4558_v50, %s4930_s9 }
 0x5e8   : >> { %v4560_v51 = vpop.eup %4559 }
 0x5e9   : >> { %2005 = vrot.lane.b32.xlu1 %v4560_v51, %s4930_s9 }
 0x653   : >> { %v2060_v52 = vpop.permute.xlu0 %2059 }
 0x654   : >> { %v5446_v53 = vmul.f32 %v4546_v9, %v2060_v52 }
 0x656   : >> { %v2127_v54 = vpack.c.bf16 %v5446_v53, %v5446_v53 }
 0x657   : >> { %v2062_v55 = vpop.permute.xlu1 %2061 }
 0x658   : >> { %v5450_v56 = vmul.f32 %v4548_v15, %v2062_v55  ;;  %v2131_v57 = vunpack.c.l.b16 %v2127_v54  ;;  %v2008_v59 = vpop.permute.xlu0 %2007 }
 0x659   : >> { %v5454_v63 = vmul.f32 %v4550_v18, %v2008_v59 }
 0x65a   : >> { %v2128_v60 = vpack.c.bf16 %v5450_v56, %v5450_v56  ;;  %v2133_v5 = vrot.slane %v2131_v57, 7 }
 0x65b   : >> { %v2006_v0 = vpop.permute.xlu1 %2005  ;;  %v2068_v4 = vpack.c.bf16 %v5454_v63, %v5454_v63 }
 0x65c   : >> { %v2132_v1 = vunpack.c.l.b16 %v2128_v60  ;;  %v5456_v2 = vmul.f32 %v4552_v20, %v2006_v0 }
 0x65d   : >> { %v2072_v10 = vunpack.c.l.b16 %v2068_v4 }
 0x65e   : >> { %v2134_v8 = vrot.slane %v2132_v1, 6  ;;  %v2067_v9 = vpack.c.bf16 %v5456_v2, %v5456_v2 }
 0x65f   : >> { %v2073_v16 = vrot.slane %v2072_v10, 7 }
 0x660   : >> { %v2071_v12 = vunpack.c.l.b16 %v2067_v9  ;;  %v2135_v15 = vsel %vm1820_vm6, %v2134_v8, %v2133_v5 }
 0x661   : >> { %v2136_v17 = vpack.c.b16 %v2135_v15, %v2135_v15 }
 0x662   : >> { %v2074_v18 = vsel %vm1820_vm6, %v2073_v16, %v2071_v12 }
 0x663   : >> { %2137 = vrot.lane.b32.xlu0 %v2136_v17, %s4929_s16  ;;  %v2075_v19 = vpack.c.b16 %v2074_v18, %v2074_v18 }
 0x665   : >> { %2076 = vrot.lane.b32.xlu1 %v2075_v19, %s4929_s16 }
 0x6d5   : >> { %v2138_v20 = vpop.permute.xlu0 %2137 }
 0x6d6   : >> { %4240 = vmatmul.mubr.msk.bf16.vlgmr.msra.gmra.mrb[4].mxu1 %vm989_vm5, %v2138_v20 }
 0x6d7   : >> { %4252 = vmatpush3.bf16.msra.mxu1 %v5345_v6  ;;  %4255 = vmatprep.mubr.msk.bf16.mxu1 %vm4928_vm7, %v4927_v11  ;;  %v2077_v21 = vpop.permute.xlu1 %2076 }
 0x6d8   : >> { %4253 = vmatprep.subr.bf16.mxu1 %v4927_v11  ;;  %4232 = vmatmul.mubr.msk.bf16.vlgmr.msra.gmra.mrb[4].mxu0 %vm989_vm5, %v2077_v21 }
 0x6d9   : >> { %4244 = vmatpush3.bf16.msra.mxu0 %v5349_v7  ;;  %4247 = vmatprep.mubr.msk.bf16.mxu0 %vm4928_vm7, %v4927_v11 }
 0x6da   : >> { %4245 = vmatprep.subr.bf16.mxu0 %v4927_v11 }
 0x6db   : >> { %4254 = vmatpush3.bf16.msra.mxu1 %v5357_v13 }
 0x6dc   : >> { %4267 = vmatprep.subr.bf16.mxu1 %v4927_v11 }
 0x6dd   : >> { %4246 = vmatpush3.bf16.msra.mxu0 %v5361_v14 }
 0x6de   : >> { %4259 = vmatprep.subr.bf16.mxu0 %v4927_v11 }
 0x7a9   : >> { %v2176_v22 = vpop.f32.mrb[4].mxu1 }
 0x7aa   : >> { %v2183_v23 = vrot.slane %v2176_v22, 2  ;;  %v2184_v25 = vrot.slane %v2176_v22, 3  ;;  %v4241_v27 = vpop.f32.mrb[5].mxu1 }
 0x7ab   : >> { %v2179_v29 = vpop.f32.mrb[6].mxu1  ;;  %v2115_v34 = vpop.f32.mrb[4].mxu0 }
 0x7ac   : >> { %v2187_v30 = vadd.f32 %v2183_v23, %v5401_v24  ;;  %v2188_v33 = vadd.f32 %v2184_v25, %v5404_v31  ;;  %v4242_v35 = vpop.f32.mrb[7].mxu1  ;;  %v2122_v42 = vrot.slane %v2115_v34, 7  ;;  %v4233_v45 = vpop.f32.mrb[5].mxu0  ;;  %v2126_v61 = vadd.f32 %v2115_v34, %v5411_v43 }
 0x7ad   : >> { %v2118_v58 = vpop.f32.mrb[6].mxu0  ;;  %v2259_v29 = vrot.slane %v5428_v32, 1 }
 0x7ae   : >> { %4561 = vtanh.f32 %v2187_v30  ;;  %v4234_v47 = vpop.f32.mrb[7].mxu0  ;;  %v2125_v3 = vadd.f32 %v2122_v42, %v5414_v46  ;;  %v3953_v54 = vmul.f32 -1.442695, %v2187_v30  ;;  %v3954_v55 = vmul.f32 -1.442695, %v2188_v33 }
 0x7af   : >> { %4563 = vtanh.f32 %v2188_v33  ;;  %v3952_v59 = vmul.f32 -1.442695, %v2126_v61  ;;  %v2260_v30 = vrot.slane %v5433_v44, 1  ;;  %v2205_v47 = vrot.slane %v5438_v49, 7 }
 0x7b0   : >> { %4565 = vtanh.f32 %v2125_v3  ;;  %v3951_v57 = vmul.f32 -1.442695, %v2125_v3  ;;  %v2206_v3 = vrot.slane %v5436_v48, 7 }
 0x7b1   : >> { %4567 = vtanh.f32 %v2126_v61 }
 0x7b2   : >> { %4569 = vpow2.f32 %v3953_v54 }
 0x7b3   : >> { %4571 = vpow2.f32 %v3954_v55 }
 0x7b4   : >> { %4573 = vpow2.f32 %v3951_v57 }
 0x7b5   : >> { %4575 = vpow2.f32 %v3952_v59 }
 0x7b8   : >> { %v4562_v62 = vpop.eup %4561 }
 0x7b9   : >> { %v4564_v50 = vpop.eup %4563  ;;  %2267 = vrot.lane.b32.xlu0 %v4562_v62, %s4930_s9 }
 0x7ba   : >> { %2269 = vrot.lane.b32.xlu1 %v4564_v50, %s4930_s9  ;;  %v4566_v51 = vpop.eup %4565 }
 0x7bb   : >> { %v4568_v52 = vpop.eup %4567 }
 0x7bc   : >> { %v4570_v60 = vpop.eup %4569 }
 0x7bd   : >> { %2213 = vrot.lane.b32.xlu0 %v4566_v51, %s4930_s9  ;;  %v4572_v0 = vpop.eup %4571  ;;  %v2249_v1 = vadd.f32 1.0, %v4570_v60 }
 0x7be   : >> { %2215 = vrot.lane.b32.xlu1 %v4568_v52, %s4930_s9  ;;  %v2250_v4 = vadd.f32 1.0, %v4572_v0  ;;  %v4574_v5 = vpop.eup %4573 }
 0x7bf   : >> { %v4576_v8 = vpop.eup %4575  ;;  %4577 = vrcp.f32 %v2249_v1  ;;  %v2195_v9 = vadd.f32 1.0, %v4574_v5 }
 0x7c0   : >> { %4579 = vrcp.f32 %v2250_v4  ;;  %v2196_v10 = vadd.f32 1.0, %v4576_v8 }
 0x7c1   : >> { %4581 = vrcp.f32 %v2195_v9 }
 0x7c2   : >> { %4583 = vrcp.f32 %v2196_v10 }
 0x7c9   : >> { %v4578_v12 = vpop.eup %4577 }
 0x7ca   : >> { %v4580_v16 = vpop.eup %4579  ;;  %v2263_v33 = vmul.f32 %v4578_v12, %v2259_v29 }
 0x7cb   : >> { %v4582_v20 = vpop.eup %4581  ;;  %v2264_v35 = vmul.f32 %v4580_v16, %v2260_v30 }
 0x7cc   : >> { %v4584_v22 = vpop.eup %4583  ;;  %v2209_v61 = vmul.f32 %v4582_v20, %v2205_v47 }
 0x7cd   : >> { %v2210_v62 = vmul.f32 %v4584_v22, %v2206_v3 }
 0x82b   : >> { %v2268_v15 = vpop.permute.xlu0 %2267 }
 0x82c   : >> { %v2273_v17 = vmul.f32 %v4578_v12, %v2268_v15  ;;  %v2270_v18 = vpop.permute.xlu1 %2269 }
 0x82d   : >> { %v2274_v19 = vmul.f32 %v4580_v16, %v2270_v18 }
 0x82e   : >> { %2277 = vrot.lane.b32.xlu0 %v2273_v17, %s4929_s16 }
 0x82f   : >> { %2279 = vrot.lane.b32.xlu1 %v2274_v19, %s4929_s16  ;;  %v2214_v21 = vpop.permute.xlu0 %2213 }
 0x830   : >> { %v2219_v23 = vmul.f32 %v4582_v20, %v2214_v21  ;;  %v2216_v25 = vpop.permute.xlu1 %2215 }
 0x831   : >> { %v2220_v27 = vmul.f32 %v4584_v22, %v2216_v25 }
 0x832   : >> { %2223 = vrot.lane.b32.xlu0 %v2219_v23, %s4929_s16 }
 0x833   : >> { %2225 = vrot.lane.b32.xlu1 %v2220_v27, %s4929_s16 }
 0x8a0   : >> { %v2278_v34 = vpop.permute.xlu0 %2277 }
 0x8a1   : >> { %v5494_v42 = vadd.f32 %v2278_v34, %v2263_v33  ;;  %v2280_v45 = vpop.permute.xlu1 %2279 }
 0x8a2   : >> { %v5496_v58 = vadd.f32 %v2280_v45, %v2264_v35 }
 0x8a3   : >> { %4585 = vtanh.f32 %v5494_v42 }
 0x8a4   : >> { %4587 = vtanh.f32 %v5496_v58  ;;  %v2224_v32 = vpop.permute.xlu0 %2223 }
 0x8a5   : >> { %v5502_v44 = vadd.f32 %v2224_v32, %v2209_v61  ;;  %v2226_v50 = vpop.permute.xlu1 %2225 }
 0x8a6   : >> { %v5504_v51 = vadd.f32 %v2226_v50, %v2210_v62 }
 0x8a7   : >> { %4589 = vtanh.f32 %v5502_v44 }
 0x8a8   : >> { %4591 = vtanh.f32 %v5504_v51 }
 0x8ad   : >> { %v4586_v52 = vpop.eup %4585 }
 0x8ae   : >> { %v4588_v49 = vpop.eup %4587  ;;  %2289 = vrot.lane.b32.xlu0 %v4586_v52, %s4930_s9 }
 0x8af   : >> { %2291 = vrot.lane.b32.xlu1 %v4588_v49, %s4930_s9 }
 0x8b1   : >> { %v4590_v48 = vpop.eup %4589 }
 0x8b2   : >> { %v4592_v54 = vpop.eup %4591  ;;  %2235 = vrot.lane.b32.xlu0 %v4590_v48, %s4930_s9 }
 0x8b3   : >> { %2237 = vrot.lane.b32.xlu1 %v4592_v54, %s4930_s9 }
 0x920   : >> { %v2290_v55 = vpop.permute.xlu0 %2289 }
 0x921   : >> { %v5512_v57 = vmul.f32 %v4578_v12, %v2290_v55  ;;  %v2292_v59 = vpop.permute.xlu1 %2291 }
 0x922   : >> { %v5514_v60 = vmul.f32 %v4580_v16, %v2292_v59 }
 0x923   : >> { %v2358_v0 = vpack.c.bf16 %v5512_v57, %v5512_v57 }
 0x924   : >> { %v2359_v1 = vpack.c.bf16 %v5514_v60, %v5514_v60  ;;  %v2236_v8 = vpop.permute.xlu0 %2235 }
 0x925   : >> { %v2362_v4 = vunpack.c.l.b16 %v2358_v0  ;;  %v5520_v10 = vmul.f32 %v4582_v20, %v2236_v8  ;;  %v2238_v15 = vpop.permute.xlu1 %2237 }
 0x926   : >> { %v2363_v5 = vunpack.c.l.b16 %v2359_v1  ;;  %v5522_v18 = vmul.f32 %v4584_v22, %v2238_v15 }
 0x927   : >> { %v2364_v9 = vrot.slane %v2362_v4, 6  ;;  %v2297_v12 = vpack.c.bf16 %v5520_v10, %v5520_v10 }
 0x928   : >> { %v2365_v17 = vrot.slane %v2363_v5, 5  ;;  %v2298_v16 = vpack.c.bf16 %v5522_v18, %v5522_v18 }
 0x929   : >> { %v2301_v21 = vunpack.c.l.b16 %v2297_v12 }
 0x92a   : >> { %v2366_v19 = vsel %vm1820_vm6, %v2365_v17, %v2364_v9  ;;  %v2302_v27 = vunpack.c.l.b16 %v2298_v16 }
 0x92b   : >> { %v2367_v23 = vpack.c.b16 %v2366_v19, %v2366_v19  ;;  %v2303_v25 = vrot.slane %v2301_v21, 1 }
 0x92d   : >> { %2368 = vrot.lane.b32.xlu0 %v2367_v23, %s4929_s16  ;;  %v2304_v20 = vsel %vm1820_vm6, %v2302_v27, %v2303_v25 }
 0x92e   : >> { %v2305_v29 = vpack.c.b16 %v2304_v20, %v2304_v20 }
 0x930   : >> { %2306 = vrot.lane.b32.xlu1 %v2305_v29, %s4929_s16 }
 0x99f   : >> { %v2369_v22 = vpop.permute.xlu0 %2368 }
 0x9a0   : >> { %4256 = vmatmul.mubr.msk.bf16.vlgmr.msra.gmra.mrb[8].mxu1 %vm989_vm5, %v2369_v22 }
 0x9a1   : >> { %4268 = vmatpush3.bf16.msra.mxu1 %v5345_v6  ;;  %4271 = vmatprep.mubr.msk.bf16.mxu1 %vm4928_vm7, %v4927_v11 }
 0x9a2   : >> { %4269 = vmatprep.subr.bf16.mxu1 %v4927_v11  ;;  %v2307_v30 = vpop.permute.xlu1 %2306 }
 0x9a3   : >> { %4248 = vmatmul.mubr.msk.bf16.vlgmr.msra.gmra.mrb[8].mxu0 %vm989_vm5, %v2307_v30 }
 0x9a4   : >> { %4260 = vmatpush3.bf16.msra.mxu0 %v5349_v7  ;;  %4263 = vmatprep.mubr.msk.bf16.mxu0 %vm4928_vm7, %v4927_v11 }
 0x9a5   : >> { %4270 = vmatpush3.bf16.msra.mxu1 %v5357_v13  ;;  %4261 = vmatprep.subr.bf16.mxu0 %v4927_v11 }
 0x9a6   : >> { %4283 = vmatprep.subr.bf16.mxu1 %v4927_v11 }
 0x9a8   : >> { %4262 = vmatpush3.bf16.msra.mxu0 %v5361_v14 }
 0x9a9   : >> { %4275 = vmatprep.subr.bf16.mxu0 %v4927_v11 }
 0xa73   : >> { %v2407_v33 = vpop.f32.mrb[8].mxu1 }
 0xa74   : >> { %v2414_v34 = vrot.slane %v2407_v33, 3  ;;  %v2415_v35 = vrot.slane %v2407_v33, 4  ;;  %v4257_v45 = vpop.f32.mrb[9].mxu1 }
 0xa75   : >> { %v2410_v47 = vpop.f32.mrb[10].mxu1 }
 0xa76   : >> { %v2418_v3 = vadd.f32 %v2414_v34, %v5401_v24  ;;  %v2419_v61 = vadd.f32 %v2415_v35, %v5404_v31  ;;  %v4258_v32 = vpop.f32.mrb[11].mxu1  ;;  %v2345_v62 = vpop.f32.mrb[8].mxu0 }
 0xa77   : >> { %v2352_v50 = vrot.slane %v2345_v62, 6  ;;  %v2353_v52 = vrot.slane %v2345_v62, 7  ;;  %v4249_v49 = vpop.f32.mrb[9].mxu0 }
 0xa78   : >> { %4593 = vtanh.f32 %v2418_v3  ;;  %v2348_v48 = vpop.f32.mrb[10].mxu0  ;;  %v3959_v8 = vmul.f32 -1.442695, %v2418_v3  ;;  %v3960_v9 = vmul.f32 -1.442695, %v2419_v61 }
 0xa79   : >> { %4595 = vtanh.f32 %v2419_v61  ;;  %v2356_v54 = vadd.f32 %v2352_v50, %v5414_v46  ;;  %v2357_v55 = vadd.f32 %v2353_v52, %v5411_v43  ;;  %v4250_v59 = vpop.f32.mrb[11].mxu0  ;;  %v2490_v50 = vrot.slane %v5494_v42, 1 }
 0xa7a   : >> { %v2491_v52 = vrot.slane %v5496_v58, 1 }
 0xa7b   : >> { %4597 = vtanh.f32 %v2356_v54  ;;  %v3957_v15 = vmul.f32 -1.442695, %v2356_v54  ;;  %v3958_v17 = vmul.f32 -1.442695, %v2357_v55 }
 0xa7c   : >> { %4599 = vtanh.f32 %v2357_v55 }
 0xa7d   : >> { %4601 = vpow2.f32 %v3959_v8 }
 0xa7e   : >> { %4603 = vpow2.f32 %v3960_v9 }
 0xa7f   : >> { %4605 = vpow2.f32 %v3957_v15 }
 0xa80   : >> { %4607 = vpow2.f32 %v3958_v17 }
 0xa82   : >> { %v4594_v0 = vpop.eup %4593 }
 0xa83   : >> { %v4596_v1 = vpop.eup %4595  ;;  %2498 = vrot.lane.b32.xlu0 %v4594_v0, %s4930_s9  ;;  %v2436_v0 = vrot.slane %v5502_v44, 7 }
 0xa84   : >> { %2500 = vrot.lane.b32.xlu1 %v4596_v1, %s4930_s9 }
 0xa85   : >> { %v4598_v4 = vpop.eup %4597 }
 0xa86   : >> { %v4600_v5 = vpop.eup %4599 }
 0xa87   : >> { %2444 = vrot.lane.b32.xlu0 %v4598_v4, %s4930_s9  ;;  %v4602_v12 = vpop.eup %4601  ;;  %v2437_v4 = vrot.slane %v5504_v51, 7 }
 0xa88   : >> { %2446 = vrot.lane.b32.xlu1 %v4600_v5, %s4930_s9  ;;  %v4604_v16 = vpop.eup %4603  ;;  %v2480_v19 = vadd.f32 1.0, %v4602_v12 }
 0xa89   : >> { %v2481_v21 = vadd.f32 1.0, %v4604_v16  ;;  %v4606_v23 = vpop.eup %4605 }
 0xa8a   : >> { %v4608_v25 = vpop.eup %4607  ;;  %4609 = vrcp.f32 %v2480_v19  ;;  %v2426_v27 = vadd.f32 1.0, %v4606_v23 }
 0xa8b   : >> { %4611 = vrcp.f32 %v2481_v21  ;;  %v2427_v20 = vadd.f32 1.0, %v4608_v25 }
 0xa8c   : >> { %4613 = vrcp.f32 %v2426_v27 }
 0xa8d   : >> { %4615 = vrcp.f32 %v2427_v20 }
 0xa94   : >> { %v4610_v29 = vpop.eup %4609 }
 0xa95   : >> { %v4612_v30 = vpop.eup %4611  ;;  %v2494_v49 = vmul.f32 %v4610_v29, %v2490_v50 }
 0xa96   : >> { %v4614_v45 = vpop.eup %4613  ;;  %v2495_v54 = vmul.f32 %v4612_v30, %v2491_v52 }
 0xa97   : >> { %v4616_v3 = vpop.eup %4615  ;;  %v2440_v5 = vmul.f32 %v4614_v45, %v2436_v0 }
 0xa98   : >> { %v2441_v8 = vmul.f32 %v4616_v3, %v2437_v4 }
 0xaf5   : >> { %v2499_v22 = vpop.permute.xlu0 %2498 }
 0xaf6   : >> { %v2504_v33 = vmul.f32 %v4610_v29, %v2499_v22  ;;  %v2501_v34 = vpop.permute.xlu1 %2500 }
 0xaf7   : >> { %v2505_v35 = vmul.f32 %v4612_v30, %v2501_v34 }
 0xaf8   : >> { %2508 = vrot.lane.b32.xlu0 %v2504_v33, %s4929_s16 }
 0xaf9   : >> { %2510 = vrot.lane.b32.xlu1 %v2505_v35, %s4929_s16  ;;  %v2445_v47 = vpop.permute.xlu0 %2444 }
 0xafa   : >> { %v2450_v61 = vmul.f32 %v4614_v45, %v2445_v47  ;;  %v2447_v32 = vpop.permute.xlu1 %2446  ;;  %v3685_v47 = vsel %vm341_vm0, %v5456_v2, %v5520_v10 }
 0xafb   : >> { %v2451_v62 = vmul.f32 %v4616_v3, %v2447_v32 }
 0xafc   : >> { %2454 = vrot.lane.b32.xlu0 %v2450_v61, %s4929_s16 }
 0xafd   : >> { %2456 = vrot.lane.b32.xlu1 %v2451_v62, %s4929_s16 }
 0xb6a   : >> { %v2509_v48 = vpop.permute.xlu0 %2508 }
 0xb6b   : >> { %v5560_v55 = vadd.f32 %v2509_v48, %v2494_v49  ;;  %v2511_v59 = vpop.permute.xlu1 %2510 }
 0xb6c   : >> { %v5563_v1 = vadd.f32 %v2511_v59, %v2495_v54 }
 0xb6d   : >> { %4617 = vtanh.f32 %v5560_v55 }
 0xb6e   : >> { %4619 = vtanh.f32 %v5563_v1  ;;  %v2455_v42 = vpop.permute.xlu0 %2454 }
 0xb6f   : >> { %v5568_v58 = vadd.f32 %v2455_v42, %v2440_v5  ;;  %v2457_v9 = vpop.permute.xlu1 %2456 }
 0xb70   : >> { %v5570_v15 = vadd.f32 %v2457_v9, %v2441_v8 }
 0xb71   : >> { %4621 = vtanh.f32 %v5568_v58 }
 0xb72   : >> { %4623 = vtanh.f32 %v5570_v15 }
 0xb77   : >> { %v4618_v44 = vpop.eup %4617 }
 0xb78   : >> { %v4620_v17 = vpop.eup %4619  ;;  %2520 = vrot.lane.b32.xlu0 %v4618_v44, %s4930_s9 }
 0xb79   : >> { %2522 = vrot.lane.b32.xlu1 %v4620_v17, %s4930_s9 }
 0xb7b   : >> { %v4622_v51 = vpop.eup %4621 }
 0xb7c   : >> { %v4624_v12 = vpop.eup %4623  ;;  %2466 = vrot.lane.b32.xlu0 %v4622_v51, %s4930_s9 }
 0xb7d   : >> { %2468 = vrot.lane.b32.xlu1 %v4624_v12, %s4930_s9 }
 0xbea   : >> { %v2521_v16 = vpop.permute.xlu0 %2520 }
 0xbeb   : >> { %v5578_v19 = vmul.f32 %v4610_v29, %v2521_v16  ;;  %v2523_v21 = vpop.permute.xlu1 %2522 }
 0xbec   : >> { %v5580_v23 = vmul.f32 %v4612_v30, %v2523_v21  ;;  %v3686_v30 = vsel %vm341_vm0, %v5454_v63, %v5522_v18 }
 0xbed   : >> { %v2590_v25 = vpack.c.bf16 %v5578_v19, %v5578_v19 }
 0xbee   : >> { %v2591_v27 = vpack.c.bf16 %v5580_v23, %v5580_v23  ;;  %v2467_v22 = vpop.permute.xlu0 %2466 }
 0xbef   : >> { %v2594_v20 = vunpack.c.l.b16 %v2590_v25  ;;  %v2472_v34 = vmul.f32 %v4614_v45, %v2467_v22  ;;  %v2469_v35 = vpop.permute.xlu1 %2468 }
 0xbf0   : >> { %v2595_v33 = vunpack.c.l.b16 %v2591_v27  ;;  %v2473_v61 = vmul.f32 %v4616_v3, %v2469_v35 }
 0xbf1   : >> { %v2596_v29 = vrot.slane %v2594_v20, 5  ;;  %v2528_v62 = vpack.c.bf16 %v2472_v34, %v2472_v34  ;;  %v5593_v50 = vsel %vm342_vm1, %v3685_v47, %v2472_v34 }
 0xbf2   : >> { %v2597_v32 = vrot.slane %v2595_v33, 4  ;;  %v2529_v52 = vpack.c.bf16 %v2473_v61, %v2473_v61  ;;  %v5596_v49 = vsel %vm342_vm1, %v3686_v30, %v2473_v61 }
 0xbf3   : >> { %v2532_v45 = vunpack.c.l.b16 %v2528_v62 }
 0xbf4   : >> { %v2598_v48 = vsel %vm1820_vm6, %v2597_v32, %v2596_v29  ;;  %v2533_v54 = vunpack.c.l.b16 %v2529_v52 }
 0xbf5   : >> { %v2599_v2 = vpack.c.b16 %v2598_v48, %v2598_v48  ;;  %v2534_v10 = vrot.slane %v2532_v45, 2 }
 0xbf6   : >> { %v2535_v3 = vrot.slane %v2533_v54, 1 }
 0xbf7   : >> { %2600 = vrot.lane.b32.xlu0 %v2599_v2, %s4929_s16 }
 0xbf8   : >> { %v2536_v63 = vsel %vm1820_vm6, %v2535_v3, %v2534_v10 }
 0xbf9   : >> { %v2537_v18 = vpack.c.b16 %v2536_v63, %v2536_v63 }
 0xbfb   : >> { %2538 = vrot.lane.b32.xlu1 %v2537_v18, %s4929_s16 }
 0xc69   : >> { %v2601_v59 = vpop.permute.xlu0 %2600 }
 0xc6a   : >> { %4272 = vmatmul.mubr.msk.bf16.vlgmr.msra.gmra.mrb[12].mxu1 %vm989_vm5, %v2601_v59 }
 0xc6b   : >> { %4284 = vmatpush3.bf16.msra.mxu1 %v5345_v6  ;;  %4287 = vmatprep.mubr.msk.bf16.mxu1 %vm4928_vm7, %v4927_v11 }
 0xc6c   : >> { %4285 = vmatprep.subr.bf16.mxu1 %v4927_v11 }
 0xc6d   : >> { %v2539_v0 = vpop.permute.xlu1 %2538 }
 0xc6e   : >> { %4264 = vmatmul.mubr.msk.bf16.vlgmr.msra.gmra.mrb[12].mxu0 %vm989_vm5, %v2539_v0 }
 0xc6f   : >> { %4286 = vmatpush3.bf16.msra.mxu1 %v5357_v13  ;;  %4276 = vmatpush3.bf16.msra.mxu0 %v5349_v7 }
 0xc70   : >> { %4279 = vmatprep.mubr.msk.bf16.mxu0 %vm4928_vm7, %v4927_v11  ;;  %4277 = vmatprep.subr.bf16.mxu0 %v4927_v11 }
 0xc71   : >> { %4299 = vmatprep.subr.bf16.mxu1 %v4927_v11 }
 0xc73   : >> { %4278 = vmatpush3.bf16.msra.mxu0 %v5361_v14 }
 0xc74   : >> { %4291 = vmatprep.subr.bf16.mxu0 %v4927_v11 }
 0xd3d   : >> { %v2639_v4 = vpop.f32.mrb[12].mxu1 }
 0xd3e   : >> { %v2646_v5 = vrot.slane %v2639_v4, 4  ;;  %v2647_v42 = vrot.slane %v2639_v4, 5  ;;  %v4273_v8 = vpop.f32.mrb[13].mxu1 }
 0xd3f   : >> { %v2642_v9 = vpop.f32.mrb[14].mxu1 }
 0xd40   : >> { %v2650_v44 = vadd.f32 %v2646_v5, %v5401_v24  ;;  %v2651_v17 = vadd.f32 %v2647_v42, %v5404_v31  ;;  %v4274_v51 = vpop.f32.mrb[15].mxu1 }
 0xd41   : >> { %v2577_v12 = vpop.f32.mrb[12].mxu0 }
 0xd42   : >> { %4625 = vtanh.f32 %v2650_v44  ;;  %v2584_v16 = vrot.slane %v2577_v12, 5  ;;  %v2585_v21 = vrot.slane %v2577_v12, 6  ;;  %v4265_v25 = vpop.f32.mrb[13].mxu0  ;;  %v3965_v47 = vmul.f32 -1.442695, %v2650_v44 }
 0xd43   : >> { %4627 = vtanh.f32 %v2651_v17  ;;  %v2580_v27 = vpop.f32.mrb[14].mxu0  ;;  %v3966_v29 = vmul.f32 -1.442695, %v2651_v17  ;;  %v2722_v44 = vrot.slane %v5560_v55, 1  ;;  %v2723_v17 = vrot.slane %v5563_v1, 1 }
 0xd44   : >> { %v2588_v20 = vadd.f32 %v2584_v16, %v5414_v46  ;;  %v2589_v22 = vadd.f32 %v2585_v21, %v5411_v43  ;;  %v4266_v33 = vpop.f32.mrb[15].mxu0  ;;  %v2668_v27 = vrot.slane %v5568_v58, 7 }
 0xd46   : >> { %4629 = vtanh.f32 %v2588_v20  ;;  %v3963_v43 = vmul.f32 -1.442695, %v2588_v20  ;;  %v3964_v46 = vmul.f32 -1.442695, %v2589_v22 }
 0xd47   : >> { %4631 = vtanh.f32 %v2589_v22  ;;  %v2669_v22 = vrot.slane %v5570_v15, 7 }
 0xd48   : >> { %4633 = vpow2.f32 %v3965_v47 }
 0xd49   : >> { %4635 = vpow2.f32 %v3966_v29 }
 0xd4a   : >> { %4637 = vpow2.f32 %v3963_v43 }
 0xd4b   : >> { %4639 = vpow2.f32 %v3964_v46 }
 0xd4c   : >> { %v4626_v34 = vpop.eup %4625 }
 0xd4d   : >> { %v4628_v35 = vpop.eup %4627  ;;  %2730 = vrot.lane.b32.xlu0 %v4626_v34, %s4930_s9 }
 0xd4e   : >> { %2732 = vrot.lane.b32.xlu1 %v4628_v35, %s4930_s9 }
 0xd50   : >> { %v4630_v24 = vpop.eup %4629 }
 0xd51   : >> { %v4632_v31 = vpop.eup %4631  ;;  %2676 = vrot.lane.b32.xlu0 %v4630_v24, %s4930_s9 }
 0xd52   : >> { %2678 = vrot.lane.b32.xlu1 %v4632_v31, %s4930_s9  ;;  %v4634_v61 = vpop.eup %4633 }
 0xd53   : >> { %v4636_v30 = vpop.eup %4635  ;;  %v2712_v32 = vadd.f32 1.0, %v4634_v61 }
 0xd54   : >> { %v2713_v62 = vadd.f32 1.0, %v4636_v30  ;;  %v4638_v52 = vpop.eup %4637 }
 0xd55   : >> { %v4640_v45 = vpop.eup %4639  ;;  %4641 = vrcp.f32 %v2712_v32  ;;  %v2658_v48 = vadd.f32 1.0, %v4638_v52 }
 0xd56   : >> { %4643 = vrcp.f32 %v2713_v62  ;;  %v2659_v54 = vadd.f32 1.0, %v4640_v45 }
 0xd57   : >> { %4645 = vrcp.f32 %v2658_v48 }
 0xd58   : >> { %4647 = vrcp.f32 %v2659_v54 }
 0xd5f   : >> { %v4642_v2 = vpop.eup %4641 }
 0xd60   : >> { %v4644_v3 = vpop.eup %4643  ;;  %v2726_v51 = vmul.f32 %v4642_v2, %v2722_v44 }
 0xd61   : >> { %v4646_v0 = vpop.eup %4645  ;;  %v2727_v16 = vmul.f32 %v4644_v3, %v2723_v17 }
 0xd62   : >> { %v4648_v5 = vpop.eup %4647  ;;  %v2672_v33 = vmul.f32 %v4646_v0, %v2668_v27 }
 0xd63   : >> { %v2673_v34 = vmul.f32 %v4648_v5, %v2669_v22 }
 0xdbf   : >> { %v2731_v10 = vpop.permute.xlu0 %2730 }
 0xdc0   : >> { %v2736_v63 = vmul.f32 %v4642_v2, %v2731_v10  ;;  %v2733_v18 = vpop.permute.xlu1 %2732 }
 0xdc1   : >> { %v2737_v59 = vmul.f32 %v4644_v3, %v2733_v18 }
 0xdc2   : >> { %2740 = vrot.lane.b32.xlu0 %v2736_v63, %s4929_s16 }
 0xdc3   : >> { %2742 = vrot.lane.b32.xlu1 %v2737_v59, %s4929_s16  ;;  %v2677_v4 = vpop.permute.xlu0 %2676 }
 0xdc4   : >> { %v2682_v42 = vmul.f32 %v4646_v0, %v2677_v4  ;;  %v2679_v8 = vpop.permute.xlu1 %2678 }
 0xdc5   : >> { %v2683_v9 = vmul.f32 %v4648_v5, %v2679_v8 }
 0xdc6   : >> { %2686 = vrot.lane.b32.xlu0 %v2682_v42, %s4929_s16 }
 0xdc7   : >> { %2688 = vrot.lane.b32.xlu1 %v2683_v9, %s4929_s16 }
 0xe34   : >> { %v2741_v12 = vpop.permute.xlu0 %2740 }
 0xe35   : >> { %v5630_v21 = vadd.f32 %v2741_v12, %v2726_v51  ;;  %v2743_v25 = vpop.permute.xlu1 %2742 }
 0xe36   : >> { %v5633_v20 = vadd.f32 %v2743_v25, %v2727_v16 }
 0xe37   : >> { %4649 = vtanh.f32 %v5630_v21 }
 0xe38   : >> { %4651 = vtanh.f32 %v5633_v20  ;;  %v2687_v55 = vpop.permute.xlu0 %2686 }
 0xe39   : >> { %v5638_v1 = vadd.f32 %v2687_v55, %v2672_v33  ;;  %v2689_v35 = vpop.permute.xlu1 %2688  ;;  %v5683_v33 = vld [vmem:[%s5398_s29 + $0x8] sm:$0xff] }
 0xe3a   : >> { %v5640_v24 = vadd.f32 %v2689_v35, %v2673_v34  ;;  %v5687_v34 = vld [vmem:[%s5398_s29 + $0x48] sm:$0xff] }
 0xe3b   : >> { %4653 = vtanh.f32 %v5638_v1 }
 0xe3c   : >> { %4655 = vtanh.f32 %v5640_v24 }
 0xe41   : >> { %v4650_v58 = vpop.eup %4649 }
 0xe42   : >> { %v4652_v31 = vpop.eup %4651  ;;  %2752 = vrot.lane.b32.xlu0 %v4650_v58, %s4930_s9 }
 0xe43   : >> { %2754 = vrot.lane.b32.xlu1 %v4652_v31, %s4930_s9 }
 0xe45   : >> { %v4654_v15 = vpop.eup %4653 }
 0xe46   : >> { %v4656_v47 = vpop.eup %4655  ;;  %2698 = vrot.lane.b32.xlu0 %v4654_v15, %s4930_s9 }
 0xe47   : >> { %2700 = vrot.lane.b32.xlu1 %v4656_v47, %s4930_s9 }
 0xeb4   : >> { %v2753_v29 = vpop.permute.xlu0 %2752 }
 0xeb5   : >> { %v5648_v43 = vmul.f32 %v4642_v2, %v2753_v29  ;;  %v2755_v46 = vpop.permute.xlu1 %2754 }
 0xeb6   : >> { %v5650_v61 = vmul.f32 %v4644_v3, %v2755_v46 }
 0xeb7   : >> { %v2822_v30 = vpack.c.bf16 %v5648_v43, %v5648_v43 }
 0xeb8   : >> { %v2823_v32 = vpack.c.bf16 %v5650_v61, %v5650_v61  ;;  %v2699_v52 = vpop.permute.xlu0 %2698 }
 0xeb9   : >> { %v2826_v62 = vunpack.c.l.b16 %v2822_v30  ;;  %v2704_v48 = vmul.f32 %v4646_v0, %v2699_v52  ;;  %v2701_v54 = vpop.permute.xlu1 %2700  ;;  %v5691_v30 = vld [vmem:[%s5408_s8] sm:$0xff] }
 0xeba   : >> { %v2827_v45 = vunpack.c.l.b16 %v2823_v32  ;;  %v2705_v63 = vmul.f32 %v4648_v5, %v2701_v54 }
 0xebb   : >> { %v2828_v10 = vrot.slane %v2826_v62, 4  ;;  %v2760_v2 = vpack.c.bf16 %v2704_v48, %v2704_v48  ;;  %v5658_v3 = vsel %vm3689_vm8, %v5593_v50, %v2704_v48  ;;  %v5695_v62 = vld [vmem:[%s5408_s8 + $0x40] sm:$0xff] }
 0xebc   : >> { %v2829_v18 = vrot.slane %v2827_v45, 3  ;;  %v2761_v59 = vpack.c.bf16 %v2705_v63, %v2705_v63  ;;  %v5662_v4 = vsel %vm3689_vm8, %v5596_v49, %v2705_v63 }
 0xebd   : >> { %v2764_v42 = vunpack.c.l.b16 %v2760_v2 }
 0xebe   : >> { %v2830_v8 = vsel %vm1820_vm6, %v2829_v18, %v2828_v10  ;;  %v2765_v9 = vunpack.c.l.b16 %v2761_v59 }
 0xebf   : >> { %v2831_v44 = vpack.c.b16 %v2830_v8, %v2830_v8  ;;  %v2766_v0 = vrot.slane %v2764_v42, 3 }
 0xec0   : >> { %v2767_v17 = vrot.slane %v2765_v9, 2 }
 0xec1   : >> { %2832 = vrot.lane.b32.xlu0 %v2831_v44, %s4929_s16 }
 0xec2   : >> { %v2768_v5 = vsel %vm1820_vm6, %v2767_v17, %v2766_v0 }
 0xec3   : >> { %v2769_v51 = vpack.c.b16 %v2768_v5, %v2768_v5 }
 0xec5   : >> { %2770 = vrot.lane.b32.xlu1 %v2769_v51, %s4929_s16 }
 0xf33   : >> { %v2833_v50 = vpop.permute.xlu0 %2832 }
 0xf34   : >> { %4288 = vmatmul.mubr.msk.bf16.vlgmr.msra.gmra.mrb[16].mxu1 %vm989_vm5, %v2833_v50 }
 0xf35   : >> { %4300 = vmatpush3.bf16.msra.mxu1 %v5345_v6  ;;  %4303 = vmatprep.mubr.msk.bf16.mxu1 %vm4928_vm7, %v4927_v11 }
 0xf36   : >> { %4301 = vmatprep.subr.bf16.mxu1 %v4927_v11 }
 0xf37   : >> { %v2771_v49 = vpop.permute.xlu1 %2770 }
 0xf38   : >> { %4280 = vmatmul.mubr.msk.bf16.vlgmr.msra.gmra.mrb[16].mxu0 %vm989_vm5, %v2771_v49 }
 0xf39   : >> { %4302 = vmatpush3.bf16.msra.mxu1 %v5357_v13  ;;  %4292 = vmatpush3.bf16.msra.mxu0 %v5349_v7 }
 0xf3a   : >> { %4295 = vmatprep.mubr.msk.bf16.mxu0 %vm4928_vm7, %v4927_v11  ;;  %4293 = vmatprep.subr.bf16.mxu0 %v4927_v11 }
 0xf3b   : >> { %4315 = vmatprep.subr.bf16.mxu1 %v4927_v11 }
 0xf3d   : >> { %4294 = vmatpush3.bf16.msra.mxu0 %v5361_v14 }
 0xf3e   : >> { %4307 = vmatprep.subr.bf16.mxu0 %v4927_v11 }
0x1007   : >> { %v2871_v12 = vpop.f32.mrb[16].mxu1 }
0x1008   : >> { %v2878_v16 = vrot.slane %v2871_v12, 5  ;;  %v2879_v25 = vrot.slane %v2871_v12, 6  ;;  %v4289_v27 = vpop.f32.mrb[17].mxu1 }
0x1009   : >> { %v2874_v22 = vpop.f32.mrb[18].mxu1 }
0x100a   : >> { %v2882_v55 = vadd.f32 %v5683_v33, %v2878_v16  ;;  %v2883_v35 = vadd.f32 %v5687_v34, %v2879_v25  ;;  %v4290_v58 = vpop.f32.mrb[19].mxu1 }
0x100b   : >> { %v2809_v31 = vpop.f32.mrb[16].mxu0 }
0x100c   : >> { %4657 = vtanh.f32 %v2882_v55  ;;  %v2816_v15 = vrot.slane %v2809_v31, 4  ;;  %v2817_v47 = vrot.slane %v2809_v31, 5  ;;  %v4281_v29 = vpop.f32.mrb[17].mxu0  ;;  %v3971_v18 = vmul.f32 -1.442695, %v2882_v55 }
0x100d   : >> { %4659 = vtanh.f32 %v2883_v35  ;;  %v2812_v46 = vpop.f32.mrb[18].mxu0  ;;  %v3972_v2 = vmul.f32 -1.442695, %v2883_v35  ;;  %v2954_v29 = vrot.slane %v5630_v21, 1 }
0x100e   : >> { %v2820_v32 = vadd.f32 %v5691_v30, %v2816_v15  ;;  %v2821_v52 = vadd.f32 %v5695_v62, %v2817_v47  ;;  %v4282_v45 = vpop.f32.mrb[19].mxu0  ;;  %v2955_v46 = vrot.slane %v5633_v20, 1 }
0x1010   : >> { %4661 = vtanh.f32 %v2820_v32  ;;  %v3969_v59 = vmul.f32 -1.442695, %v2820_v32  ;;  %v3970_v42 = vmul.f32 -1.442695, %v2821_v52 }
0x1011   : >> { %4663 = vtanh.f32 %v2821_v52 }
0x1012   : >> { %4665 = vpow2.f32 %v3971_v18  ;;  %v2901_v18 = vrot.slane %v5640_v24, 7 }
0x1013   : >> { %4667 = vpow2.f32 %v3972_v2 }
0x1014   : >> { %4669 = vpow2.f32 %v3969_v59 }
0x1015   : >> { %4671 = vpow2.f32 %v3970_v42 }
0x1016   : >> { %v4658_v48 = vpop.eup %4657 }
0x1017   : >> { %v4660_v54 = vpop.eup %4659  ;;  %2962 = vrot.lane.b32.xlu0 %v4658_v48, %s4930_s9 }
0x1018   : >> { %2964 = vrot.lane.b32.xlu1 %v4660_v54, %s4930_s9 }
0x101a   : >> { %v4662_v10 = vpop.eup %4661 }
0x101b   : >> { %v4664_v63 = vpop.eup %4663  ;;  %2908 = vrot.lane.b32.xlu0 %v4662_v10, %s4930_s9  ;;  %v2900_v10 = vrot.slane %v5638_v1, 7 }
0x101c   : >> { %2910 = vrot.lane.b32.xlu1 %v4664_v63, %s4930_s9  ;;  %v4666_v8 = vpop.eup %4665 }
0x101d   : >> { %v4668_v9 = vpop.eup %4667  ;;  %v2944_v44 = vadd.f32 1.0, %v4666_v8 }
0x101e   : >> { %v2945_v0 = vadd.f32 1.0, %v4668_v9  ;;  %v4670_v17 = vpop.eup %4669 }
0x101f   : >> { %v4672_v5 = vpop.eup %4671  ;;  %4673 = vrcp.f32 %v2944_v44  ;;  %v2890_v51 = vadd.f32 1.0, %v4670_v17 }
0x1020   : >> { %4675 = vrcp.f32 %v2945_v0  ;;  %v2891_v50 = vadd.f32 1.0, %v4672_v5 }
0x1021   : >> { %4677 = vrcp.f32 %v2890_v51 }
0x1022   : >> { %4679 = vrcp.f32 %v2891_v50 }
0x1029   : >> { %v4674_v49 = vpop.eup %4673 }
0x102a   : >> { %v4676_v16 = vpop.eup %4675  ;;  %v2958_v32 = vmul.f32 %v4674_v49, %v2954_v29 }
0x102b   : >> { %v4678_v55 = vpop.eup %4677  ;;  %v2959_v45 = vmul.f32 %v4676_v16, %v2955_v46 }
0x102c   : >> { %v4680_v58 = vpop.eup %4679  ;;  %v2904_v2 = vmul.f32 %v4678_v55, %v2900_v10 }
0x102d   : >> { %v2905_v59 = vmul.f32 %v4680_v58, %v2901_v18 }
0x1089   : >> { %v2963_v12 = vpop.permute.xlu0 %2962 }
0x108a   : >> { %v2968_v25 = vmul.f32 %v4674_v49, %v2963_v12  ;;  %v2965_v27 = vpop.permute.xlu1 %2964 }
0x108b   : >> { %v2969_v22 = vmul.f32 %v4676_v16, %v2965_v27 }
0x108c   : >> { %2972 = vrot.lane.b32.xlu0 %v2968_v25, %s4929_s16 }
0x108d   : >> { %2974 = vrot.lane.b32.xlu1 %v2969_v22, %s4929_s16  ;;  %v2909_v35 = vpop.permute.xlu0 %2908 }
0x108e   : >> { %v2914_v31 = vmul.f32 %v4678_v55, %v2909_v35  ;;  %v2911_v15 = vpop.permute.xlu1 %2910 }
0x108f   : >> { %v2915_v47 = vmul.f32 %v4680_v58, %v2911_v15 }
0x1090   : >> { %2918 = vrot.lane.b32.xlu0 %v2914_v31, %s4929_s16 }
0x1091   : >> { %2920 = vrot.lane.b32.xlu1 %v2915_v47, %s4929_s16 }
0x10fe   : >> { %v2973_v52 = vpop.permute.xlu0 %2972 }
0x10ff   : >> { %v5708_v48 = vadd.f32 %v2973_v52, %v2958_v32  ;;  %v2975_v54 = vpop.permute.xlu1 %2974 }
0x1100   : >> { %v5711_v63 = vadd.f32 %v2975_v54, %v2959_v45 }
0x1101   : >> { %4681 = vtanh.f32 %v5708_v48 }
0x1102   : >> { %4683 = vtanh.f32 %v5711_v63  ;;  %v2919_v21 = vpop.permute.xlu0 %2918 }
0x1103   : >> { %v5716_v20 = vadd.f32 %v2919_v21, %v2904_v2  ;;  %v2921_v42 = vpop.permute.xlu1 %2920 }
0x1104   : >> { %v5718_v8 = vadd.f32 %v2921_v42, %v2905_v59 }
0x1105   : >> { %4685 = vtanh.f32 %v5716_v20 }
0x1106   : >> { %4687 = vtanh.f32 %v5718_v8 }
0x110b   : >> { %v4682_v1 = vpop.eup %4681 }
0x110c   : >> { %v4684_v9 = vpop.eup %4683  ;;  %2984 = vrot.lane.b32.xlu0 %v4682_v1, %s4930_s9 }
0x110d   : >> { %2986 = vrot.lane.b32.xlu1 %v4684_v9, %s4930_s9 }
0x110f   : >> { %v4686_v24 = vpop.eup %4685 }
0x1110   : >> { %v4688_v44 = vpop.eup %4687  ;;  %2930 = vrot.lane.b32.xlu0 %v4686_v24, %s4930_s9 }
0x1111   : >> { %2932 = vrot.lane.b32.xlu1 %v4688_v44, %s4930_s9 }
0x117e   : >> { %v2985_v0 = vpop.permute.xlu0 %2984 }
0x117f   : >> { %v5726_v17 = vmul.f32 %v4674_v49, %v2985_v0  ;;  %v2987_v5 = vpop.permute.xlu1 %2986 }
0x1180   : >> { %v5728_v51 = vmul.f32 %v4676_v16, %v2987_v5 }
0x1181   : >> { %v3054_v50 = vpack.c.bf16 %v5726_v17, %v5726_v17 }
0x1182   : >> { %v3055_v12 = vpack.c.bf16 %v5728_v51, %v5728_v51  ;;  %v2931_v27 = vpop.permute.xlu0 %2930 }
0x1183   : >> { %v3058_v25 = vunpack.c.l.b16 %v3054_v50  ;;  %v2936_v35 = vmul.f32 %v4678_v55, %v2931_v27  ;;  %v2933_v31 = vpop.permute.xlu1 %2932 }
0x1184   : >> { %v3059_v22 = vunpack.c.l.b16 %v3055_v12  ;;  %v2937_v47 = vmul.f32 %v4680_v58, %v2933_v31 }
0x1185   : >> { %v3060_v15 = vrot.slane %v3058_v25, 3  ;;  %v2992_v49 = vpack.c.bf16 %v2936_v35, %v2936_v35  ;;  %v5736_v16 = vsel %vm3692_vm9, %v5658_v3, %v2936_v35 }
0x1186   : >> { %v3061_v29 = vrot.slane %v3059_v22, 2  ;;  %v2993_v46 = vpack.c.bf16 %v2937_v47, %v2937_v47  ;;  %v5740_v32 = vsel %vm3692_vm9, %v5662_v4, %v2937_v47 }
0x1187   : >> { %v2996_v52 = vunpack.c.l.b16 %v2992_v49 }
0x1188   : >> { %v3062_v45 = vsel %vm1820_vm6, %v3061_v29, %v3060_v15  ;;  %v2997_v54 = vunpack.c.l.b16 %v2993_v46 }
0x1189   : >> { %v3063_v10 = vpack.c.b16 %v3062_v45, %v3062_v45  ;;  %v2998_v55 = vrot.slane %v2996_v52, 4 }
0x118a   : >> { %v2999_v18 = vrot.slane %v2997_v54, 3 }
0x118b   : >> { %3064 = vrot.lane.b32.xlu0 %v3063_v10, %s4929_s16 }
0x118c   : >> { %v3000_v58 = vsel %vm1820_vm6, %v2999_v18, %v2998_v55 }
0x118d   : >> { %v3001_v2 = vpack.c.b16 %v3000_v58, %v3000_v58 }
0x118f   : >> { %3002 = vrot.lane.b32.xlu1 %v3001_v2, %s4929_s16 }
0x11fd   : >> { %v3065_v3 = vpop.permute.xlu0 %3064 }
0x11fe   : >> { %4304 = vmatmul.mubr.msk.bf16.vlgmr.msra.gmra.mrb[20].mxu1 %vm989_vm5, %v3065_v3 }
0x11ff   : >> { %4316 = vmatpush3.bf16.msra.mxu1 %v5345_v6  ;;  %4319 = vmatprep.mubr.msk.bf16.mxu1 %vm4928_vm7, %v4927_v11 }
0x1200   : >> { %4317 = vmatprep.subr.bf16.mxu1 %v4927_v11 }
0x1201   : >> { %v3003_v4 = vpop.permute.xlu1 %3002 }
0x1202   : >> { %4296 = vmatmul.mubr.msk.bf16.vlgmr.msra.gmra.mrb[20].mxu0 %vm989_vm5, %v3003_v4 }
0x1203   : >> { %4318 = vmatpush3.bf16.msra.mxu1 %v5357_v13  ;;  %4308 = vmatpush3.bf16.msra.mxu0 %v5349_v7 }
0x1204   : >> { %4311 = vmatprep.mubr.msk.bf16.mxu0 %vm4928_vm7, %v4927_v11  ;;  %4309 = vmatprep.subr.bf16.mxu0 %v4927_v11 }
0x1205   : >> { %4331 = vmatprep.subr.bf16.mxu1 %v4927_v11 }
0x1207   : >> { %4310 = vmatpush3.bf16.msra.mxu0 %v5361_v14 }
0x1208   : >> { %4323 = vmatprep.subr.bf16.mxu0 %v4927_v11 }
0x12d1   : >> { %v3103_v21 = vpop.f32.mrb[20].mxu1 }
0x12d2   : >> { %v3110_v59 = vrot.slane %v3103_v21, 6  ;;  %v3111_v42 = vrot.slane %v3103_v21, 7  ;;  %v4305_v1 = vpop.f32.mrb[21].mxu1 }
0x12d3   : >> { %v3106_v9 = vpop.f32.mrb[22].mxu1 }
0x12d4   : >> { %v3114_v24 = vadd.f32 %v5683_v33, %v3110_v59  ;;  %v3115_v44 = vadd.f32 %v5687_v34, %v3111_v42  ;;  %v4306_v0 = vpop.f32.mrb[23].mxu1 }
0x12d5   : >> { %v3041_v5 = vpop.f32.mrb[20].mxu0 }
0x12d6   : >> { %4689 = vtanh.f32 %v3114_v24  ;;  %v3048_v50 = vrot.slane %v3041_v5, 3  ;;  %v3049_v12 = vrot.slane %v3041_v5, 4  ;;  %v4297_v25 = vpop.f32.mrb[21].mxu0  ;;  %v3977_v46 = vmul.f32 -1.442695, %v3114_v24 }
0x12d7   : >> { %4691 = vtanh.f32 %v3115_v44  ;;  %v3044_v27 = vpop.f32.mrb[22].mxu0  ;;  %v3978_v52 = vmul.f32 -1.442695, %v3115_v44 }
0x12d8   : >> { %v3052_v22 = vadd.f32 %v5691_v30, %v3048_v50  ;;  %v3053_v35 = vadd.f32 %v5695_v62, %v3049_v12  ;;  %v4298_v31 = vpop.f32.mrb[23].mxu0 }
0x12da   : >> { %4693 = vtanh.f32 %v3052_v22  ;;  %v3975_v45 = vmul.f32 -1.442695, %v3052_v22  ;;  %v3976_v54 = vmul.f32 -1.442695, %v3053_v35  ;;  %v3186_v22 = vrot.slane %v5708_v48, 1 }
0x12db   : >> { %4695 = vtanh.f32 %v3053_v35  ;;  %v3187_v35 = vrot.slane %v5711_v63, 1 }
0x12dc   : >> { %4697 = vpow2.f32 %v3977_v46  ;;  %v3132_v46 = vrot.slane %v5716_v20, 7 }
0x12dd   : >> { %4699 = vpow2.f32 %v3978_v52 }
0x12de   : >> { %4701 = vpow2.f32 %v3975_v45  ;;  %v3133_v45 = vrot.slane %v5718_v8, 7 }
0x12df   : >> { %4703 = vpow2.f32 %v3976_v54 }
0x12e0   : >> { %v4690_v15 = vpop.eup %4689 }
0x12e1   : >> { %v4692_v47 = vpop.eup %4691  ;;  %3194 = vrot.lane.b32.xlu0 %v4690_v15, %s4930_s9 }
0x12e2   : >> { %3196 = vrot.lane.b32.xlu1 %v4692_v47, %s4930_s9 }
0x12e4   : >> { %v4694_v29 = vpop.eup %4693 }
0x12e5   : >> { %v4696_v49 = vpop.eup %4695  ;;  %3140 = vrot.lane.b32.xlu0 %v4694_v29, %s4930_s9 }
0x12e6   : >> { %3142 = vrot.lane.b32.xlu1 %v4696_v49, %s4930_s9  ;;  %v4698_v10 = vpop.eup %4697 }
0x12e7   : >> { %v4700_v55 = vpop.eup %4699  ;;  %v3176_v18 = vadd.f32 1.0, %v4698_v10 }
0x12e8   : >> { %v3177_v58 = vadd.f32 1.0, %v4700_v55  ;;  %v4702_v2 = vpop.eup %4701 }
0x12e9   : >> { %v4704_v3 = vpop.eup %4703  ;;  %4705 = vrcp.f32 %v3176_v18  ;;  %v3122_v4 = vadd.f32 1.0, %v4702_v2 }
0x12ea   : >> { %4707 = vrcp.f32 %v3177_v58  ;;  %v3123_v21 = vadd.f32 1.0, %v4704_v3 }
0x12eb   : >> { %4709 = vrcp.f32 %v3122_v4 }
0x12ec   : >> { %4711 = vrcp.f32 %v3123_v21 }
0x12f3   : >> { %v4706_v59 = vpop.eup %4705 }
0x12f4   : >> { %v4708_v1 = vpop.eup %4707  ;;  %v3190_v31 = vmul.f32 %v4706_v59, %v3186_v22 }
0x12f5   : >> { %v4710_v0 = vpop.eup %4709  ;;  %v3191_v47 = vmul.f32 %v4708_v1, %v3187_v35 }
0x12f6   : >> { %v4712_v50 = vpop.eup %4711  ;;  %v3136_v54 = vmul.f32 %v4710_v0, %v3132_v46 }
0x12f7   : >> { %v3137_v10 = vmul.f32 %v4712_v50, %v3133_v45 }
0x1353   : >> { %v3195_v42 = vpop.permute.xlu0 %3194 }
0x1354   : >> { %v3200_v9 = vmul.f32 %v4706_v59, %v3195_v42  ;;  %v3197_v24 = vpop.permute.xlu1 %3196 }
0x1355   : >> { %v3201_v44 = vmul.f32 %v4708_v1, %v3197_v24 }
0x1356   : >> { %3204 = vrot.lane.b32.xlu0 %v3200_v9, %s4929_s16 }
0x1357   : >> { %3206 = vrot.lane.b32.xlu1 %v3201_v44, %s4929_s16  ;;  %v3141_v5 = vpop.permute.xlu0 %3140 }
0x1358   : >> { %v3146_v12 = vmul.f32 %v4710_v0, %v3141_v5  ;;  %v3143_v25 = vpop.permute.xlu1 %3142 }
0x1359   : >> { %v3147_v27 = vmul.f32 %v4712_v50, %v3143_v25 }
0x135a   : >> { %3150 = vrot.lane.b32.xlu0 %v3146_v12, %s4929_s16 }
0x135b   : >> { %3152 = vrot.lane.b32.xlu1 %v3147_v27, %s4929_s16 }
0x13c8   : >> { %v3205_v15 = vpop.permute.xlu0 %3204 }
0x13c9   : >> { %v5774_v29 = vadd.f32 %v3205_v15, %v3190_v31  ;;  %v3207_v49 = vpop.permute.xlu1 %3206 }
0x13ca   : >> { %v5777_v52 = vadd.f32 %v3207_v49, %v3191_v47 }
0x13cb   : >> { %4713 = vtanh.f32 %v5774_v29 }
0x13cc   : >> { %4715 = vtanh.f32 %v5777_v52  ;;  %v3151_v48 = vpop.permute.xlu0 %3150 }
0x13cd   : >> { %v5782_v63 = vadd.f32 %v3151_v48, %v3136_v54  ;;  %v3153_v55 = vpop.permute.xlu1 %3152 }
0x13ce   : >> { %v5784_v18 = vadd.f32 %v3153_v55, %v3137_v10 }
0x13cf   : >> { %4717 = vtanh.f32 %v5782_v63 }
0x13d0   : >> { %4719 = vtanh.f32 %v5784_v18 }
0x13d5   : >> { %v4714_v20 = vpop.eup %4713 }
0x13d6   : >> { %v4716_v58 = vpop.eup %4715  ;;  %3216 = vrot.lane.b32.xlu0 %v4714_v20, %s4930_s9 }
0x13d7   : >> { %3218 = vrot.lane.b32.xlu1 %v4716_v58, %s4930_s9 }
0x13d9   : >> { %v4718_v8 = vpop.eup %4717 }
0x13da   : >> { %v4720_v2 = vpop.eup %4719  ;;  %3162 = vrot.lane.b32.xlu0 %v4718_v8, %s4930_s9 }
0x13db   : >> { %3164 = vrot.lane.b32.xlu1 %v4720_v2, %s4930_s9 }
0x1448   : >> { %v3217_v3 = vpop.permute.xlu0 %3216 }
0x1449   : >> { %v5792_v4 = vmul.f32 %v4706_v59, %v3217_v3  ;;  %v3219_v21 = vpop.permute.xlu1 %3218 }
0x144a   : >> { %v5794_v42 = vmul.f32 %v4708_v1, %v3219_v21 }
0x144b   : >> { %v3286_v9 = vpack.c.bf16 %v5792_v4, %v5792_v4 }
0x144c   : >> { %v3287_v24 = vpack.c.bf16 %v5794_v42, %v5794_v42  ;;  %v3163_v5 = vpop.permute.xlu0 %3162 }
0x144d   : >> { %v3290_v44 = vunpack.c.l.b16 %v3286_v9  ;;  %v3168_v25 = vmul.f32 %v4710_v0, %v3163_v5  ;;  %v3165_v27 = vpop.permute.xlu1 %3164 }
0x144e   : >> { %v3291_v12 = vunpack.c.l.b16 %v3287_v24  ;;  %v3169_v35 = vmul.f32 %v4712_v50, %v3165_v27 }
0x144f   : >> { %v3292_v22 = vrot.slane %v3290_v44, 2  ;;  %v3224_v59 = vpack.c.bf16 %v3168_v25, %v3168_v25  ;;  %v5802_v1 = vsel %vm3695_vm10, %v5736_v16, %v3168_v25 }
0x1450   : >> { %v3293_v31 = vrot.slane %v3291_v12, 1  ;;  %v3225_v15 = vpack.c.bf16 %v3169_v35, %v3169_v35  ;;  %v5806_v47 = vsel %vm3695_vm10, %v5740_v32, %v3169_v35 }
0x1451   : >> { %v3228_v49 = vunpack.c.l.b16 %v3224_v59 }
0x1452   : >> { %v3294_v46 = vsel %vm1820_vm6, %v3293_v31, %v3292_v22  ;;  %v3229_v45 = vunpack.c.l.b16 %v3225_v15 }
0x1453   : >> { %v3295_v54 = vpack.c.b16 %v3294_v46, %v3294_v46  ;;  %v3230_v0 = vrot.slane %v3228_v49, 5 }
0x1454   : >> { %v3231_v48 = vrot.slane %v3229_v45, 4 }
0x1455   : >> { %3296 = vrot.lane.b32.xlu0 %v3295_v54, %s4929_s16 }
0x1456   : >> { %v3232_v50 = vsel %vm1820_vm6, %v3231_v48, %v3230_v0 }
0x1457   : >> { %v3233_v10 = vpack.c.b16 %v3232_v50, %v3232_v50 }
0x1459   : >> { %3234 = vrot.lane.b32.xlu1 %v3233_v10, %s4929_s16 }
0x14c7   : >> { %v3297_v16 = vpop.permute.xlu0 %3296 }
0x14c8   : >> { %4320 = vmatmul.mubr.msk.bf16.vlgmr.msra.gmra.mrb[24].mxu1 %vm989_vm5, %v3297_v16 }
0x14c9   : >> { %4332 = vmatpush3.bf16.msra.mxu1 %v5345_v6  ;;  %4335 = vmatprep.mubr.msk.bf16.mxu1 %vm4928_vm7, %v4927_v11 }
0x14ca   : >> { %4333 = vmatprep.subr.bf16.mxu1 %v4927_v11 }
0x14cb   : >> { %v3235_v32 = vpop.permute.xlu1 %3234 }
0x14cc   : >> { %4312 = vmatmul.mubr.msk.bf16.vlgmr.msra.gmra.mrb[24].mxu0 %vm989_vm5, %v3235_v32 }
0x14cd   : >> { %4334 = vmatpush3.bf16.msra.mxu1 %v5357_v13  ;;  %4324 = vmatpush3.bf16.msra.mxu0 %v5349_v7 }
0x14ce   : >> { %4327 = vmatprep.mubr.msk.bf16.mxu0 %vm4928_vm7, %v4927_v11  ;;  %4325 = vmatprep.subr.bf16.mxu0 %v4927_v11 }
0x14d1   : >> { %4326 = vmatpush3.bf16.msra.mxu0 %v5361_v14 }
0x159b   : >> { %v3335_v6 = vpop.f32.mrb[24].mxu1 }
0x159c   : >> { %v3342_v55 = vrot.slane %v3335_v6, 7  ;;  %v3346_v20 = vadd.f32 %v5687_v34, %v3335_v6  ;;  %v4321_v58 = vpop.f32.mrb[25].mxu1 }
0x159d   : >> { %v3338_v8 = vpop.f32.mrb[26].mxu1 }
0x159e   : >> { %v3345_v2 = vadd.f32 %v5683_v33, %v3342_v55  ;;  %4721 = vtanh.f32 %v3346_v20  ;;  %v4322_v3 = vpop.f32.mrb[27].mxu1  ;;  %v3984_v22 = vmul.f32 -1.442695, %v3346_v20 }
0x159f   : >> { %v3273_v13 = vpop.f32.mrb[24].mxu0 }
0x15a0   : >> { %4723 = vtanh.f32 %v3345_v2  ;;  %v3280_v7 = vrot.slane %v3273_v13, 2  ;;  %v3281_v21 = vrot.slane %v3273_v13, 3  ;;  %v4313_v9 = vpop.f32.mrb[25].mxu0  ;;  %v3983_v35 = vmul.f32 -1.442695, %v3345_v2 }
0x15a1   : >> { %v3276_v24 = vpop.f32.mrb[26].mxu0 }
0x15a2   : >> { %v3284_v11 = vadd.f32 %v5691_v30, %v3280_v7  ;;  %v3285_v14 = vadd.f32 %v5695_v62, %v3281_v21  ;;  %v4314_v44 = vpop.f32.mrb[27].mxu0  ;;  %v3418_v21 = vrot.slane %v5777_v52, 1  ;;  %v3417_v24 = vrot.slane %v5774_v29, 1 }
0x15a4   : >> { %4725 = vtanh.f32 %v3284_v11  ;;  %v3981_v31 = vmul.f32 -1.442695, %v3284_v11  ;;  %v3982_v59 = vmul.f32 -1.442695, %v3285_v14 }
0x15a5   : >> { %4727 = vtanh.f32 %v3285_v14 }
0x15a6   : >> { %4729 = vpow2.f32 %v3984_v22 }
0x15a7   : >> { %4731 = vpow2.f32 %v3983_v35 }
0x15a8   : >> { %v4722_v5 = vpop.eup %4721  ;;  %4733 = vpow2.f32 %v3981_v31 }
0x15a9   : >> { %3427 = vrot.lane.b32.xlu1 %v4722_v5, %s4930_s9  ;;  %4735 = vpow2.f32 %v3982_v59 }
0x15aa   : >> { %v4724_v12 = vpop.eup %4723 }
0x15ab   : >> { %3425 = vrot.lane.b32.xlu0 %v4724_v12, %s4930_s9  ;;  %v3363_v12 = vrot.slane %v5782_v63, 7 }
0x15ae   : >> { %v4726_v25 = vpop.eup %4725 }
0x15af   : >> { %v4728_v27 = vpop.eup %4727  ;;  %3371 = vrot.lane.b32.xlu0 %v4726_v25, %s4930_s9 }
0x15b0   : >> { %3373 = vrot.lane.b32.xlu1 %v4728_v27, %s4930_s9  ;;  %v4730_v15 = vpop.eup %4729  ;;  %v3364_v27 = vrot.slane %v5784_v18, 7 }
0x15b1   : >> { %v4732_v49 = vpop.eup %4731  ;;  %v3408_v46 = vadd.f32 1.0, %v4730_v15 }
0x15b2   : >> { %v3407_v45 = vadd.f32 1.0, %v4732_v49  ;;  %v4734_v54 = vpop.eup %4733 }
0x15b3   : >> { %4737 = vrcp.f32 %v3408_v46  ;;  %v4736_v0 = vpop.eup %4735  ;;  %v3353_v48 = vadd.f32 1.0, %v4734_v54 }
0x15b4   : >> { %4739 = vrcp.f32 %v3407_v45  ;;  %v3354_v50 = vadd.f32 1.0, %v4736_v0 }
0x15b5   : >> { %4741 = vrcp.f32 %v3353_v48 }
0x15b6   : >> { %4743 = vrcp.f32 %v3354_v50 }
0x15bd   : >> { %v4738_v10 = vpop.eup %4737 }
0x15be   : >> { %v4740_v6 = vpop.eup %4739  ;;  %v3422_v9 = vmul.f32 %v4738_v10, %v3418_v21 }
0x15bf   : >> { %v4742_v58 = vpop.eup %4741  ;;  %v3421_v44 = vmul.f32 %v4740_v6, %v3417_v24 }
0x15c0   : >> { %v4744_v2 = vpop.eup %4743  ;;  %v3367_v22 = vmul.f32 %v4742_v58, %v3363_v12 }
0x15c1   : >> { %v3368_v35 = vmul.f32 %v4744_v2, %v3364_v27 }
0x161b   : >> { %v3428_v16 = vpop.permute.xlu1 %3427 }
0x161c   : >> { %v3432_v32 = vmul.f32 %v4738_v10, %v3428_v16 }
0x161d   : >> { %v3426_v55 = vpop.permute.xlu0 %3425 }
0x161e   : >> { %3437 = vrot.lane.b32.xlu1 %v3432_v32, %s4929_s16  ;;  %v3431_v20 = vmul.f32 %v4740_v6, %v3426_v55 }
0x1620   : >> { %3435 = vrot.lane.b32.xlu0 %v3431_v20, %s4929_s16 }
0x1621   : >> { %v3372_v8 = vpop.permute.xlu0 %3371 }
0x1622   : >> { %v3377_v3 = vmul.f32 %v4742_v58, %v3372_v8  ;;  %v3374_v13 = vpop.permute.xlu1 %3373 }
0x1623   : >> { %v3378_v7 = vmul.f32 %v4744_v2, %v3374_v13 }
0x1624   : >> { %3381 = vrot.lane.b32.xlu0 %v3377_v3, %s4929_s16 }
0x1625   : >> { %3383 = vrot.lane.b32.xlu1 %v3378_v7, %s4929_s16 }
0x1690   : >> { %v3438_v11 = vpop.permute.xlu1 %3437 }
0x1691   : >> { %v5838_v14 = vadd.f32 %v3438_v11, %v3422_v9 }
0x1692   : >> { %v3436_v5 = vpop.permute.xlu0 %3435 }
0x1693   : >> { %4745 = vtanh.f32 %v5838_v14  ;;  %v5842_v25 = vadd.f32 %v3436_v5, %v3421_v44 }
0x1695   : >> { %4747 = vtanh.f32 %v5842_v25 }
0x1696   : >> { %v3382_v52 = vpop.permute.xlu0 %3381 }
0x1697   : >> { %v5846_v31 = vadd.f32 %v3382_v52, %v3367_v22  ;;  %v3384_v29 = vpop.permute.xlu1 %3383 }
0x1698   : >> { %v5848_v59 = vadd.f32 %v3384_v29, %v3368_v35 }
0x1699   : >> { %4749 = vtanh.f32 %v5846_v31 }
0x169a   : >> { %4751 = vtanh.f32 %v5848_v59 }
0x169d   : >> { %v4746_v15 = vpop.eup %4745 }
0x169e   : >> { %3449 = vrot.lane.b32.xlu1 %v4746_v15, %s4930_s9 }
0x169f   : >> { %v4748_v63 = vpop.eup %4747 }
0x16a0   : >> { %3447 = vrot.lane.b32.xlu0 %v4748_v63, %s4930_s9 }
0x16a3   : >> { %v4750_v18 = vpop.eup %4749 }
0x16a4   : >> { %v4752_v49 = vpop.eup %4751  ;;  %3393 = vrot.lane.b32.xlu0 %v4750_v18, %s4930_s9 }
0x16a5   : >> { %3395 = vrot.lane.b32.xlu1 %v4752_v49, %s4930_s9 }
0x1710   : >> { %v3450_v46 = vpop.permute.xlu1 %3449 }
0x1711   : >> { %v5856_v45 = vmul.f32 %v4738_v10, %v3450_v46 }
0x1712   : >> { %v3448_v54 = vpop.permute.xlu0 %3447 }
0x1713   : >> { %v5858_v0 = vmul.f32 %v4740_v6, %v3448_v54  ;;  %v3518_v48 = vpack.c.bf16 %v5856_v45, %v5856_v45 }
0x1715   : >> { %v3517_v50 = vpack.c.bf16 %v5858_v0, %v5858_v0  ;;  %v3522_v3 = vunpack.c.l.b16 %v3518_v48 }
0x1716   : >> { %v3394_v16 = vpop.permute.xlu0 %3393 }
0x1717   : >> { %v3521_v32 = vunpack.c.l.b16 %v3517_v50  ;;  %v3399_v55 = vmul.f32 %v4742_v58, %v3394_v16  ;;  %v3396_v20 = vpop.permute.xlu1 %3395 }
0x1718   : >> { %v3400_v8 = vmul.f32 %v4744_v2, %v3396_v20 }
0x1719   : >> { %v3523_v13 = vrot.slane %v3521_v32, 1  ;;  %v3455_v7 = vpack.c.bf16 %v3399_v55, %v3399_v55  ;;  %v5866_v10 = vsel %vm455_vm4, %v5802_v1, %v3399_v55 }
0x171a   : >> { %v3456_v6 = vpack.c.bf16 %v3400_v8, %v3400_v8  ;;  %v5870_v21 = vsel %vm455_vm4, %v5806_v47, %v3400_v8 }
0x171b   : >> { %v3459_v9 = vunpack.c.l.b16 %v3455_v7  ;;  %v3524_v24 = vsel %vm1820_vm6, %v3522_v3, %v3523_v13 }
0x171c   : >> { %v3460_v11 = vunpack.c.l.b16 %v3456_v6  ;;  %v3525_v44 = vpack.c.b16 %v3524_v24, %v3524_v24 }
0x171d   : >> { %v3461_v58 = vrot.slane %v3459_v9, 6 }
0x171e   : >> { %v3462_v5 = vrot.slane %v3460_v11, 5  ;;  %3526 = vrot.lane.b32.xlu0 %v3525_v44, %s4929_s16 }
0x1720   : >> { %v3463_v2 = vsel %vm1820_vm6, %v3462_v5, %v3461_v58 }
0x1721   : >> { %v3464_v12 = vpack.c.b16 %v3463_v2, %v3463_v2 }
0x1723   : >> { %3465 = vrot.lane.b32.xlu1 %v3464_v12, %s4929_s16 }
0x1790   : >> { %v3527_v1 = vpop.permute.xlu0 %3526 }
0x1791   : >> { %4336 = vmatmul.mubr.msk.bf16.vlgmr.msra.gmra.mrb[28].mxu1 %vm989_vm5, %v3527_v1 }
0x1795   : >> { %v3466_v27 = vpop.permute.xlu1 %3465 }
0x1796   : >> { %4328 = vmatmul.mubr.msk.bf16.vlgmr.msra.gmra.mrb[28].mxu0 %vm989_vm5, %v3466_v27 }
0x1864   : >> { %v3565_v47 = vpop.f32.mrb[28].mxu1 }
0x1865   : >> { %v3572_v22 = vrot.slane %v3565_v47, 1  ;;  %v3575_v52 = vadd.f32 %v5683_v33, %v3565_v47  ;;  %v4337_v35 = vpop.f32.mrb[29].mxu1 }
0x1866   : >> { %v3568_v29 = vpop.f32.mrb[30].mxu1 }
0x1867   : >> { %v3576_v15 = vadd.f32 %v5687_v34, %v3572_v22  ;;  %4753 = vtanh.f32 %v3575_v52  ;;  %v4338_v63 = vpop.f32.mrb[31].mxu1  ;;  %v3989_v8 = vmul.f32 -1.442695, %v3575_v52 }
0x1869   : >> { %v3504_v18 = vpop.f32.mrb[28].mxu0  ;;  %4755 = vtanh.f32 %v3576_v15  ;;  %v3990_v3 = vmul.f32 -1.442695, %v3576_v15 }
0x186a   : >> { %v3511_v49 = vrot.slane %v3504_v18, 1  ;;  %v3512_v46 = vrot.slane %v3504_v18, 2  ;;  %v4329_v54 = vpop.f32.mrb[29].mxu0  ;;  %v3647_v18 = vrot.slane %v5842_v25, 1 }
0x186b   : >> { %v3507_v48 = vpop.f32.mrb[30].mxu0 }
0x186c   : >> { %v3515_v50 = vadd.f32 %v5691_v30, %v3511_v49  ;;  %v3516_v16 = vadd.f32 %v5695_v62, %v3512_v46  ;;  %v4330_v32 = vpop.f32.mrb[31].mxu0  ;;  %v3648_v46 = vrot.slane %v5838_v14, 1 }
0x186d   : >> { %v3594_v32 = vrot.slane %v5848_v59, 7 }
0x186e   : >> { %4757 = vtanh.f32 %v3515_v50  ;;  %v3987_v30 = vmul.f32 -1.442695, %v3515_v50  ;;  %v3988_v62 = vmul.f32 -1.442695, %v3516_v16 }
0x186f   : >> { %4759 = vtanh.f32 %v3516_v16  ;;  %v3593_v16 = vrot.slane %v5846_v31, 7 }
0x1870   : >> { %4761 = vpow2.f32 %v3989_v8 }
0x1871   : >> { %v4754_v33 = vpop.eup %4753  ;;  %4763 = vpow2.f32 %v3990_v3 }
0x1872   : >> { %3655 = vrot.lane.b32.xlu0 %v4754_v33, %s4930_s9  ;;  %4765 = vpow2.f32 %v3987_v30 }
0x1873   : >> { %v4756_v55 = vpop.eup %4755  ;;  %4767 = vpow2.f32 %v3988_v62 }
0x1874   : >> { %3657 = vrot.lane.b32.xlu1 %v4756_v55, %s4930_s9 }
0x1878   : >> { %v4758_v34 = vpop.eup %4757 }
0x1879   : >> { %v4760_v20 = vpop.eup %4759  ;;  %3601 = vrot.lane.b32.xlu0 %v4758_v34, %s4930_s9 }
0x187a   : >> { %3603 = vrot.lane.b32.xlu1 %v4760_v20, %s4930_s9  ;;  %v4762_v13 = vpop.eup %4761 }
0x187b   : >> { %v4764_v7 = vpop.eup %4763  ;;  %v3637_v6 = vadd.f32 1.0, %v4762_v13 }
0x187c   : >> { %v3638_v9 = vadd.f32 1.0, %v4764_v7  ;;  %v4766_v24 = vpop.eup %4765 }
0x187d   : >> { %4769 = vrcp.f32 %v3637_v6  ;;  %v4768_v11 = vpop.eup %4767  ;;  %v3583_v44 = vadd.f32 1.0, %v4766_v24 }
0x187e   : >> { %4771 = vrcp.f32 %v3638_v9  ;;  %v3584_v58 = vadd.f32 1.0, %v4768_v11 }
0x187f   : >> { %4773 = vrcp.f32 %v3583_v44 }
0x1880   : >> { %4775 = vrcp.f32 %v3584_v58 }
0x1887   : >> { %v4770_v5 = vpop.eup %4769 }
0x1888   : >> { %v4772_v1 = vpop.eup %4771  ;;  %v3651_v49 = vmul.f32 %v4770_v5, %v3647_v18 }
0x1889   : >> { %v4774_v22 = vpop.eup %4773  ;;  %v3652_v48 = vmul.f32 %v4772_v1, %v3648_v46 }
0x188a   : >> { %v4776_v35 = vpop.eup %4775  ;;  %v3597_v33 = vmul.f32 %v4774_v22, %v3593_v16 }
0x188b   : >> { %v3598_v34 = vmul.f32 %v4776_v35, %v3594_v32 }
0x18e4   : >> { %v3656_v2 = vpop.permute.xlu0 %3655 }
0x18e5   : >> { %v3661_v12 = vmul.f32 %v4770_v5, %v3656_v2 }
0x18e6   : >> { %v3658_v27 = vpop.permute.xlu1 %3657 }
0x18e7   : >> { %3665 = vrot.lane.b32.xlu0 %v3661_v12, %s4929_s16  ;;  %v3662_v47 = vmul.f32 %v4772_v1, %v3658_v27 }
0x18e9   : >> { %3667 = vrot.lane.b32.xlu1 %v3662_v47, %s4929_s16 }
0x18eb   : >> { %v3602_v52 = vpop.permute.xlu0 %3601 }
0x18ec   : >> { %v3607_v29 = vmul.f32 %v4774_v22, %v3602_v52  ;;  %v3604_v15 = vpop.permute.xlu1 %3603 }
0x18ed   : >> { %v3608_v63 = vmul.f32 %v4776_v35, %v3604_v15 }
0x18ee   : >> { %3611 = vrot.lane.b32.xlu0 %v3607_v29, %s4929_s16 }
0x18ef   : >> { %3613 = vrot.lane.b32.xlu1 %v3608_v63, %s4929_s16 }
0x1959   : >> { %v3666_v54 = vpop.permute.xlu0 %3665 }
0x195a   : >> { %v5892_v58 = vadd.f32 %v3666_v54, %v3651_v49  }
0x195b   : >> { %v3668_v50 = vpop.permute.xlu1 %3667 }
0x195c   : >> { %4777 = vtanh.f32 %v5892_v58  ;;  %v3672_v3 = vadd.f32 %v3668_v50, %v3652_v48  }
0x195e   : >> { %4779 = vtanh.f32 %v3672_v3 }
0x1960   : >> { %v3612_v55 = vpop.permute.xlu0 %3611 }
0x1961   : >> { %v3617_v62 = vadd.f32 %v3612_v55, %v3597_v33   ;;  %v3614_v25 = vpop.permute.xlu1 %3613 }
0x1962   : >> { %v3618_v20 = vadd.f32 %v3614_v25, %v3598_v34  }
0x1963   : >> { %4781 = vtanh.f32 %v3617_v62 }
0x1964   : >> { %4783 = vtanh.f32 %v3618_v20 }
0x1966   : >> { %v4778_v14 = vpop.eup %4777 }
0x1967   : >> { %3677 = vrot.lane.b32.xlu0 %v4778_v14, %s4930_s9 }
0x1968   : >> { %v4780_v8 = vpop.eup %4779 }
0x1969   : >> { %3679 = vrot.lane.b32.xlu1 %v4780_v8, %s4930_s9 }
0x196d   : >> { %v4782_v30 = vpop.eup %4781 }
0x196e   : >> { %v4784_v31 = vpop.eup %4783  ;;  %3623 = vrot.lane.b32.xlu0 %v4782_v30, %s4930_s9 }
0x196f   : >> { %3625 = vrot.lane.b32.xlu1 %v4784_v31, %s4930_s9 }
0x19d9   : >> { %v3678_v59 = vpop.permute.xlu0 %3677 }
0x19da   : >> { %v3683_v13 = vmul.f32 %v4770_v5, %v3678_v59  }
0x19db   : >> { %v3680_v6 = vpop.permute.xlu1 %3679 }
0x19dc   : >> { %v3713_v7 = vsel %vm341_vm0, %v3683_v13, %v5858_v0  ;;  %v3684_v59 = vmul.f32 %v4772_v1, %v3680_v6  }
0x19dd   : >> { %v3715_v9 = vsel %vm342_vm1, %v3713_v7, %v5792_v4 }
0x19de   : >> { %v3717_v24 = vsel %vm3689_vm8, %v3715_v9, %v5726_v17  ;;  %v3714_v11 = vsel %vm341_vm0, %v3684_v59, %v5856_v45 }
0x19df   : >> { %v3719_v44 = vsel %vm3692_vm9, %v3717_v24, %v5648_v43  ;;  %v3716_v5 = vsel %vm342_vm1, %v3714_v11, %v5794_v42 }
0x19e0   : >> { %v3624_v2 = vpop.permute.xlu0 %3623  ;;  %v3718_v0 = vsel %vm3689_vm8, %v3716_v5, %v5728_v51  ;;  %v3721_v17 = vsel %vm3695_vm10, %v3719_v44, %v5578_v19 }
0x19e1   : >> { %v3629_v12 = vmul.f32 %v4774_v22, %v3624_v2   ;;  %v3626_v4 = vpop.permute.xlu1 %3625  ;;  %v3720_v45 = vsel %vm3692_vm9, %v3718_v0, %v5650_v61  ;;  %v3723_v19 = vsel %vm455_vm4, %v3721_v17, %v5512_v57 }
0x19e2   : >> { %v3630_v63 = vmul.f32 %v4776_v35, %v3626_v4   ;;  %v3722_v42 = vsel %vm3695_vm10, %v3720_v45, %v5580_v23 }
0x19e3   : >> { %v3700_v43 = vsel %vm313_vm2, %v5866_v10, %v3629_v12  ;;  %v3724_v61 = vsel %vm455_vm4, %v3722_v42, %v5514_v60  ;;  %v3725_v10 = vsel %vm313_vm2, %v3723_v19, %v5446_v53  ;;  %v6028_v0 = vmov %v3629_v12 }
0x19e4   : >> { %v3701_v51 = vsel %vm313_vm2, %v5870_v21, %v3630_v63  ;;  %3704 = vrot.lane.b32.xlu0 %v3700_v43, %s4929_s16  ;;  %v3726_v23 = vsel %vm313_vm2, %v3724_v61, %v5450_v56  ;;  %v6027_v61 = vmov %v3618_v20 }
0x19e5   : >> { %3706 = vrot.lane.b32.xlu1 %v3701_v51, %s4929_s16  ;;  %s3735_s16 = scalar_lea.vmem %s5304_s14, %s5392_s18 [#allocation3]  ;;  %s4000_s18 = sshll.u32 (%p1783_p11), %s4995_s28, 10 }
0x19e6   : > { %s5968_s23 = scalar_lea.hbm (%p1783_p11), %s6023_s7, %s4000_s18  ;;  %s4931_s28 = smov (%p1783_p11), [#allocation3]  }
0x19e7   : > { %s4793_s29 = sshll.u32 (%p1783_p11), %s4931_s28, 4  ;;  %s4794_s29 = int_to_ptr.vmem [resolvable:$false] %s4793_s29 }
0x19e8   : >> { %3729 = vrot.lane.b32.xlu0 %v3725_v10, %s4930_s9  ;;  %s4795_s8 = scalar_lea.vmem (%p1783_p11), %s4794_s29, 2048  ;;  %p4796_p1 = scmp.lt.s32.totalorder (%p1783_p11), %s5971_s21, %s4794_s29 }
0x19e9   : >> { %3731 = vrot.lane.b32.xlu1 %v3726_v23, %s4930_s9  ;;  %p4797_p2 = scmp.lt.s32.totalorder (%p1783_p11), %s4795_s8, %s4789_s15 }
0x19eb   : > { %p4798_p3 = por (%p1783_p11), %p4797_p2, %p4796_p1 }
0x19ed   : > { %p4799_p4 = pnand (%p1783_p11), %p4798_p3, %p4792_p0 }
0x1a56   : >> { %v3705_v21 = vpop.permute.xlu0 %3704  ;;  %1785 = sbr.rel (!%p1783_p11) target bundleno = 909 (0x38d), region = 104 }
0x1a57   : >> { %3711 = vst.msk [vmem:[%s3710_s17] sm:$0xff] %vm989_vm5, %v3705_v21  ;;  %v3707_v57 = vpop.permute.xlu1 %3706 }
0x1a58   : >> { %3712 = vst.msk [vmem:[%s3710_s17 + $0x20] sm:$0xff] %vm989_vm5, %v3707_v57 }
0x1a5a   : >> { %v3730_v60 = vpop.permute.xlu0 %3729 }
0x1a5b   : >> { %3737 = vst.msk [vmem:[%s3735_s16] sm:$0xff] %vm3736_vm11, %v3730_v60  ;;  %v3732_v53 = vpop.permute.xlu1 %3731  ;;  %v6026_v60 = vmov %v3683_v13 }
0x1a5c   : >> { %3738 = vst.msk [vmem:[%s3735_s16 + $0x20] sm:$0xff] %vm3736_vm11, %v3732_v53 }
0x1a5d   : > { %4802 = shalt.err (!%p4799_p4)
}
0x1a5e   : > { %s4803_s13 = scalar_lea.hbm %s5968_s23, 1024  ;;  %s4807_s17 = scalar_lea.hbm %s6023_s7, 2048 }
0x1a5f   : > { %p4804_p7 = scmp.ne.s32.totalorder %s5968_s23, %s4803_s13  ;;  %p4808_p10 = scmp.lt.u32.totalorder %s5968_s23, %s6023_s7 }
0x1a60   : > { %p4809_p11 = scmp.lt.u32.totalorder %s4807_s17, %s4803_s13  ;;  %p4811_p13 = scmp.lt.u32.totalorder %s4803_s13, %s5968_s23 }
0x1a61   : > { %p4805_p8 = pnand %p4804_p7, %p5012_p5 }
0x1a62   : > { %p4810_p12 = por %p4809_p11, %p4808_p10 }
0x1a63   : > { %p4806_p9 = pneg %p4805_p8 }
0x1a64   : > { %p4812_p0 = por %p4811_p13, %p4810_p12 }
0x1a66   : > { %p4813_p1 = pnand %p4812_p0, %p4806_p9 }
0x1a68   : > { %4816 = shalt.err (!%p4813_p1)
}
0x1a69   : > { %s4932_s19 = smov 128   ;;  %s4933_s20 = smov 8  }
0x1a6a   : > { %4404 = dma.vmem_to_hbm [thread:$0]  (%p5012_p5), %s5971_s21, 1024, %s5968_s23, %s5975_s22, %s4932_s19, %s4932_s19, %s4933_s20  }
0x1a6b PF: > { %p4410_p2 = scmp.ge.s32.totalorder %s4887_s27, 2  ;;  %s3769_s15 = sand.u32 1, %s4875_s24  }
0x1a6c   : > { %s3770_s28 = scalar_lea.sflag [#allocation4], %s3769_s15 }
0x1a6d   : > { %p4407_p3 = pnand %p4410_p2, %p5016_p6 }
0x1a6f   : > { %4870 = dma.done.wait (!%p4407_p3), %s3770_s28, 1024  }
0x1a70   : > { %4872 = vsyncadd (!%p4407_p3), %s3770_s28, 4294966272  ;;  %p17_p4 = scmp.ge.s32.totalorder %s4999_s30, 4   ;;  %s6029_s24 = smov %s4879_s25 }
0x1a71   : > { %s6030_s25 = smov %s4883_s26  ;;  %s6031_s26 = smov %s5010_s10 }
0x1a72   : > { %s6032_s27 = smov %s4999_s30  ;;  %19 = sbr.rel (!%p17_p4) target bundleno = 3 (0x3), region = 115 }
0x1a79   :  { %3775 = vsyncpa [#allocation4], 1 }
0x1a7a   :  { %3777 = vsyncpa [#allocation4 + $0x1], 1 }

</bundles_post_ra>
